<compile_context>
chip_gen: v7x
topology: tpu7x:2x2x1
jax: 0.10.0
libtpu: 0.0.40
codegen_flags: <defaults>
</compile_context>

<pallas_src>
import functools

import jax
import jax.numpy as jnp
from jax.experimental import pallas as pl
from jax.experimental.pallas import tpu as pltpu


# --------------------------------------------------------------------------
# Pallas kernel: InferenceNet + GenerativeNet (the GMVAE core)
# --------------------------------------------------------------------------
def _softmax_last(a):
    m = jnp.max(a, axis=-1, keepdims=True)
    e = jnp.exp(a - m)
    # one divide on the (TB, 1) denominator, then a broadcast multiply
    return e * (1.0 / jnp.sum(e, axis=-1, keepdims=True))


def gmvae_core_kernel(
    # batch-tiled inputs
    x_ref,         # (TB, Z)   encoder output, enc_x.squeeze(2)
    u_ref,         # (TB, Y)   uniform noise for the gumbel sample
    n_ref,         # (TB, Z)   normal noise for the reparameterization
    # InferenceNet weights (pre-transposed to (in, out) in the wrapper)
    qyx_wT_ref,    # (Z, Z)
    qyx_b_ref,     # (1, Z)
    gs_wT_ref,     # (Z, Y)
    gs_b_ref,      # (1, Y)
    qz1_wx_ref,    # (1, Z)  x-column of Linear(1+Y, Z) weight, as a row
    qz1_wyT_ref,   # (Y, Z)  y-columns of that weight, transposed
    qz1_b_ref,     # (1, Z)
    qz2_wT_ref,    # (Z, Z)
    qz2_b_ref,     # (1, Z)
    mu_w_ref,      # (1, Z)
    var_w_ref,     # (1, Z)
    # GenerativeNet weights
    ymu1_wT_ref,   # (Y, Z)
    ymu1_b_ref,    # (1, Z)
    ymu2_wT_ref,   # (Z, Z)
    ymu2_b_ref,    # (1, Z)
    yvar1_wT_ref,  # (Y, Z)
    yvar1_b_ref,   # (1, Z)
    yvar2_wT_ref,  # (Z, Z)
    yvar2_b_ref,   # (1, Z)
    px1_w_ref,     # (1, Z)  Linear(1, Z) weight as a row
    px1_b_ref,     # (1, Z)
    px2_wT_ref,    # (Z, Z)
    px2_b_ref,     # (1, Z)
    px3_w_ref,     # (1, Z)  Linear(Z, 1) weight as a row
    # SMEM scalars
    mu_b_ref,      # (1, 1)
    var_b_ref,     # (1, 1)
    px3_b_ref,     # (1, 1)
    # outputs
    gauss_ref,     # (TB, 3, Z)  rows: [mean, var, gaussian]
    cat_ref,       # (TB, 3, Y)  rows: [logits, prob_cat, categorical]
    gen_ref,       # (TB, 3, Z)  rows: [y_mean, y_var, x_rec]
    *,
    inv_temperature: float,
):
    x = x_ref[...]                                    # (TB, Z)
    tb, zdim = x.shape

    # ----- q(y|x): Linear -> tanh -> GumbelSoftmax -----------------------
    h = jnp.tanh(
        jnp.dot(x, qyx_wT_ref[...], preferred_element_type=jnp.float32)
        + qyx_b_ref[...])                             # (TB, Z)
    logits = (jnp.dot(h, gs_wT_ref[...], preferred_element_type=jnp.float32)
              + gs_b_ref[...])                        # (TB, Y)
    prob = _softmax_last(logits)

    eps = 1e-20
    gumbel = -jnp.log(-jnp.log(u_ref[...] + eps) + eps)
    y = _softmax_last((logits + gumbel) * inv_temperature)

    # ----- q(z|x,y): cat(x, y) -> Linear -> tanh -> Linear -> tanh -> Gaussian
    # First Linear (per (b, s)): W1[:,0]*x[b,s] + W1[:,1:] @ y[b] + b1.
    term_y = jnp.dot(y, qz1_wyT_ref[...],
                     preferred_element_type=jnp.float32)          # (TB, Z)
    h1 = jnp.tanh(x[:, :, None] * qz1_wx_ref[...]
                  + term_y[:, None, :] + qz1_b_ref[...])          # (TB, Z, Z)

    # Flatten so the second Linear is one tall MXU matmul.
    h1_2d = h1.reshape(tb * zdim, zdim)                           # (TB*Z, Z)
    h2_2d = jnp.tanh(
        jnp.dot(h1_2d, qz2_wT_ref[...], preferred_element_type=jnp.float32)
        + qz2_b_ref[...])                                         # (TB*Z, Z)
    h2 = h2_2d.reshape(tb, zdim, zdim)                            # (TB, Z, Z)

    # Gaussian heads (Linear(Z -> 1)) as lane reductions.
    mu = jnp.sum(h2 * mu_w_ref[...], axis=-1) + mu_b_ref[0, 0]    # (TB, Z)
    logvar = jnp.sum(h2 * var_w_ref[...], axis=-1) + var_b_ref[0, 0]

    var = jnp.exp(logvar)
    std = jnp.sqrt(var + 1e-10)
    z = mu + n_ref[...] * std                                     # (TB, Z)

    # ----- GenerativeNet p(z|y): two small MLP heads on y -----------------
    ymu_h = jnp.tanh(
        jnp.dot(y, ymu1_wT_ref[...], preferred_element_type=jnp.float32)
        + ymu1_b_ref[...])
    y_mean = (jnp.dot(ymu_h, ymu2_wT_ref[...],
                      preferred_element_type=jnp.float32) + ymu2_b_ref[...])
    yvar_h = jnp.tanh(
        jnp.dot(y, yvar1_wT_ref[...], preferred_element_type=jnp.float32)
        + yvar1_b_ref[...])
    y_var = jnp.exp(
        jnp.dot(yvar_h, yvar2_wT_ref[...],
                preferred_element_type=jnp.float32) + yvar2_b_ref[...])

    # ----- GenerativeNet p(x|z): per-element MLP on z.unsqueeze(-1) --------
    g1 = jnp.tanh(z[:, :, None] * px1_w_ref[...] + px1_b_ref[...])  # (TB,Z,Z)
    g1_2d = g1.reshape(tb * zdim, zdim)
    g2_2d = jnp.tanh(
        jnp.dot(g1_2d, px2_wT_ref[...], preferred_element_type=jnp.float32)
        + px2_b_ref[...])                                          # (TB*Z, Z)
    g2 = g2_2d.reshape(tb, zdim, zdim)
    x_rec = jnp.sum(g2 * px3_w_ref[...], axis=-1) + px3_b_ref[0, 0]  # (TB, Z)

    # Packed output slabs: one writeback DMA per slab per grid step.
    gauss_ref[:, 0:1, :] = mu[:, None, :]
    gauss_ref[:, 1:2, :] = var[:, None, :]
    gauss_ref[:, 2:3, :] = z[:, None, :]
    cat_ref[:, 0:1, :] = logits[:, None, :]
    cat_ref[:, 1:2, :] = prob[:, None, :]
    cat_ref[:, 2:3, :] = y[:, None, :]
    gen_ref[:, 0:1, :] = y_mean[:, None, :]
    gen_ref[:, 1:2, :] = y_var[:, None, :]
    gen_ref[:, 2:3, :] = x_rec[:, None, :]


def _round_up(n, m):
    return ((n + m - 1) // m) * m


def _pick_block_b(batch, z_dim, max_tile_bytes=4 << 20):
    # ~8 (TB, Z, Z) fp32 temporaries dominate per-tile VMEM; keep them small
    # enough to leave headroom for double-buffered I/O blocks (safe for v7x's
    # 64 MiB VMEM as well as v5e/v6e).
    per_row = 8 * z_dim * z_dim * 4
    tb = max(8, (max_tile_bytes // max(per_row, 1)) // 8 * 8)
    tb = min(tb, 128, _round_up(batch, 8))
    return int(tb)


def gmvae_core_forward(enc_x, params, u_noise, n_noise, temperature=1.0,
                       block_b=None):
    """enc_x: (B, z_dim, 1) float32 (PyTorch enc_x layout). Returns dict."""
    B, Z, x_dim = enc_x.shape
    assert x_dim == 1, "InferenceNet requires x_dim == 1"
    assert Z % 8 == 0, "latent_dim must be a multiple of 8 (sublane tiling)"
    Y = params["gs_w"].shape[0]

    if block_b is None:
        block_b = _pick_block_b(B, Z)
    block_b = max(8, (block_b // 8) * 8)
    Bp = _round_up(B, block_b)

    x2d = enc_x[:, :, 0]
    u_in, n_in = u_noise, n_noise
    if Bp != B:
        pad = ((0, Bp - B), (0, 0))
        x2d = jnp.pad(x2d, pad)
        u_in = jnp.pad(u_in, pad)
        n_in = jnp.pad(n_in, pad)

    # ----- wrapper-side layout plumbing (free): pre-transpose all weights so
    # the kernel never does W.T; split the qz1 weight into its x column and y
    # block; reshape biases to broadcastable rows / SMEM scalars.
    f32 = jnp.float32
    qyx_wT = params["qyx_w"].T.astype(f32)                  # (Z, Z)
    qyx_b = params["qyx_b"].reshape(1, Z).astype(f32)
    gs_wT = params["gs_w"].T.astype(f32)                    # (Z, Y)
    gs_b = params["gs_b"].reshape(1, Y).astype(f32)
    qz1_wx = params["qz1_w"][:, 0].reshape(1, Z).astype(f32)
    qz1_wyT = params["qz1_w"][:, 1:].T.astype(f32)          # (Y, Z)
    qz1_b = params["qz1_b"].reshape(1, Z).astype(f32)
    qz2_wT = params["qz2_w"].T.astype(f32)                  # (Z, Z)
    qz2_b = params["qz2_b"].reshape(1, Z).astype(f32)
    mu_w = params["mu_w"].reshape(1, Z).astype(f32)
    var_w = params["var_w"].reshape(1, Z).astype(f32)
    mu_b = params["mu_b"].reshape(1, 1).astype(f32)
    var_b = params["var_b"].reshape(1, 1).astype(f32)

    ymu1_wT = params["ymu1_w"].T.astype(f32)                # (Y, Z)
    ymu1_b = params["ymu1_b"].reshape(1, Z).astype(f32)
    ymu2_wT = params["ymu2_w"].T.astype(f32)                # (Z, Z)
    ymu2_b = params["ymu2_b"].reshape(1, Z).astype(f32)
    yvar1_wT = params["yvar1_w"].T.astype(f32)              # (Y, Z)
    yvar1_b = params["yvar1_b"].reshape(1, Z).astype(f32)
    yvar2_wT = params["yvar2_w"].T.astype(f32)              # (Z, Z)
    yvar2_b = params["yvar2_b"].reshape(1, Z).astype(f32)
    px1_w = params["px1_w"][:, 0].reshape(1, Z).astype(f32)
    px1_b = params["px1_b"].reshape(1, Z).astype(f32)
    px2_wT = params["px2_w"].T.astype(f32)                  # (Z, Z)
    px2_b = params["px2_b"].reshape(1, Z).astype(f32)
    px3_w = params["px3_w"].reshape(1, Z).astype(f32)
    px3_b = params["px3_b"].reshape(1, 1).astype(f32)

    grid = (Bp // block_b,)
    vmem = pltpu.MemorySpace.VMEM
    smem = pltpu.MemorySpace.SMEM

    batch_map = lambda i: (i, 0)
    batch_map3 = lambda i: (i, 0, 0)
    const_map = lambda i: (0, 0)

    def const_spec(shape):
        return pl.BlockSpec(shape, const_map, memory_space=vmem)

    in_specs = [
        pl.BlockSpec((block_b, Z), batch_map, memory_space=vmem),   # x
        pl.BlockSpec((block_b, Y), batch_map, memory_space=vmem),   # u
        pl.BlockSpec((block_b, Z), batch_map, memory_space=vmem),   # n
        const_spec((Z, Z)),      # qyx_wT
        const_spec((1, Z)),      # qyx_b
        const_spec((Z, Y)),      # gs_wT
        const_spec((1, Y)),      # gs_b
        const_spec((1, Z)),      # qz1_wx
        const_spec((Y, Z)),      # qz1_wyT
        const_spec((1, Z)),      # qz1_b
        const_spec((Z, Z)),      # qz2_wT
        const_spec((1, Z)),      # qz2_b
        const_spec((1, Z)),      # mu_w
        const_spec((1, Z)),      # var_w
        const_spec((Y, Z)),      # ymu1_wT
        const_spec((1, Z)),      # ymu1_b
        const_spec((Z, Z)),      # ymu2_wT
        const_spec((1, Z)),      # ymu2_b
        const_spec((Y, Z)),      # yvar1_wT
        const_spec((1, Z)),      # yvar1_b
        const_spec((Z, Z)),      # yvar2_wT
        const_spec((1, Z)),      # yvar2_b
        const_spec((1, Z)),      # px1_w
        const_spec((1, Z)),      # px1_b
        const_spec((Z, Z)),      # px2_wT
        const_spec((1, Z)),      # px2_b
        const_spec((1, Z)),      # px3_w
        pl.BlockSpec(memory_space=smem),                            # mu_b
        pl.BlockSpec(memory_space=smem),                            # var_b
        pl.BlockSpec(memory_space=smem),                            # px3_b
    ]
    out_specs = (
        pl.BlockSpec((block_b, 3, Z), batch_map3, memory_space=vmem),
        pl.BlockSpec((block_b, 3, Y), batch_map3, memory_space=vmem),
        pl.BlockSpec((block_b, 3, Z), batch_map3, memory_space=vmem),
    )
    out_shape = (
        jax.ShapeDtypeStruct((Bp, 3, Z), jnp.float32),
        jax.ShapeDtypeStruct((Bp, 3, Y), jnp.float32),
        jax.ShapeDtypeStruct((Bp, 3, Z), jnp.float32),
    )

    kernel = functools.partial(gmvae_core_kernel,
                               inv_temperature=float(1.0 / temperature))
    gauss, cat, gen = pl.pallas_call(
        kernel,
        grid=grid,
        in_specs=in_specs,
        out_specs=out_specs,
        out_shape=out_shape,
        compiler_params=pltpu.CompilerParams(
            dimension_semantics=("parallel",)),
    )(x2d, u_in, n_in,
      qyx_wT, qyx_b, gs_wT, gs_b,
      qz1_wx, qz1_wyT, qz1_b, qz2_wT, qz2_b, mu_w, var_w,
      ymu1_wT, ymu1_b, ymu2_wT, ymu2_b,
      yvar1_wT, yvar1_b, yvar2_wT, yvar2_b,
      px1_w, px1_b, px2_wT, px2_b, px3_w,
      mu_b, var_b, px3_b)

    return {
        "mean": gauss[:B, 0, :],
        "var": gauss[:B, 1, :],
        "gaussian": gauss[:B, 2, :],
        "logits": cat[:B, 0, :],
        "prob_cat": cat[:B, 1, :],
        "categorical": cat[:B, 2, :],
        "y_mean": gen[:B, 0, :],
        "y_var": gen[:B, 1, :],
        "x_rec": gen[:B, 2, :],
    }


# --------------------------------------------------------------------------
# Pure-JAX reference of the GMVAE core (mirrors the PyTorch forward)
# --------------------------------------------------------------------------
def gmvae_core_reference(enc_x, params, u_noise, n_noise, temperature=1.0):
    with jax.default_matmul_precision("highest"):
        B, Z, _ = enc_x.shape
        x2d = enc_x[:, :, 0]
        # InferenceNet.qyx
        h = jnp.tanh(x2d @ params["qyx_w"].T + params["qyx_b"])
        logits = h @ params["gs_w"].T + params["gs_b"]
        prob = jax.nn.softmax(logits, axis=-1)
        eps = 1e-20
        g = -jnp.log(-jnp.log(u_noise + eps) + eps)
        y = jax.nn.softmax((logits + g) / temperature, axis=-1)
        # InferenceNet.qzxy
        y_rep = jnp.broadcast_to(y[:, None, :], (B, Z, y.shape[-1]))
        concat = jnp.concatenate([enc_x, y_rep], axis=2)          # (B, Z, 1+Y)
        h1 = jnp.tanh(jnp.einsum("bsc,oc->bso", concat, params["qz1_w"])
                      + params["qz1_b"])
        h2 = jnp.tanh(jnp.einsum("bso,po->bsp", h1, params["qz2_w"])
                      + params["qz2_b"])
        mu = jnp.einsum("bsp,p->bs", h2, params["mu_w"][0]) + params["mu_b"][0]
        logvar = (jnp.einsum("bsp,p->bs", h2, params["var_w"][0])
                  + params["var_b"][0])
        var = jnp.exp(logvar)
        z = mu + n_noise * jnp.sqrt(var + 1e-10)
        # GenerativeNet.pzy
        ymu_h = jnp.tanh(y @ params["ymu1_w"].T + params["ymu1_b"])
        y_mean = ymu_h @ params["ymu2_w"].T + params["ymu2_b"]
        yvar_h = jnp.tanh(y @ params["yvar1_w"].T + params["yvar1_b"])
        y_var = jnp.exp(yvar_h @ params["yvar2_w"].T + params["yvar2_b"])
        # GenerativeNet.pxz
        g1 = jnp.tanh(z[:, :, None] * params["px1_w"][:, 0] + params["px1_b"])
        g2 = jnp.tanh(jnp.einsum("bso,po->bsp", g1, params["px2_w"])
                      + params["px2_b"])
        x_rec = (jnp.einsum("bsp,p->bs", g2, params["px3_w"][0])
                 + params["px3_b"][0])
    return {"mean": mu, "var": var, "gaussian": z,
            "logits": logits, "prob_cat": prob, "categorical": y,
            "y_mean": y_mean, "y_var": y_var, "x_rec": x_rec}


# --------------------------------------------------------------------------
# MultiTaskAutoEncoder forward (plain JAX around the Pallas core) + losses
# --------------------------------------------------------------------------
def _log_normal(x, mu, var, eps=1e-8):
    var = var + eps
    return -0.5 * jnp.mean(
        jnp.log(2.0 * jnp.pi) + jnp.log(var) + (x - mu) ** 2 / var, axis=-1)


def _gaussian_loss(z, z_mu, z_var, mu_prior, var_prior):
    return jnp.mean(_log_normal(z, z_mu, z_var)
                    - _log_normal(z, mu_prior, var_prior))


def _entropy(logits, targets):
    log_q = jax.nn.log_softmax(logits, axis=-1)
    return -jnp.mean(jnp.sum(targets * log_q, axis=-1))


def multitask_autoencoder_forward(x, params, u_noise, n_noise, *, alpha=1.0,
                                  temperature=1.0, use_pallas=True,
                                  block_b=None):
    # encoder: Linear(feature, latent) + tanh ; view(B, latent, 1)
    enc = jnp.tanh(x @ params["enc_w"].T + params["enc_b"])
    enc_x = enc[:, :, None]

    if use_pallas:
        core = gmvae_core_forward(enc_x, params, u_noise, n_noise,
                                  temperature, block_b)
    else:
        core = gmvae_core_reference(enc_x, params, u_noise, n_noise,
                                    temperature)

    z = core["gaussian"]
    # decoder on x_rec
    rec = core["x_rec"] @ params["dec_w"].T + params["dec_b"]
    # predictor (eval-mode Dropout == identity)
    p1 = jax.nn.leaky_relu(z @ params["pred1_w"].T + params["pred1_b"], 0.2)
    pred = jax.nn.softmax(p1 @ params["pred2_w"].T + params["pred2_b"], axis=1)
    # discriminator through GRL (forward = *alpha); eval-mode BN / Dropout
    d = (z * alpha) @ params["disc1_w"].T + params["disc1_b"]
    d = ((d - params["bn_mean"]) / jnp.sqrt(params["bn_var"] + 1e-5)
         * params["bn_gamma"] + params["bn_beta"])
    d = jax.nn.leaky_relu(d, 0.2)
    domain = jax.nn.sigmoid(d @ params["disc2_w"].T + params["disc2_b"])

    rec_loss = jnp.mean((x - rec) ** 2)
    loss_gauss = _gaussian_loss(z, core["mean"], core["var"],
                                core["y_mean"], core["y_var"])
    loss_cat = -_entropy(core["logits"], core["prob_cat"]) - jnp.log(0.1)
    ae_loss = {"loss_rec": rec_loss, "loss_gauss": loss_gauss,
               "loss_cat": loss_cat}
    return ae_loss, pred, domain, core


# --------------------------------------------------------------------------
# Parameter init (PyTorch nn.Linear convention: weight (out, in))
# --------------------------------------------------------------------------
def _init_linear(key, out_dim, in_dim):
    kw, kb = jax.random.split(key)
    bound = 1.0 / jnp.sqrt(jnp.float32(in_dim))
    w = jax.random.uniform(kw, (out_dim, in_dim), jnp.float32, -bound, bound)
    b = jax.random.uniform(kb, (out_dim,), jnp.float32, -bound, bound)
    return w, b


def make_params(key, feature_num, latent_dim, y_dim, celltype_num):
    Z, F_, Y, C = latent_dim, feature_num, y_dim, celltype_num
    ks = iter(jax.random.split(key, 19))
    lin = lambda o, i: _init_linear(next(ks), o, i)
    p = {}
    p["enc_w"], p["enc_b"] = lin(Z, F_)            # encoder Linear
    p["dec_w"], p["dec_b"] = lin(F_, Z)            # decoder Linear
    p["qyx_w"], p["qyx_b"] = lin(Z, Z)             # InferenceNet qyx Linear
    p["gs_w"], p["gs_b"] = lin(Y, Z)               # GumbelSoftmax logits
    p["qz1_w"], p["qz1_b"] = lin(Z, 1 + Y)         # qzxy Linear(1+Y, Z)
    p["qz2_w"], p["qz2_b"] = lin(Z, Z)             # qzxy Linear(Z, Z)
    p["mu_w"], p["mu_b"] = lin(1, Z)               # Gaussian.mu
    p["var_w"], p["var_b"] = lin(1, Z)             # Gaussian.var
    p["ymu1_w"], p["ymu1_b"] = lin(Z, Y)           # GenerativeNet y_mu[0]
    p["ymu2_w"], p["ymu2_b"] = lin(Z, Z)           # GenerativeNet y_mu[2]
    p["yvar1_w"], p["yvar1_b"] = lin(Z, Y)         # GenerativeNet y_var[0]
    p["yvar2_w"], p["yvar2_b"] = lin(Z, Z)         # GenerativeNet y_var[2]
    p["px1_w"], p["px1_b"] = lin(Z, 1)             # pxz Linear(1, Z)
    p["px2_w"], p["px2_b"] = lin(Z, Z)             # pxz Linear(Z, Z)
    p["px3_w"], p["px3_b"] = lin(1, Z)             # pxz Linear(Z, 1)
    p["pred1_w"], p["pred1_b"] = lin(64, Z)        # predictor EncoderBlock
    p["pred2_w"], p["pred2_b"] = lin(C, 64)        # predictor head
    p["disc1_w"], p["disc1_b"] = lin(64, Z)        # discriminator Linear
    p["disc2_w"], p["disc2_b"] = lin(1, 64)        # discriminator head
    p["bn_gamma"] = jnp.ones((64,), jnp.float32)
    p["bn_beta"] = jnp.zeros((64,), jnp.float32)
    p["bn_mean"] = jnp.zeros((64,), jnp.float32)
    p["bn_var"] = jnp.ones((64,), jnp.float32)
    return p


if __name__ == "__main__":
    # Small shapes consistent with MultiTaskAutoEncoder: the inference net
    # sees the encoder output as (B, latent_dim, 1) with x_dim=1, y_dim=5.
    B, FEATURE, LATENT, Y_DIM, CELLTYPE = 16, 64, 32, 5, 6
    TEMPERATURE, ALPHA = 1.0, 0.7

    root = jax.random.PRNGKey(0)
    k_params, k_x, k_u, k_n = jax.random.split(root, 4)

    params = make_params(k_params, FEATURE, LATENT, Y_DIM, CELLTYPE)
    x = jax.random.normal(k_x, (B, FEATURE), jnp.float32)
    u_noise = jax.random.uniform(k_u, (B, Y_DIM), jnp.float32)   # torch.rand
    n_noise = jax.random.normal(k_n, (B, LATENT), jnp.float32)   # randn_like

    # block_b=8 -> grid=(2,): exercises the batch-tiled, pipelined path.
    ae_loss, pred, domain, core = multitask_autoencoder_forward(
        x, params, u_noise, n_noise, alpha=ALPHA, temperature=TEMPERATURE,
        use_pallas=True, block_b=8)
    jax.block_until_ready((pred, domain))

    ae_ref, pred_ref, dom_ref, core_ref = multitask_autoencoder_forward(
        x, params, u_noise, n_noise, alpha=ALPHA, temperature=TEMPERATURE,
        use_pallas=False)

    def check(name, a, b, rtol=1e-3, atol=3e-4):
        assert a.shape == b.shape, (name, a.shape, b.shape)
        max_diff = float(jnp.max(jnp.abs(a - b)))
        assert jnp.allclose(a, b, rtol=rtol, atol=atol), (name, max_diff)

    for name in ("mean", "var", "gaussian", "logits", "prob_cat",
                 "categorical", "y_mean", "y_var", "x_rec"):
        check("core." + name, core[name], core_ref[name])
    check("pred", pred, pred_ref)
    check("domain", domain, dom_ref)
    for name in ae_loss:
        check("loss." + name, ae_loss[name], ae_ref[name],
              rtol=2e-3, atol=1e-3)

    print("KERNEL_OK")
</pallas_src>

<mosaic_0001>
module attributes {stable_mosaic.version = 11 : i64} {
  func.func @gmvae_core_kernel(%arg0: i32, %arg1: memref<8x32xf32, #tpu.memory_space<vmem>>, %arg2: memref<8x5xf32, #tpu.memory_space<vmem>>, %arg3: memref<8x32xf32, #tpu.memory_space<vmem>>, %arg4: memref<32x32xf32, #tpu.memory_space<vmem>>, %arg5: memref<1x32xf32, #tpu.memory_space<vmem>>, %arg6: memref<32x5xf32, #tpu.memory_space<vmem>>, %arg7: memref<1x5xf32, #tpu.memory_space<vmem>>, %arg8: memref<1x32xf32, #tpu.memory_space<vmem>>, %arg9: memref<5x32xf32, #tpu.memory_space<vmem>>, %arg10: memref<1x32xf32, #tpu.memory_space<vmem>>, %arg11: memref<32x32xf32, #tpu.memory_space<vmem>>, %arg12: memref<1x32xf32, #tpu.memory_space<vmem>>, %arg13: memref<1x32xf32, #tpu.memory_space<vmem>>, %arg14: memref<1x32xf32, #tpu.memory_space<vmem>>, %arg15: memref<5x32xf32, #tpu.memory_space<vmem>>, %arg16: memref<1x32xf32, #tpu.memory_space<vmem>>, %arg17: memref<32x32xf32, #tpu.memory_space<vmem>>, %arg18: memref<1x32xf32, #tpu.memory_space<vmem>>, %arg19: memref<5x32xf32, #tpu.memory_space<vmem>>, %arg20: memref<1x32xf32, #tpu.memory_space<vmem>>, %arg21: memref<32x32xf32, #tpu.memory_space<vmem>>, %arg22: memref<1x32xf32, #tpu.memory_space<vmem>>, %arg23: memref<1x32xf32, #tpu.memory_space<vmem>>, %arg24: memref<1x32xf32, #tpu.memory_space<vmem>>, %arg25: memref<32x32xf32, #tpu.memory_space<vmem>>, %arg26: memref<1x32xf32, #tpu.memory_space<vmem>>, %arg27: memref<1x32xf32, #tpu.memory_space<vmem>>, %arg28: memref<1x1xf32, #tpu.memory_space<smem>>, %arg29: memref<1x1xf32, #tpu.memory_space<smem>>, %arg30: memref<1x1xf32, #tpu.memory_space<smem>>, %arg31: memref<8x3x32xf32, #tpu.memory_space<vmem>>, %arg32: memref<8x3x5xf32, #tpu.memory_space<vmem>>, %arg33: memref<8x3x32xf32, #tpu.memory_space<vmem>>) attributes {dimension_semantics = [#tpu.dimension_semantics<parallel>], iteration_bounds = array<i64: 2>, scalar_prefetch = 0 : i64, scratch_operands = 0 : i64, tpu.core_type = #tpu.core_type<tc>, window_params = [{transform_indices = @transform_0, window_bounds = array<i64: 8, 32>}, {transform_indices = @transform_1, window_bounds = array<i64: 8, 5>}, {transform_indices = @transform_2, window_bounds = array<i64: 8, 32>}, {pipeline_mode = #tpu.pipeline_mode<synchronous>, transform_indices = @transform_3, window_bounds = array<i64: 32, 32>}, {pipeline_mode = #tpu.pipeline_mode<synchronous>, transform_indices = @transform_4, window_bounds = array<i64: 1, 32>}, {pipeline_mode = #tpu.pipeline_mode<synchronous>, transform_indices = @transform_5, window_bounds = array<i64: 32, 5>}, {pipeline_mode = #tpu.pipeline_mode<synchronous>, transform_indices = @transform_6, window_bounds = array<i64: 1, 5>}, {pipeline_mode = #tpu.pipeline_mode<synchronous>, transform_indices = @transform_7, window_bounds = array<i64: 1, 32>}, {pipeline_mode = #tpu.pipeline_mode<synchronous>, transform_indices = @transform_8, window_bounds = array<i64: 5, 32>}, {pipeline_mode = #tpu.pipeline_mode<synchronous>, transform_indices = @transform_9, window_bounds = array<i64: 1, 32>}, {pipeline_mode = #tpu.pipeline_mode<synchronous>, transform_indices = @transform_10, window_bounds = array<i64: 32, 32>}, {pipeline_mode = #tpu.pipeline_mode<synchronous>, transform_indices = @transform_11, window_bounds = array<i64: 1, 32>}, {pipeline_mode = #tpu.pipeline_mode<synchronous>, transform_indices = @transform_12, window_bounds = array<i64: 1, 32>}, {pipeline_mode = #tpu.pipeline_mode<synchronous>, transform_indices = @transform_13, window_bounds = array<i64: 1, 32>}, {pipeline_mode = #tpu.pipeline_mode<synchronous>, transform_indices = @transform_14, window_bounds = array<i64: 5, 32>}, {pipeline_mode = #tpu.pipeline_mode<synchronous>, transform_indices = @transform_15, window_bounds = array<i64: 1, 32>}, {pipeline_mode = #tpu.pipeline_mode<synchronous>, transform_indices = @transform_16, window_bounds = array<i64: 32, 32>}, {pipeline_mode = #tpu.pipeline_mode<synchronous>, transform_indices = @transform_17, window_bounds = array<i64: 1, 32>}, {pipeline_mode = #tpu.pipeline_mode<synchronous>, transform_indices = @transform_18, window_bounds = array<i64: 5, 32>}, {pipeline_mode = #tpu.pipeline_mode<synchronous>, transform_indices = @transform_19, window_bounds = array<i64: 1, 32>}, {pipeline_mode = #tpu.pipeline_mode<synchronous>, transform_indices = @transform_20, window_bounds = array<i64: 32, 32>}, {pipeline_mode = #tpu.pipeline_mode<synchronous>, transform_indices = @transform_21, window_bounds = array<i64: 1, 32>}, {pipeline_mode = #tpu.pipeline_mode<synchronous>, transform_indices = @transform_22, window_bounds = array<i64: 1, 32>}, {pipeline_mode = #tpu.pipeline_mode<synchronous>, transform_indices = @transform_23, window_bounds = array<i64: 1, 32>}, {pipeline_mode = #tpu.pipeline_mode<synchronous>, transform_indices = @transform_24, window_bounds = array<i64: 32, 32>}, {pipeline_mode = #tpu.pipeline_mode<synchronous>, transform_indices = @transform_25, window_bounds = array<i64: 1, 32>}, {pipeline_mode = #tpu.pipeline_mode<synchronous>, transform_indices = @transform_26, window_bounds = array<i64: 1, 32>}, {transform_indices = @transform_27, window_bounds = array<i64: 1, 1>}, {transform_indices = @transform_28, window_bounds = array<i64: 1, 1>}, {transform_indices = @transform_29, window_bounds = array<i64: 1, 1>}, {transform_indices = @transform_30, window_bounds = array<i64: 8, 3, 32>}, {transform_indices = @transform_31, window_bounds = array<i64: 8, 3, 5>}, {transform_indices = @transform_32, window_bounds = array<i64: 8, 3, 32>}]} {
    %c0 = arith.constant 0 : index
    %c0_0 = arith.constant 0 : index
    %0 = vector.load %arg1[%c0, %c0_0] : memref<8x32xf32, #tpu.memory_space<vmem>>, vector<8x32xf32>
    %c0_1 = arith.constant 0 : index
    %c0_2 = arith.constant 0 : index
    %1 = vector.load %arg4[%c0_1, %c0_2] : memref<32x32xf32, #tpu.memory_space<vmem>>, vector<32x32xf32>
    %cst = arith.constant dense<0.000000e+00> : vector<8x32xf32>
    %2 = tpu.matmul %0, %1, %cst {dimension_numbers = #tpu.dot_dimension_numbers<[1], [0], [0], [1], [0, 0, 1, 1], [], []>} : vector<8x32xf32>, vector<32x32xf32>, vector<8x32xf32> -> vector<8x32xf32>
    %c0_3 = arith.constant 0 : index
    %c0_4 = arith.constant 0 : index
    %3 = vector.load %arg5[%c0_3, %c0_4] : memref<1x32xf32, #tpu.memory_space<vmem>>, vector<1x32xf32>
    %4 = vector.broadcast %3 : vector<1x32xf32> to vector<8x32xf32>
    %5 = arith.addf %2, %4 : vector<8x32xf32>
    %6 = math.tanh %5 : vector<8x32xf32>
    %c0_5 = arith.constant 0 : index
    %c0_6 = arith.constant 0 : index
    %7 = vector.load %arg6[%c0_5, %c0_6] : memref<32x5xf32, #tpu.memory_space<vmem>>, vector<32x5xf32>
    %cst_7 = arith.constant dense<0.000000e+00> : vector<8x5xf32>
    %8 = tpu.matmul %6, %7, %cst_7 {dimension_numbers = #tpu.dot_dimension_numbers<[1], [0], [0], [1], [0, 0, 1, 1], [], []>} : vector<8x32xf32>, vector<32x5xf32>, vector<8x5xf32> -> vector<8x5xf32>
    %c0_8 = arith.constant 0 : index
    %c0_9 = arith.constant 0 : index
    %9 = vector.load %arg7[%c0_8, %c0_9] : memref<1x5xf32, #tpu.memory_space<vmem>>, vector<1x5xf32>
    %10 = vector.broadcast %9 : vector<1x5xf32> to vector<8x5xf32>
    %11 = arith.addf %8, %10 : vector<8x5xf32>
    %cst_10 = arith.constant dense<0xFF800000> : vector<8xf32>
    %12 = vector.multi_reduction <maximumf>, %11, %cst_10 [1] : vector<8x5xf32> to vector<8xf32>
    %13 = vector.shape_cast %12 : vector<8xf32> to vector<8x1xf32>
    %14 = vector.broadcast %13 : vector<8x1xf32> to vector<8x5xf32>
    %15 = arith.subf %11, %14 : vector<8x5xf32>
    %16 = math.exp %15 : vector<8x5xf32>
    %cst_11 = arith.constant dense<0.000000e+00> : vector<8xf32>
    %17 = vector.multi_reduction <add>, %16, %cst_11 [1] : vector<8x5xf32> to vector<8xf32>
    %18 = vector.shape_cast %17 : vector<8xf32> to vector<8x1xf32>
    %cst_12 = arith.constant 1.000000e+00 : f32
    %19 = vector.broadcast %cst_12 : f32 to vector<8x1xf32>
    %20 = arith.divf %19, %18 : vector<8x1xf32>
    %21 = vector.broadcast %20 : vector<8x1xf32> to vector<8x5xf32>
    %22 = arith.mulf %16, %21 : vector<8x5xf32>
    %c0_13 = arith.constant 0 : index
    %c0_14 = arith.constant 0 : index
    %23 = vector.load %arg2[%c0_13, %c0_14] : memref<8x5xf32, #tpu.memory_space<vmem>>, vector<8x5xf32>
    %cst_15 = arith.constant 9.99999968E-21 : f32
    %24 = vector.broadcast %cst_15 : f32 to vector<8x5xf32>
    %25 = arith.addf %23, %24 : vector<8x5xf32>
    %26 = math.log %25 : vector<8x5xf32>
    %cst_16 = arith.constant 0.000000e+00 : f32
    %27 = vector.broadcast %cst_16 : f32 to vector<8x5xf32>
    %28 = arith.subf %27, %26 : vector<8x5xf32>
    %cst_17 = arith.constant 9.99999968E-21 : f32
    %29 = vector.broadcast %cst_17 : f32 to vector<8x5xf32>
    %30 = arith.addf %28, %29 : vector<8x5xf32>
    %31 = math.log %30 : vector<8x5xf32>
    %cst_18 = arith.constant 0.000000e+00 : f32
    %32 = vector.broadcast %cst_18 : f32 to vector<8x5xf32>
    %33 = arith.subf %32, %31 : vector<8x5xf32>
    %34 = arith.addf %11, %33 : vector<8x5xf32>
    %cst_19 = arith.constant 1.000000e+00 : f32
    %35 = vector.broadcast %cst_19 : f32 to vector<8x5xf32>
    %36 = arith.mulf %34, %35 : vector<8x5xf32>
    %cst_20 = arith.constant dense<0xFF800000> : vector<8xf32>
    %37 = vector.multi_reduction <maximumf>, %36, %cst_20 [1] : vector<8x5xf32> to vector<8xf32>
    %38 = vector.shape_cast %37 : vector<8xf32> to vector<8x1xf32>
    %39 = vector.broadcast %38 : vector<8x1xf32> to vector<8x5xf32>
    %40 = arith.subf %36, %39 : vector<8x5xf32>
    %41 = math.exp %40 : vector<8x5xf32>
    %cst_21 = arith.constant dense<0.000000e+00> : vector<8xf32>
    %42 = vector.multi_reduction <add>, %41, %cst_21 [1] : vector<8x5xf32> to vector<8xf32>
    %43 = vector.shape_cast %42 : vector<8xf32> to vector<8x1xf32>
    %cst_22 = arith.constant 1.000000e+00 : f32
    %44 = vector.broadcast %cst_22 : f32 to vector<8x1xf32>
    %45 = arith.divf %44, %43 : vector<8x1xf32>
    %46 = vector.broadcast %45 : vector<8x1xf32> to vector<8x5xf32>
    %47 = arith.mulf %41, %46 : vector<8x5xf32>
    %c0_23 = arith.constant 0 : index
    %c0_24 = arith.constant 0 : index
    %48 = vector.load %arg9[%c0_23, %c0_24] : memref<5x32xf32, #tpu.memory_space<vmem>>, vector<5x32xf32>
    %cst_25 = arith.constant dense<0.000000e+00> : vector<8x32xf32>
    %49 = tpu.matmul %47, %48, %cst_25 {dimension_numbers = #tpu.dot_dimension_numbers<[1], [0], [0], [1], [0, 0, 1, 1], [], []>} : vector<8x5xf32>, vector<5x32xf32>, vector<8x32xf32> -> vector<8x32xf32>
    %50 = vector.shape_cast %0 : vector<8x32xf32> to vector<8x32x1xf32>
    %c0_26 = arith.constant 0 : index
    %c0_27 = arith.constant 0 : index
    %51 = vector.load %arg8[%c0_26, %c0_27] : memref<1x32xf32, #tpu.memory_space<vmem>>, vector<1x32xf32>
    %52 = vector.shape_cast %51 : vector<1x32xf32> to vector<1x1x32xf32>
    %53 = vector.broadcast %50 : vector<8x32x1xf32> to vector<8x32x32xf32>
    %54 = vector.broadcast %52 : vector<1x1x32xf32> to vector<8x32x32xf32>
    %55 = arith.mulf %53, %54 : vector<8x32x32xf32>
    %56 = vector.shape_cast %49 : vector<8x32xf32> to vector<8x1x32xf32>
    %57 = vector.broadcast %56 : vector<8x1x32xf32> to vector<8x32x32xf32>
    %58 = arith.addf %55, %57 : vector<8x32x32xf32>
    %c0_28 = arith.constant 0 : index
    %c0_29 = arith.constant 0 : index
    %59 = vector.load %arg10[%c0_28, %c0_29] : memref<1x32xf32, #tpu.memory_space<vmem>>, vector<1x32xf32>
    %60 = vector.shape_cast %59 : vector<1x32xf32> to vector<1x1x32xf32>
    %61 = vector.broadcast %60 : vector<1x1x32xf32> to vector<8x32x32xf32>
    %62 = arith.addf %58, %61 : vector<8x32x32xf32>
    %63 = math.tanh %62 : vector<8x32x32xf32>
    %64 = vector.shape_cast %63 : vector<8x32x32xf32> to vector<256x32xf32>
    %c0_30 = arith.constant 0 : index
    %c0_31 = arith.constant 0 : index
    %65 = vector.load %arg11[%c0_30, %c0_31] : memref<32x32xf32, #tpu.memory_space<vmem>>, vector<32x32xf32>
    %cst_32 = arith.constant dense<0.000000e+00> : vector<256x32xf32>
    %66 = tpu.matmul %64, %65, %cst_32 {dimension_numbers = #tpu.dot_dimension_numbers<[1], [0], [0], [1], [0, 0, 1, 1], [], []>} : vector<256x32xf32>, vector<32x32xf32>, vector<256x32xf32> -> vector<256x32xf32>
    %c0_33 = arith.constant 0 : index
    %c0_34 = arith.constant 0 : index
    %67 = vector.load %arg12[%c0_33, %c0_34] : memref<1x32xf32, #tpu.memory_space<vmem>>, vector<1x32xf32>
    %68 = vector.broadcast %67 : vector<1x32xf32> to vector<256x32xf32>
    %69 = arith.addf %66, %68 : vector<256x32xf32>
    %70 = math.tanh %69 : vector<256x32xf32>
    %71 = vector.shape_cast %70 : vector<256x32xf32> to vector<8x32x32xf32>
    %c0_35 = arith.constant 0 : index
    %c0_36 = arith.constant 0 : index
    %72 = vector.load %arg13[%c0_35, %c0_36] : memref<1x32xf32, #tpu.memory_space<vmem>>, vector<1x32xf32>
    %73 = vector.shape_cast %72 : vector<1x32xf32> to vector<1x1x32xf32>
    %74 = vector.broadcast %73 : vector<1x1x32xf32> to vector<8x32x32xf32>
    %75 = arith.mulf %71, %74 : vector<8x32x32xf32>
    %cst_37 = arith.constant dense<0.000000e+00> : vector<8x32xf32>
    %76 = vector.multi_reduction <add>, %75, %cst_37 [2] : vector<8x32x32xf32> to vector<8x32xf32>
    %c0_38 = arith.constant 0 : index
    %c0_39 = arith.constant 0 : index
    %77 = memref.load %arg28[%c0_38, %c0_39] : memref<1x1xf32, #tpu.memory_space<smem>>
    %78 = vector.broadcast %77 : f32 to vector<8x32xf32>
    %79 = arith.addf %76, %78 : vector<8x32xf32>
    %c0_40 = arith.constant 0 : index
    %c0_41 = arith.constant 0 : index
    %80 = vector.load %arg14[%c0_40, %c0_41] : memref<1x32xf32, #tpu.memory_space<vmem>>, vector<1x32xf32>
    %81 = vector.shape_cast %80 : vector<1x32xf32> to vector<1x1x32xf32>
    %82 = vector.broadcast %81 : vector<1x1x32xf32> to vector<8x32x32xf32>
    %83 = arith.mulf %71, %82 : vector<8x32x32xf32>
    %cst_42 = arith.constant dense<0.000000e+00> : vector<8x32xf32>
    %84 = vector.multi_reduction <add>, %83, %cst_42 [2] : vector<8x32x32xf32> to vector<8x32xf32>
    %c0_43 = arith.constant 0 : index
    %c0_44 = arith.constant 0 : index
    %85 = memref.load %arg29[%c0_43, %c0_44] : memref<1x1xf32, #tpu.memory_space<smem>>
    %86 = vector.broadcast %85 : f32 to vector<8x32xf32>
    %87 = arith.addf %84, %86 : vector<8x32xf32>
    %88 = math.exp %87 : vector<8x32xf32>
    %cst_45 = arith.constant 1.000000e-10 : f32
    %89 = vector.broadcast %cst_45 : f32 to vector<8x32xf32>
    %90 = arith.addf %88, %89 : vector<8x32xf32>
    %91 = math.sqrt %90 : vector<8x32xf32>
    %c0_46 = arith.constant 0 : index
    %c0_47 = arith.constant 0 : index
    %92 = vector.load %arg3[%c0_46, %c0_47] : memref<8x32xf32, #tpu.memory_space<vmem>>, vector<8x32xf32>
    %93 = arith.mulf %92, %91 : vector<8x32xf32>
    %94 = arith.addf %79, %93 : vector<8x32xf32>
    %c0_48 = arith.constant 0 : index
    %c0_49 = arith.constant 0 : index
    %95 = vector.load %arg15[%c0_48, %c0_49] : memref<5x32xf32, #tpu.memory_space<vmem>>, vector<5x32xf32>
    %cst_50 = arith.constant dense<0.000000e+00> : vector<8x32xf32>
    %96 = tpu.matmul %47, %95, %cst_50 {dimension_numbers = #tpu.dot_dimension_numbers<[1], [0], [0], [1], [0, 0, 1, 1], [], []>} : vector<8x5xf32>, vector<5x32xf32>, vector<8x32xf32> -> vector<8x32xf32>
    %c0_51 = arith.constant 0 : index
    %c0_52 = arith.constant 0 : index
    %97 = vector.load %arg16[%c0_51, %c0_52] : memref<1x32xf32, #tpu.memory_space<vmem>>, vector<1x32xf32>
    %98 = vector.broadcast %97 : vector<1x32xf32> to vector<8x32xf32>
    %99 = arith.addf %96, %98 : vector<8x32xf32>
    %100 = math.tanh %99 : vector<8x32xf32>
    %c0_53 = arith.constant 0 : index
    %c0_54 = arith.constant 0 : index
    %101 = vector.load %arg17[%c0_53, %c0_54] : memref<32x32xf32, #tpu.memory_space<vmem>>, vector<32x32xf32>
    %cst_55 = arith.constant dense<0.000000e+00> : vector<8x32xf32>
    %102 = tpu.matmul %100, %101, %cst_55 {dimension_numbers = #tpu.dot_dimension_numbers<[1], [0], [0], [1], [0, 0, 1, 1], [], []>} : vector<8x32xf32>, vector<32x32xf32>, vector<8x32xf32> -> vector<8x32xf32>
    %c0_56 = arith.constant 0 : index
    %c0_57 = arith.constant 0 : index
    %103 = vector.load %arg18[%c0_56, %c0_57] : memref<1x32xf32, #tpu.memory_space<vmem>>, vector<1x32xf32>
    %104 = vector.broadcast %103 : vector<1x32xf32> to vector<8x32xf32>
    %105 = arith.addf %102, %104 : vector<8x32xf32>
    %c0_58 = arith.constant 0 : index
    %c0_59 = arith.constant 0 : index
    %106 = vector.load %arg19[%c0_58, %c0_59] : memref<5x32xf32, #tpu.memory_space<vmem>>, vector<5x32xf32>
    %cst_60 = arith.constant dense<0.000000e+00> : vector<8x32xf32>
    %107 = tpu.matmul %47, %106, %cst_60 {dimension_numbers = #tpu.dot_dimension_numbers<[1], [0], [0], [1], [0, 0, 1, 1], [], []>} : vector<8x5xf32>, vector<5x32xf32>, vector<8x32xf32> -> vector<8x32xf32>
    %c0_61 = arith.constant 0 : index
    %c0_62 = arith.constant 0 : index
    %108 = vector.load %arg20[%c0_61, %c0_62] : memref<1x32xf32, #tpu.memory_space<vmem>>, vector<1x32xf32>
    %109 = vector.broadcast %108 : vector<1x32xf32> to vector<8x32xf32>
    %110 = arith.addf %107, %109 : vector<8x32xf32>
    %111 = math.tanh %110 : vector<8x32xf32>
    %c0_63 = arith.constant 0 : index
    %c0_64 = arith.constant 0 : index
    %112 = vector.load %arg21[%c0_63, %c0_64] : memref<32x32xf32, #tpu.memory_space<vmem>>, vector<32x32xf32>
    %cst_65 = arith.constant dense<0.000000e+00> : vector<8x32xf32>
    %113 = tpu.matmul %111, %112, %cst_65 {dimension_numbers = #tpu.dot_dimension_numbers<[1], [0], [0], [1], [0, 0, 1, 1], [], []>} : vector<8x32xf32>, vector<32x32xf32>, vector<8x32xf32> -> vector<8x32xf32>
    %c0_66 = arith.constant 0 : index
    %c0_67 = arith.constant 0 : index
    %114 = vector.load %arg22[%c0_66, %c0_67] : memref<1x32xf32, #tpu.memory_space<vmem>>, vector<1x32xf32>
    %115 = vector.broadcast %114 : vector<1x32xf32> to vector<8x32xf32>
    %116 = arith.addf %113, %115 : vector<8x32xf32>
    %117 = math.exp %116 : vector<8x32xf32>
    %118 = vector.shape_cast %94 : vector<8x32xf32> to vector<8x32x1xf32>
    %c0_68 = arith.constant 0 : index
    %c0_69 = arith.constant 0 : index
    %119 = vector.load %arg23[%c0_68, %c0_69] : memref<1x32xf32, #tpu.memory_space<vmem>>, vector<1x32xf32>
    %120 = vector.shape_cast %119 : vector<1x32xf32> to vector<1x1x32xf32>
    %121 = vector.broadcast %118 : vector<8x32x1xf32> to vector<8x32x32xf32>
    %122 = vector.broadcast %120 : vector<1x1x32xf32> to vector<8x32x32xf32>
    %123 = arith.mulf %121, %122 : vector<8x32x32xf32>
    %c0_70 = arith.constant 0 : index
    %c0_71 = arith.constant 0 : index
    %124 = vector.load %arg24[%c0_70, %c0_71] : memref<1x32xf32, #tpu.memory_space<vmem>>, vector<1x32xf32>
    %125 = vector.shape_cast %124 : vector<1x32xf32> to vector<1x1x32xf32>
    %126 = vector.broadcast %125 : vector<1x1x32xf32> to vector<8x32x32xf32>
    %127 = arith.addf %123, %126 : vector<8x32x32xf32>
    %128 = math.tanh %127 : vector<8x32x32xf32>
    %129 = vector.shape_cast %128 : vector<8x32x32xf32> to vector<256x32xf32>
    %c0_72 = arith.constant 0 : index
    %c0_73 = arith.constant 0 : index
    %130 = vector.load %arg25[%c0_72, %c0_73] : memref<32x32xf32, #tpu.memory_space<vmem>>, vector<32x32xf32>
    %cst_74 = arith.constant dense<0.000000e+00> : vector<256x32xf32>
    %131 = tpu.matmul %129, %130, %cst_74 {dimension_numbers = #tpu.dot_dimension_numbers<[1], [0], [0], [1], [0, 0, 1, 1], [], []>} : vector<256x32xf32>, vector<32x32xf32>, vector<256x32xf32> -> vector<256x32xf32>
    %c0_75 = arith.constant 0 : index
    %c0_76 = arith.constant 0 : index
    %132 = vector.load %arg26[%c0_75, %c0_76] : memref<1x32xf32, #tpu.memory_space<vmem>>, vector<1x32xf32>
    %133 = vector.broadcast %132 : vector<1x32xf32> to vector<256x32xf32>
    %134 = arith.addf %131, %133 : vector<256x32xf32>
    %135 = math.tanh %134 : vector<256x32xf32>
    %136 = vector.shape_cast %135 : vector<256x32xf32> to vector<8x32x32xf32>
    %c0_77 = arith.constant 0 : index
    %c0_78 = arith.constant 0 : index
    %137 = vector.load %arg27[%c0_77, %c0_78] : memref<1x32xf32, #tpu.memory_space<vmem>>, vector<1x32xf32>
    %138 = vector.shape_cast %137 : vector<1x32xf32> to vector<1x1x32xf32>
    %139 = vector.broadcast %138 : vector<1x1x32xf32> to vector<8x32x32xf32>
    %140 = arith.mulf %136, %139 : vector<8x32x32xf32>
    %cst_79 = arith.constant dense<0.000000e+00> : vector<8x32xf32>
    %141 = vector.multi_reduction <add>, %140, %cst_79 [2] : vector<8x32x32xf32> to vector<8x32xf32>
    %c0_80 = arith.constant 0 : index
    %c0_81 = arith.constant 0 : index
    %142 = memref.load %arg30[%c0_80, %c0_81] : memref<1x1xf32, #tpu.memory_space<smem>>
    %143 = vector.broadcast %142 : f32 to vector<8x32xf32>
    %144 = arith.addf %141, %143 : vector<8x32xf32>
    %145 = vector.shape_cast %79 : vector<8x32xf32> to vector<8x1x32xf32>
    %c0_82 = arith.constant 0 : index
    %c0_83 = arith.constant 0 : index
    %c0_84 = arith.constant 0 : index
    %146 = vector.load %arg31[%c0_82, %c0_83, %c0_84] : memref<8x3x32xf32, #tpu.memory_space<vmem>>, vector<8x1x32xf32>
    tpu.vector_store %arg31[%c0_82, %c0_83, %c0_84], %145 {strides = array<i32>} : memref<8x3x32xf32, #tpu.memory_space<vmem>>, vector<8x1x32xf32>,
    %147 = vector.shape_cast %88 : vector<8x32xf32> to vector<8x1x32xf32>
    %c0_85 = arith.constant 0 : index
    %c1 = arith.constant 1 : index
    %c0_86 = arith.constant 0 : index
    %148 = vector.load %arg31[%c0_85, %c1, %c0_86] : memref<8x3x32xf32, #tpu.memory_space<vmem>>, vector<8x1x32xf32>
    tpu.vector_store %arg31[%c0_85, %c1, %c0_86], %147 {strides = array<i32>} : memref<8x3x32xf32, #tpu.memory_space<vmem>>, vector<8x1x32xf32>,
    %149 = vector.shape_cast %94 : vector<8x32xf32> to vector<8x1x32xf32>
    %c0_87 = arith.constant 0 : index
    %c2 = arith.constant 2 : index
    %c0_88 = arith.constant 0 : index
    %150 = vector.load %arg31[%c0_87, %c2, %c0_88] : memref<8x3x32xf32, #tpu.memory_space<vmem>>, vector<8x1x32xf32>
    tpu.vector_store %arg31[%c0_87, %c2, %c0_88], %149 {strides = array<i32>} : memref<8x3x32xf32, #tpu.memory_space<vmem>>, vector<8x1x32xf32>,
    %151 = vector.shape_cast %11 : vector<8x5xf32> to vector<8x1x5xf32>
    %c0_89 = arith.constant 0 : index
    %c0_90 = arith.constant 0 : index
    %c0_91 = arith.constant 0 : index
    %152 = vector.load %arg32[%c0_89, %c0_90, %c0_91] : memref<8x3x5xf32, #tpu.memory_space<vmem>>, vector<8x1x5xf32>
    tpu.vector_store %arg32[%c0_89, %c0_90, %c0_91], %151 {strides = array<i32>} : memref<8x3x5xf32, #tpu.memory_space<vmem>>, vector<8x1x5xf32>,
    %153 = vector.shape_cast %22 : vector<8x5xf32> to vector<8x1x5xf32>
    %c0_92 = arith.constant 0 : index
    %c1_93 = arith.constant 1 : index
    %c0_94 = arith.constant 0 : index
    %154 = vector.load %arg32[%c0_92, %c1_93, %c0_94] : memref<8x3x5xf32, #tpu.memory_space<vmem>>, vector<8x1x5xf32>
    tpu.vector_store %arg32[%c0_92, %c1_93, %c0_94], %153 {strides = array<i32>} : memref<8x3x5xf32, #tpu.memory_space<vmem>>, vector<8x1x5xf32>,
    %155 = vector.shape_cast %47 : vector<8x5xf32> to vector<8x1x5xf32>
    %c0_95 = arith.constant 0 : index
    %c2_96 = arith.constant 2 : index
    %c0_97 = arith.constant 0 : index
    %156 = vector.load %arg32[%c0_95, %c2_96, %c0_97] : memref<8x3x5xf32, #tpu.memory_space<vmem>>, vector<8x1x5xf32>
    tpu.vector_store %arg32[%c0_95, %c2_96, %c0_97], %155 {strides = array<i32>} : memref<8x3x5xf32, #tpu.memory_space<vmem>>, vector<8x1x5xf32>,
    %157 = vector.shape_cast %105 : vector<8x32xf32> to vector<8x1x32xf32>
    %c0_98 = arith.constant 0 : index
    %c0_99 = arith.constant 0 : index
    %c0_100 = arith.constant 0 : index
    %158 = vector.load %arg33[%c0_98, %c0_99, %c0_100] : memref<8x3x32xf32, #tpu.memory_space<vmem>>, vector<8x1x32xf32>
    tpu.vector_store %arg33[%c0_98, %c0_99, %c0_100], %157 {strides = array<i32>} : memref<8x3x32xf32, #tpu.memory_space<vmem>>, vector<8x1x32xf32>,
    %159 = vector.shape_cast %117 : vector<8x32xf32> to vector<8x1x32xf32>
    %c0_101 = arith.constant 0 : index
    %c1_102 = arith.constant 1 : index
    %c0_103 = arith.constant 0 : index
    %160 = vector.load %arg33[%c0_101, %c1_102, %c0_103] : memref<8x3x32xf32, #tpu.memory_space<vmem>>, vector<8x1x32xf32>
    tpu.vector_store %arg33[%c0_101, %c1_102, %c0_103], %159 {strides = array<i32>} : memref<8x3x32xf32, #tpu.memory_space<vmem>>, vector<8x1x32xf32>,
    %161 = vector.shape_cast %144 : vector<8x32xf32> to vector<8x1x32xf32>
    %c0_104 = arith.constant 0 : index
    %c2_105 = arith.constant 2 : index
    %c0_106 = arith.constant 0 : index
    %162 = vector.load %arg33[%c0_104, %c2_105, %c0_106] : memref<8x3x32xf32, #tpu.memory_space<vmem>>, vector<8x1x32xf32>
    tpu.vector_store %arg33[%c0_104, %c2_105, %c0_106], %161 {strides = array<i32>} : memref<8x3x32xf32, #tpu.memory_space<vmem>>, vector<8x1x32xf32>,
    return
  }
  func.func @transform_0(%arg0: i32) -> (i32, i32) {
    %c0_i32 = arith.constant 0 : i32
    %c0_i32_0 = arith.constant 0 : i32
    return %arg0, %c0_i32 : i32, i32
  }
  func.func @transform_1(%arg0: i32) -> (i32, i32) {
    %c0_i32 = arith.constant 0 : i32
    %c0_i32_0 = arith.constant 0 : i32
    return %arg0, %c0_i32 : i32, i32
  }
  func.func @transform_2(%arg0: i32) -> (i32, i32) {
    %c0_i32 = arith.constant 0 : i32
    %c0_i32_0 = arith.constant 0 : i32
    return %arg0, %c0_i32 : i32, i32
  }
  func.func @transform_3(%arg0: i32) -> (i32, i32) {
    %c0_i32 = arith.constant 0 : i32
    %c0_i32_0 = arith.constant 0 : i32
    %c0_i32_1 = arith.constant 0 : i32
    return %c0_i32, %c0_i32_0 : i32, i32
  }
  func.func @transform_4(%arg0: i32) -> (i32, i32) {
    %c0_i32 = arith.constant 0 : i32
    %c0_i32_0 = arith.constant 0 : i32
    %c0_i32_1 = arith.constant 0 : i32
    return %c0_i32, %c0_i32_0 : i32, i32
  }
  func.func @transform_5(%arg0: i32) -> (i32, i32) {
    %c0_i32 = arith.constant 0 : i32
    %c0_i32_0 = arith.constant 0 : i32
    %c0_i32_1 = arith.constant 0 : i32
    return %c0_i32, %c0_i32_0 : i32, i32
  }
  func.func @transform_6(%arg0: i32) -> (i32, i32) {
    %c0_i32 = arith.constant 0 : i32
    %c0_i32_0 = arith.constant 0 : i32
    %c0_i32_1 = arith.constant 0 : i32
    return %c0_i32, %c0_i32_0 : i32, i32
  }
  func.func @transform_7(%arg0: i32) -> (i32, i32) {
    %c0_i32 = arith.constant 0 : i32
    %c0_i32_0 = arith.constant 0 : i32
    %c0_i32_1 = arith.constant 0 : i32
    return %c0_i32, %c0_i32_0 : i32, i32
  }
  func.func @transform_8(%arg0: i32) -> (i32, i32) {
    %c0_i32 = arith.constant 0 : i32
    %c0_i32_0 = arith.constant 0 : i32
    %c0_i32_1 = arith.constant 0 : i32
    return %c0_i32, %c0_i32_0 : i32, i32
  }
  func.func @transform_9(%arg0: i32) -> (i32, i32) {
    %c0_i32 = arith.constant 0 : i32
    %c0_i32_0 = arith.constant 0 : i32
    %c0_i32_1 = arith.constant 0 : i32
    return %c0_i32, %c0_i32_0 : i32, i32
  }
  func.func @transform_10(%arg0: i32) -> (i32, i32) {
    %c0_i32 = arith.constant 0 : i32
    %c0_i32_0 = arith.constant 0 : i32
    %c0_i32_1 = arith.constant 0 : i32
    return %c0_i32, %c0_i32_0 : i32, i32
  }
  func.func @transform_11(%arg0: i32) -> (i32, i32) {
    %c0_i32 = arith.constant 0 : i32
    %c0_i32_0 = arith.constant 0 : i32
    %c0_i32_1 = arith.constant 0 : i32
    return %c0_i32, %c0_i32_0 : i32, i32
  }
  func.func @transform_12(%arg0: i32) -> (i32, i32) {
    %c0_i32 = arith.constant 0 : i32
    %c0_i32_0 = arith.constant 0 : i32
    %c0_i32_1 = arith.constant 0 : i32
    return %c0_i32, %c0_i32_0 : i32, i32
  }
  func.func @transform_13(%arg0: i32) -> (i32, i32) {
    %c0_i32 = arith.constant 0 : i32
    %c0_i32_0 = arith.constant 0 : i32
    %c0_i32_1 = arith.constant 0 : i32
    return %c0_i32, %c0_i32_0 : i32, i32
  }
  func.func @transform_14(%arg0: i32) -> (i32, i32) {
    %c0_i32 = arith.constant 0 : i32
    %c0_i32_0 = arith.constant 0 : i32
    %c0_i32_1 = arith.constant 0 : i32
    return %c0_i32, %c0_i32_0 : i32, i32
  }
  func.func @transform_15(%arg0: i32) -> (i32, i32) {
    %c0_i32 = arith.constant 0 : i32
    %c0_i32_0 = arith.constant 0 : i32
    %c0_i32_1 = arith.constant 0 : i32
    return %c0_i32, %c0_i32_0 : i32, i32
  }
  func.func @transform_16(%arg0: i32) -> (i32, i32) {
    %c0_i32 = arith.constant 0 : i32
    %c0_i32_0 = arith.constant 0 : i32
    %c0_i32_1 = arith.constant 0 : i32
    return %c0_i32, %c0_i32_0 : i32, i32
  }
  func.func @transform_17(%arg0: i32) -> (i32, i32) {
    %c0_i32 = arith.constant 0 : i32
    %c0_i32_0 = arith.constant 0 : i32
    %c0_i32_1 = arith.constant 0 : i32
    return %c0_i32, %c0_i32_0 : i32, i32
  }
  func.func @transform_18(%arg0: i32) -> (i32, i32) {
    %c0_i32 = arith.constant 0 : i32
    %c0_i32_0 = arith.constant 0 : i32
    %c0_i32_1 = arith.constant 0 : i32
    return %c0_i32, %c0_i32_0 : i32, i32
  }
  func.func @transform_19(%arg0: i32) -> (i32, i32) {
    %c0_i32 = arith.constant 0 : i32
    %c0_i32_0 = arith.constant 0 : i32
    %c0_i32_1 = arith.constant 0 : i32
    return %c0_i32, %c0_i32_0 : i32, i32
  }
  func.func @transform_20(%arg0: i32) -> (i32, i32) {
    %c0_i32 = arith.constant 0 : i32
    %c0_i32_0 = arith.constant 0 : i32
    %c0_i32_1 = arith.constant 0 : i32
    return %c0_i32, %c0_i32_0 : i32, i32
  }
  func.func @transform_21(%arg0: i32) -> (i32, i32) {
    %c0_i32 = arith.constant 0 : i32
    %c0_i32_0 = arith.constant 0 : i32
    %c0_i32_1 = arith.constant 0 : i32
    return %c0_i32, %c0_i32_0 : i32, i32
  }
  func.func @transform_22(%arg0: i32) -> (i32, i32) {
    %c0_i32 = arith.constant 0 : i32
    %c0_i32_0 = arith.constant 0 : i32
    %c0_i32_1 = arith.constant 0 : i32
    return %c0_i32, %c0_i32_0 : i32, i32
  }
  func.func @transform_23(%arg0: i32) -> (i32, i32) {
    %c0_i32 = arith.constant 0 : i32
    %c0_i32_0 = arith.constant 0 : i32
    %c0_i32_1 = arith.constant 0 : i32
    return %c0_i32, %c0_i32_0 : i32, i32
  }
  func.func @transform_24(%arg0: i32) -> (i32, i32) {
    %c0_i32 = arith.constant 0 : i32
    %c0_i32_0 = arith.constant 0 : i32
    %c0_i32_1 = arith.constant 0 : i32
    return %c0_i32, %c0_i32_0 : i32, i32
  }
  func.func @transform_25(%arg0: i32) -> (i32, i32) {
    %c0_i32 = arith.constant 0 : i32
    %c0_i32_0 = arith.constant 0 : i32
    %c0_i32_1 = arith.constant 0 : i32
    return %c0_i32, %c0_i32_0 : i32, i32
  }
  func.func @transform_26(%arg0: i32) -> (i32, i32) {
    %c0_i32 = arith.constant 0 : i32
    %c0_i32_0 = arith.constant 0 : i32
    %c0_i32_1 = arith.constant 0 : i32
    return %c0_i32, %c0_i32_0 : i32, i32
  }
  func.func @transform_27(%arg0: i32) -> (i32, i32) {
    %c0_i32 = arith.constant 0 : i32
    %c0_i32_0 = arith.constant 0 : i32
    %c0_i32_1 = arith.constant 0 : i32
    return %c0_i32, %c0_i32_0 : i32, i32
  }
  func.func @transform_28(%arg0: i32) -> (i32, i32) {
    %c0_i32 = arith.constant 0 : i32
    %c0_i32_0 = arith.constant 0 : i32
    %c0_i32_1 = arith.constant 0 : i32
    return %c0_i32, %c0_i32_0 : i32, i32
  }
  func.func @transform_29(%arg0: i32) -> (i32, i32) {
    %c0_i32 = arith.constant 0 : i32
    %c0_i32_0 = arith.constant 0 : i32
    %c0_i32_1 = arith.constant 0 : i32
    return %c0_i32, %c0_i32_0 : i32, i32
  }
  func.func @transform_30(%arg0: i32) -> (i32, i32, i32) {
    %c0_i32 = arith.constant 0 : i32
    %c0_i32_0 = arith.constant 0 : i32
    %c0_i32_1 = arith.constant 0 : i32
    return %arg0, %c0_i32, %c0_i32_0 : i32, i32, i32
  }
  func.func @transform_31(%arg0: i32) -> (i32, i32, i32) {
    %c0_i32 = arith.constant 0 : i32
    %c0_i32_0 = arith.constant 0 : i32
    %c0_i32_1 = arith.constant 0 : i32
    return %arg0, %c0_i32, %c0_i32_0 : i32, i32, i32
  }
  func.func @transform_32(%arg0: i32) -> (i32, i32, i32) {
    %c0_i32 = arith.constant 0 : i32
    %c0_i32_0 = arith.constant 0 : i32
    %c0_i32_1 = arith.constant 0 : i32
    return %arg0, %c0_i32, %c0_i32_0 : i32, i32, i32
  }
}

</mosaic_0001>

<bundles_post_ra>
// kernel: tpu_custom_call.1
= control target key start
LH: loop header
LB: loop body
LE: loop exit
PB: predicated region body
PF: predicated region fallthrough
CT: control target
= control target key end

     0   :  { %s7553_s6 = smov 1   ;;  %s7554_s10 = smov 2   ;;  %s10189_s0 = inlined_call_operand.smem [shape: u32[33], index: -1, kind: input, shape index: {}] }
   0x1   :  { %s7614_s5 = sld [smem:[%s10189_s0]]   ;;  %s7555_s14 = smov 3  }
   0x2   :  { %s7619_s9 = sld [smem:[%s10189_s0 + %s7553_s6]]   ;;  %s7556_s18 = smov 4  }
   0x3   :  { %s7624_s13 = sld [smem:[%s10189_s0 + %s7554_s10]]   ;;  %s7557_s22 = smov 5  }
   0x4   :  { %s7629_s17 = sld [smem:[%s10189_s0 + %s7555_s14]]   ;;  %s7558_s26 = smov 6  }
   0x5   :  { %s7634_s21 = sld [smem:[%s10189_s0 + %s7556_s18]]   ;;  %s7559_s30 = smov 7  }
   0x6   :  { %s7639_s25 = sld [smem:[%s10189_s0 + %s7557_s22]]   ;;  %s7560_s4 = smov 8  }
   0x7   :  { %10232 = sst [smem:[#allocation40_spill]] %s7614_s5  ;;  %s7561_s10 = smov 9  }
   0x8   :  { %10233 = sst [smem:[#allocation41_spill]] %s7619_s9  ;;  %s7562_s15 = smov 10  }
   0x9   :  { %10234 = sst [smem:[#allocation42_spill]] %s7624_s13  ;;  %s7563_s20 = smov 11  }
   0xa   :  { %10235 = sst [smem:[#allocation43_spill]] %s7629_s17  ;;  %s7565_s1 = smov 13  }
   0xb   :  { %s7644_s29 = sld [smem:[%s10189_s0 + %s7558_s26]]   ;;  %s7564_s26 = smov 12  }
   0xc   :  { %10236 = sst [smem:[#allocation44_spill]] %s7639_s25  ;;  %s7566_s7 = smov 14  }
   0xd   :  { %s7649_s3 = sld [smem:[%s10189_s0 + %s7559_s30]]   ;;  %s7568_s22 = smov 16  }
   0xe   :  { %s7654_s8 = sld [smem:[%s10189_s0 + %s7560_s4]]   ;;  %s7569_s28 = smov 17  }
   0xf   :  { %s7659_s14 = sld [smem:[%s10189_s0 + %s7561_s10]]   ;;  %s7580_s23 = smov 28  }
  0x10   :  { %s7664_s19 = sld [smem:[%s10189_s0 + %s7562_s15]]   ;;  %s7567_s15 = smov 15  }
  0x11   :  { %s7669_s24 = sld [smem:[%s10189_s0 + %s7563_s20]]   ;;  %s7583_s11 = smov 31  }
  0x12   :  { %s7674_s30 = sld [smem:[%s10189_s0 + %s7564_s26]]   ;;  %s7584_s18 = smov 32  }
  0x13   :  { %10237 = sst [smem:[#allocation45_spill]] %s7649_s3 }
  0x14   :  { %10238 = sst [smem:[#allocation46_spill]] %s7654_s8 }
  0x15   :  { %10239 = sst [smem:[#allocation47_spill]] %s7659_s14 }
  0x16   :  { %10240 = sst [smem:[#allocation48_spill]] %s7664_s19 }
  0x17   :  { %s7679_s6 = sld [smem:[%s10189_s0 + %s7565_s1]]  }
  0x18   :  { %s7684_s12 = sld [smem:[%s10189_s0 + %s7566_s7]]   ;;  %s7570_s7 = smov 18  }
  0x19   :  { %s7689_s20 = sld [smem:[%s10189_s0 + %s7567_s15]]   ;;  %s7571_s15 = smov 19  }
  0x1a   :  { %s7694_s27 = sld [smem:[%s10189_s0 + %s7568_s22]]   ;;  %s7572_s22 = smov 20  }
  0x1b   :  { %s7699_s4 = sld [smem:[%s10189_s0 + %s7569_s28]]   ;;  %s7573_s28 = smov 21  }
  0x1c   :  { %s7704_s19 = sld [smem:[%s10189_s0 + %s7570_s7]]   ;;  %s7574_s7 = smov 22  }
  0x1d   :  { %10241 = sst [smem:[#allocation49_spill]] %s7679_s6 }
  0x1e   :  { %10242 = sst [smem:[#allocation50_spill]] %s7684_s12 }
  0x1f   :  { %10243 = sst [smem:[#allocation51_spill]] %s7689_s20 }
  0x20   :  { %10244 = sst [smem:[#allocation52_spill]] %s7694_s27 }
  0x21   :  { %10245 = sst [smem:[#allocation53_spill]] %s7699_s4 }
  0x22   :  { %s7709_s20 = sld [smem:[%s10189_s0 + %s7571_s15]]   ;;  %s7575_s15 = smov 23  }
  0x23   :  { %s7714_s27 = sld [smem:[%s10189_s0 + %s7572_s22]]   ;;  %s7576_s22 = smov 24  }
  0x24   :  { %s7719_s4 = sld [smem:[%s10189_s0 + %s7573_s28]]   ;;  %s7577_s28 = smov 25  }
  0x25   :  { %s7724_s9 = sld [smem:[%s10189_s0 + %s7574_s7]]   ;;  %s7578_s7 = smov 26  }
  0x26   :  { %s7729_s25 = sld [smem:[%s10189_s0 + %s7575_s15]]   ;;  %s7579_s15 = smov 27  }
  0x27   :  { %s7739_s17 = sld [smem:[%s10189_s0 + %s7577_s28]]  }
  0x28   :  { %s7744_s13 = sld [smem:[%s10189_s0 + %s7578_s7]]  }
  0x29   :  { %10246 = sst [smem:[#allocation54_spill]] %s7714_s27 }
  0x2a   :  { %10247 = sst [smem:[#allocation55_spill]] %s7719_s4 }
  0x2b   :  { %10248 = sst [smem:[#allocation56_spill]] %s7724_s9 }
  0x2c   :  { %10249 = sst [smem:[#allocation57_spill]] %s7729_s25  ;;  %s7581_s25 = smov 29  }
  0x2d   :  { %s7734_s27 = sld [smem:[%s10189_s0 + %s7576_s22]]  }
  0x2e   :  { %10251 = sst [smem:[#allocation59_spill]] %s7739_s17  ;;  %s7582_s17 = smov 30  }
  0x2f   :  { %10252 = sst [smem:[#allocation60_spill]] %s7744_s13 }
  0x30   :  { %s5945_s5 = sld [smem:[%s10189_s0 + %s7579_s15]]  }
  0x31   :  { %s5947_s2 = sld [smem:[%s10189_s0 + %s7581_s25]]  }
  0x32   :  { %s7758_s7 = sld [smem:[%s10189_s0 + %s7582_s17]]  }
  0x33   :  { %10250 = sst [smem:[#allocation58_spill]] %s7734_s27 }
  0x34   :  { %s5946_s27 = sld [smem:[%s10189_s0 + %s7580_s23]]  }
  0x35   :  { %s7763_s15 = sld [smem:[%s10189_s0 + %s7583_s11]]  }
  0x36   :  { %s7768_s26 = sld [smem:[%s10189_s0 + %s7584_s18]]  }
  0x37   :  { %71 = sst [smem:[#allocation2]] %s5945_s5 }
  0x38   :  { %73 = sst [smem:[#allocation4]] %s5947_s2 }
  0x3a   :  { %72 = sst [smem:[#allocation3]] %s5946_s27 }
  0x3b   :  { %74 = vsyncpa [#allocation6], 0 }
  0x3c   :  { %76 = vsyncpa [#allocation6 + $0x1], 0 }
  0x3d   :  { %77 = vsyncpa [#allocation8], 0 }
  0x3e   :  { %79 = vsyncpa [#allocation8 + $0x1], 0 }
  0x3f   :  { %80 = vsyncpa [#allocation11], 0 }
  0x40   :  { %81 = vsyncpa [#allocation14], 0 }
  0x41   :  { %82 = vsyncpa [#allocation17], 0 }
  0x42   :  { %83 = vsyncpa [#allocation20], 0 }
  0x43   :  { %84 = vsyncpa [#allocation23], 0 }
  0x44   :  { %85 = vsyncpa [#allocation26], 0 }
  0x45   :  { %86 = vsyncpa [#allocation29], 0  ;;  %s7770_s9 = smov 0   ;;  %s7772_s13 = smov 0  }
  0x46   :  { %s7774_s0 = smov 0   ;;  %s7776_s5 = smov 0  }
  0x47 LB: > { %s10253_s14 = sld [smem:[#allocation47_spill]]  ;;  %s10254_s12 = sld [smem:[#allocation50_spill]]  ;;  %s7543_s13 = sphi %s7772_s13, %s10334_s13   ;;  %s7539_s9 = sphi %s7770_s9, %s10333_s9   ;;  %s7551_s5 = sphi %s7776_s5, %s10336_s5   ;;  %s7547_s0 = sphi %s7774_s0, %s10335_s0  }
  0x48   : > { %s10255_s8 = sld [smem:[#allocation46_spill]]  ;;  %s10256_s6 = sld [smem:[#allocation49_spill]] }
  0x49   : > { %s10257_s4 = sld [smem:[#allocation55_spill]]  ;;  %s10258_s3 = sld [smem:[#allocation45_spill]] }
  0x4a   : > { %s7585_s17 = smov [#allocation9]   ;;  %s7791_s27 = sadd.s32 4294967295, %s7551_s5  }
  0x4b   : > { %s836_s25 = sshll.u32 %s7585_s17, 4  ;;  %p5953_p0 = scmp.ge.s32.totalorder %s7551_s5, 1  ;;  %s7796_s25 = int_to_ptr.vmem [resolvable:$true] %s836_s25 }
  0x4c   : > { %p10200_p1 = scmp.eq.s32.totalorder %s7791_s27, 0  ;;  %p820_p2 = scmp.lt.s32.totalorder %s7551_s5, 3 }
  0x4d   : > { %s7586_s28 = smov [#allocation10]   ;;  %s7587_s10 = smov [#allocation13]  }
  0x4e   : > { %p7798_p3 = pnand %p5953_p0, %p820_p2  ;;  %s850_s2 = sshll.u32 %s7586_s28, 4  ;;  %s7804_s2 = int_to_ptr.vmem [resolvable:$true] %s850_s2 }
  0x4f   : > { %s872_s11 = sshll.u32 %s7587_s10, 4  ;;  %s7588_s18 = smov [#allocation16]   ;;  %s7812_s11 = int_to_ptr.vmem [resolvable:$true] %s872_s11 }
  0x50   : > { %s10259_s1 = scalar_select %p7798_p3, 1, 0 }
  0x51   : > { %p6461_p4 = pneg %p7798_p3  ;;  %s7814_s22 = sshll.u32 %s7588_s18, 4  ;;  %s898_s22 = int_to_ptr.vmem [resolvable:$true] %s7814_s22 }
  0x52   : > { %s7029_s23 = scalar_lea.hbm %s7634_s21, 16 }
  0x53   : > { %p7808_p5 = pnand %p6461_p4, %p10200_p1  ;;  %p7030_p6 = scmp.ne.s32.totalorder %s7634_s21, %s7029_s23 }
  0x54   : > { %p7036_p10 = scmp.lt.u32.totalorder %s7029_s23, %s7634_s21 }
  0x55   : > { %p7820_p7 = pneg %p7808_p5 }
  0x57   : > { %p7032_p8 = pnand %p7820_p7, %p7030_p6 }
  0x59   : > { %p7033_p9 = pneg %p7032_p8 }
  0x5b   : > { %p7038_p11 = pnand %p7036_p10, %p7033_p9 }
  0x5d   : > { %7041 = shalt.err (!%p7038_p11)
}
  0x5e   : > { %s7042_s28 = scalar_lea.vmem %s7796_s25, 16  ;;  %s7049_s10 = scalar_lea.vmem %s7796_s25, 32 }
  0x5f   : > { %p7043_p12 = scmp.ne.s32.totalorder %s7796_s25, %s7042_s28  ;;  %p7050_p2 = scmp.lt.s32.totalorder %s7796_s25, %s7796_s25 }
  0x60   : > { %p7051_p4 = scmp.lt.s32.totalorder %s7049_s10, %s7042_s28 }
  0x61   : > { %p7045_p13 = pnand %p7043_p12, %p7820_p7 }
  0x62   : > { %p7052_p1 = por %p7051_p4, %p7050_p2 }
  0x63   : > { %p7046_p0 = pneg %p7045_p13 }
  0x65   : > { %p7053_p6 = pnand %p7052_p1, %p7046_p0 }
  0x67   : > { %7056 = shalt.err (!%p7053_p6)
}
  0x68   : > { %6464 = dma.hbm_to_vmem [thread:$0]  (!%p7808_p5), %s7634_s21, 16, %s7796_s25, [#allocation8]  }
  0x69   : > { %s7057_s18 = scalar_lea.hbm %s7644_s29, 16 }
  0x6a   : > { %p7058_p8 = scmp.ne.s32.totalorder %s7644_s29, %s7057_s18  ;;  %p7064_p11 = scmp.lt.u32.totalorder %s7057_s18, %s7644_s29 }
  0x6c   : > { %p7060_p9 = pnand %p7058_p8, %p7820_p7 }
  0x6e   : > { %p7061_p10 = pneg %p7060_p9 }
  0x70   : > { %p7066_p12 = pnand %p7064_p11, %p7061_p10 }
  0x72   : > { %7069 = shalt.err (!%p7066_p12)
}
  0x73   : > { %s7070_s23 = scalar_lea.vmem %s7804_s2, 16  ;;  %s7077_s28 = scalar_lea.vmem %s7804_s2, 32 }
  0x74   : > { %p7071_p1 = scmp.ne.s32.totalorder %s7804_s2, %s7070_s23  ;;  %p7078_p2 = scmp.lt.s32.totalorder %s7804_s2, %s7804_s2 }
  0x75   : > { %p7079_p4 = scmp.lt.s32.totalorder %s7077_s28, %s7070_s23 }
  0x76   : > { %p7073_p13 = pnand %p7071_p1, %p7820_p7 }
  0x77   : > { %p7080_p6 = por %p7079_p4, %p7078_p2 }
  0x78   : > { %p7074_p0 = pneg %p7073_p13 }
  0x7a   : > { %p7081_p8 = pnand %p7080_p6, %p7074_p0 }
  0x7c   : > { %7084 = shalt.err (!%p7081_p8)
}
  0x7d   : > { %6467 = dma.hbm_to_vmem [thread:$0]  (!%p7808_p5), %s7644_s29, 16, %s7804_s2, [#allocation11]  }
  0x7e   : > { %s7085_s25 = scalar_lea.hbm %s10255_s8, 128 }
  0x7f   : > { %p7086_p9 = scmp.ne.s32.totalorder %s10255_s8, %s7085_s25  ;;  %p7092_p12 = scmp.lt.u32.totalorder %s7085_s25, %s10255_s8 }
  0x81   : > { %p7088_p10 = pnand %p7086_p9, %p7820_p7 }
  0x83   : > { %p7089_p11 = pneg %p7088_p10 }
  0x85   : > { %p7094_p1 = pnand %p7092_p12, %p7089_p11 }
  0x87   : > { %7097 = shalt.err (!%p7094_p1)
}
  0x88   : > { %s7098_s10 = scalar_lea.vmem %s7812_s11, 128  ;;  %p7106_p4 = scmp.lt.s32.totalorder %s7812_s11, %s7812_s11 }
  0x89   : > { %p7099_p13 = scmp.ne.s32.totalorder %s7812_s11, %s7098_s10  ;;  %p7107_p6 = scmp.lt.s32.totalorder %s7098_s10, %s7098_s10 }
  0x8b   : > { %p7101_p0 = pnand %p7099_p13, %p7820_p7  ;;  %p7108_p8 = por %p7107_p6, %p7106_p4 }
  0x8d   : > { %p7102_p2 = pneg %p7101_p0 }
  0x8f   : > { %p7109_p3 = pnand %p7108_p8, %p7102_p2 }
  0x91   : > { %7112 = shalt.err (!%p7109_p3)
}
  0x92   : > { %6473 = dma.hbm_to_vmem [thread:$0]  (!%p7808_p5), %s10255_s8, 128, %s7812_s11, [#allocation14]  }
  0x93   : > { %s7589_s2 = smov [#allocation19]   ;;  %s7113_s23 = scalar_lea.hbm %s7669_s24, 16 }
  0x94   : > { %s919_s18 = sshll.u32 %s7589_s2, 4  ;;  %p7114_p9 = scmp.ne.s32.totalorder %s7669_s24, %s7113_s23  ;;  %s920_s18 = int_to_ptr.vmem [resolvable:$true] %s919_s18 }
  0x95   : > { %p7120_p12 = scmp.lt.u32.totalorder %s7113_s23, %s7669_s24 }
  0x96   : > { %p7116_p10 = pnand %p7114_p9, %p7820_p7 }
  0x98   : > { %p7117_p11 = pneg %p7116_p10 }
  0x9a   : > { %p7122_p3 = pnand %p7120_p12, %p7117_p11 }
  0x9c   : > { %7125 = shalt.err (!%p7122_p3)
}
  0x9d   : > { %s7126_s28 = scalar_lea.vmem %s898_s22, 16  ;;  %s7133_s25 = scalar_lea.vmem %s898_s22, 32 }
  0x9e   : > { %p7127_p1 = scmp.ne.s32.totalorder %s898_s22, %s7126_s28  ;;  %p7134_p2 = scmp.lt.s32.totalorder %s898_s22, %s898_s22 }
  0x9f   : > { %p7135_p4 = scmp.lt.s32.totalorder %s7133_s25, %s7126_s28 }
  0xa0   : > { %p7129_p13 = pnand %p7127_p1, %p7820_p7 }
  0xa1   : > { %p7136_p6 = por %p7135_p4, %p7134_p2 }
  0xa2   : > { %p7130_p0 = pneg %p7129_p13 }
  0xa4   : > { %p7137_p8 = pnand %p7136_p6, %p7130_p0 }
  0xa6   : > { %7140 = shalt.err (!%p7137_p8)
}
  0xa7   : > { %6479 = dma.hbm_to_vmem [thread:$0]  (!%p7808_p5), %s7669_s24, 16, %s898_s22, [#allocation17]  }
  0xa8   : > { %s7141_s11 = scalar_lea.hbm %s10256_s6, 16 }
  0xa9   : > { %p7142_p9 = scmp.ne.s32.totalorder %s10256_s6, %s7141_s11  ;;  %p7148_p12 = scmp.lt.u32.totalorder %s7141_s11, %s10256_s6 }
  0xab   : > { %p7144_p10 = pnand %p7142_p9, %p7820_p7 }
  0xad   : > { %p7145_p11 = pneg %p7144_p10 }
  0xaf   : > { %p7150_p3 = pnand %p7148_p12, %p7145_p11 }
  0xb1   : > { %7153 = shalt.err (!%p7150_p3)
}
  0xb2   : > { %s7154_s10 = scalar_lea.vmem %s920_s18, 16  ;;  %s7161_s2 = scalar_lea.vmem %s920_s18, 32 }
  0xb3   : > { %p7155_p1 = scmp.ne.s32.totalorder %s920_s18, %s7154_s10  ;;  %p7162_p2 = scmp.lt.s32.totalorder %s920_s18, %s920_s18 }
  0xb4   : > { %p7163_p4 = scmp.lt.s32.totalorder %s7161_s2, %s7154_s10 }
  0xb5   : > { %p7157_p13 = pnand %p7155_p1, %p7820_p7 }
  0xb6   : > { %p7164_p6 = por %p7163_p4, %p7162_p2 }
  0xb7   : > { %p7158_p0 = pneg %p7157_p13 }
  0xb9   : > { %p7165_p8 = pnand %p7164_p6, %p7158_p0 }
  0xbb   : > { %7168 = shalt.err (!%p7165_p8)
}
  0xbc   : > { %6485 = dma.hbm_to_vmem [thread:$0]  (!%p7808_p5), %s10256_s6, 16, %s920_s18, [#allocation20]  }
  0xbd   : > { %s7590_s22 = smov [#allocation22]   ;;  %s7591_s28 = smov [#allocation25]  }
  0xbe   : > { %s950_s23 = sshll.u32 %s7590_s22, 4  ;;  %s975_s25 = sshll.u32 %s7591_s28, 4  ;;  %s951_s23 = int_to_ptr.vmem [resolvable:$true] %s950_s23  ;;  %s976_s25 = int_to_ptr.vmem [resolvable:$true] %s975_s25 }
  0xbf   : > { %s7169_s11 = scalar_lea.hbm %s7704_s19, 128 }
  0xc0   : > { %p7170_p9 = scmp.ne.s32.totalorder %s7704_s19, %s7169_s11  ;;  %p7176_p12 = scmp.lt.u32.totalorder %s7169_s11, %s7704_s19 }
  0xc2   : > { %p7172_p10 = pnand %p7170_p9, %p7820_p7 }
  0xc4   : > { %p7173_p11 = pneg %p7172_p10 }
  0xc6   : > { %p7178_p3 = pnand %p7176_p12, %p7173_p11 }
  0xc8   : > { %7181 = shalt.err (!%p7178_p3)
}
  0xc9   : > { %s7182_s10 = scalar_lea.vmem %s951_s23, 128  ;;  %p7190_p2 = scmp.lt.s32.totalorder %s951_s23, %s951_s23 }
  0xca   : > { %p7183_p1 = scmp.ne.s32.totalorder %s951_s23, %s7182_s10  ;;  %p7191_p4 = scmp.lt.s32.totalorder %s7182_s10, %s7182_s10 }
  0xcc   : > { %p7185_p13 = pnand %p7183_p1, %p7820_p7  ;;  %p7192_p6 = por %p7191_p4, %p7190_p2 }
  0xce   : > { %p7186_p0 = pneg %p7185_p13 }
  0xd0   : > { %p7193_p8 = pnand %p7192_p6, %p7186_p0 }
  0xd2   : > { %7196 = shalt.err (!%p7193_p8)
}
  0xd3   : > { %6491 = dma.hbm_to_vmem [thread:$0]  (!%p7808_p5), %s7704_s19, 128, %s951_s23, [#allocation23]  }
  0xd4   : > { %s7197_s18 = scalar_lea.hbm %s10257_s4, 16 }
  0xd5   : > { %p7198_p9 = scmp.ne.s32.totalorder %s10257_s4, %s7197_s18  ;;  %p7204_p12 = scmp.lt.u32.totalorder %s7197_s18, %s10257_s4 }
  0xd7   : > { %p7200_p10 = pnand %p7198_p9, %p7820_p7 }
  0xd9   : > { %p7201_p11 = pneg %p7200_p10 }
  0xdb   : > { %p7206_p3 = pnand %p7204_p12, %p7201_p11 }
  0xdd   : > { %7209 = shalt.err (!%p7206_p3)
}
  0xde   : > { %s7210_s2 = scalar_lea.vmem %s976_s25, 16  ;;  %s7217_s22 = scalar_lea.vmem %s976_s25, 32 }
  0xdf   : > { %p7211_p1 = scmp.ne.s32.totalorder %s976_s25, %s7210_s2  ;;  %p7218_p2 = scmp.lt.s32.totalorder %s976_s25, %s976_s25 }
  0xe0   : > { %p7219_p4 = scmp.lt.s32.totalorder %s7217_s22, %s7210_s2 }
  0xe1   : > { %p7213_p13 = pnand %p7211_p1, %p7820_p7 }
  0xe2   : > { %p7220_p6 = por %p7219_p4, %p7218_p2 }
  0xe3   : > { %p7214_p0 = pneg %p7213_p13 }
  0xe5   : > { %p7221_p8 = pnand %p7220_p6, %p7214_p0 }
  0xe7   : > { %7224 = shalt.err (!%p7221_p8)
}
  0xe8   : > { %6497 = dma.hbm_to_vmem [thread:$0]  (!%p7808_p5), %s10257_s4, 16, %s976_s25, [#allocation26]  }
  0xe9   : > { %s7592_s23 = smov [#allocation12]   ;;  %s7593_s11 = smov [#allocation15]  }
  0xea   : > { %s861_s28 = sshll.u32 %s7592_s23, 4  ;;  %s883_s10 = sshll.u32 %s7593_s11, 4  ;;  %s862_s28 = int_to_ptr.vmem [resolvable:$true] %s861_s28  ;;  %s884_s10 = int_to_ptr.vmem [resolvable:$true] %s883_s10 }
  0xeb   : > { %s7225_s18 = scalar_lea.hbm %s10258_s3, 16 }
  0xec   : > { %p7226_p9 = scmp.ne.s32.totalorder %s10258_s3, %s7225_s18  ;;  %p7232_p12 = scmp.lt.u32.totalorder %s7225_s18, %s10258_s3 }
  0xee   : > { %p7228_p10 = pnand %p7226_p9, %p7820_p7 }
  0xf0   : > { %p7229_p11 = pneg %p7228_p10 }
  0xf2   : > { %p7234_p3 = pnand %p7232_p12, %p7229_p11 }
  0xf4   : > { %7237 = shalt.err (!%p7234_p3)
}
  0xf5   : > { %s7238_s2 = scalar_lea.vmem %s862_s28, 16  ;;  %s7245_s25 = scalar_lea.vmem %s862_s28, 32 }
  0xf6   : > { %p7239_p1 = scmp.ne.s32.totalorder %s862_s28, %s7238_s2  ;;  %p7246_p2 = scmp.lt.s32.totalorder %s862_s28, %s862_s28 }
  0xf7   : > { %p7247_p4 = scmp.lt.s32.totalorder %s7245_s25, %s7238_s2 }
  0xf8   : > { %p7241_p13 = pnand %p7239_p1, %p7820_p7 }
  0xf9   : > { %p7248_p6 = por %p7247_p4, %p7246_p2 }
  0xfa   : > { %p7242_p0 = pneg %p7241_p13 }
  0xfc   : > { %p7249_p8 = pnand %p7248_p6, %p7242_p0 }
  0xfe   : > { %7252 = shalt.err (!%p7249_p8)
}
  0xff   : > { %6470 = dma.hbm_to_vmem [thread:$0]  (!%p7808_p5), %s10258_s3, 16, %s862_s28, [#allocation11]  }
 0x100   : > { %s7253_s22 = scalar_lea.hbm %s10253_s14, 16 }
 0x101   : > { %p7254_p9 = scmp.ne.s32.totalorder %s10253_s14, %s7253_s22  ;;  %p7260_p12 = scmp.lt.u32.totalorder %s7253_s22, %s10253_s14 }
 0x103   : > { %p7256_p10 = pnand %p7254_p9, %p7820_p7 }
 0x105   : > { %p7257_p11 = pneg %p7256_p10 }
 0x107   : > { %p7262_p3 = pnand %p7260_p12, %p7257_p11 }
 0x109   : > { %7265 = shalt.err (!%p7262_p3)
}
 0x10a   : > { %s7266_s23 = scalar_lea.vmem %s884_s10, 16  ;;  %s7273_s11 = scalar_lea.vmem %s884_s10, 32 }
 0x10b   : > { %p7267_p1 = scmp.ne.s32.totalorder %s884_s10, %s7266_s23  ;;  %p7274_p2 = scmp.lt.s32.totalorder %s884_s10, %s884_s10 }
 0x10c   : > { %p7275_p4 = scmp.lt.s32.totalorder %s7273_s11, %s7266_s23 }
 0x10d   : > { %p7269_p13 = pnand %p7267_p1, %p7820_p7 }
 0x10e   : > { %p7276_p6 = por %p7275_p4, %p7274_p2 }
 0x10f   : > { %p7270_p0 = pneg %p7269_p13 }
 0x111   : > { %p7277_p8 = pnand %p7276_p6, %p7270_p0 }
 0x113   : > { %7280 = shalt.err (!%p7277_p8)
}
 0x114   : > { %6476 = dma.hbm_to_vmem [thread:$0]  (!%p7808_p5), %s10253_s14, 16, %s884_s10, [#allocation14]  }
 0x115   : > { %s7594_s28 = smov [#allocation18]   ;;  %s7595_s2 = smov [#allocation21]  }
 0x116   : > { %s908_s18 = sshll.u32 %s7594_s28, 4  ;;  %s930_s25 = sshll.u32 %s7595_s2, 4  ;;  %s909_s18 = int_to_ptr.vmem [resolvable:$true] %s908_s18  ;;  %s931_s25 = int_to_ptr.vmem [resolvable:$true] %s930_s25 }
 0x117   : > { %s7281_s22 = scalar_lea.hbm %s7674_s30, 16 }
 0x118   : > { %p7282_p9 = scmp.ne.s32.totalorder %s7674_s30, %s7281_s22  ;;  %p7288_p12 = scmp.lt.u32.totalorder %s7281_s22, %s7674_s30 }
 0x11a   : > { %p7284_p10 = pnand %p7282_p9, %p7820_p7 }
 0x11c   : > { %p7285_p11 = pneg %p7284_p10 }
 0x11e   : > { %p7290_p3 = pnand %p7288_p12, %p7285_p11 }
 0x120   : > { %7293 = shalt.err (!%p7290_p3)
}
 0x121   : > { %s7294_s23 = scalar_lea.vmem %s909_s18, 16  ;;  %s7301_s10 = scalar_lea.vmem %s909_s18, 32 }
 0x122   : > { %p7295_p1 = scmp.ne.s32.totalorder %s909_s18, %s7294_s23  ;;  %p7302_p2 = scmp.lt.s32.totalorder %s909_s18, %s909_s18 }
 0x123   : > { %p7303_p4 = scmp.lt.s32.totalorder %s7301_s10, %s7294_s23 }
 0x124   : > { %p7297_p13 = pnand %p7295_p1, %p7820_p7 }
 0x125   : > { %p7304_p6 = por %p7303_p4, %p7302_p2 }
 0x126   : > { %p7298_p0 = pneg %p7297_p13 }
 0x128   : > { %p7305_p8 = pnand %p7304_p6, %p7298_p0 }
 0x12a   : > { %7308 = shalt.err (!%p7305_p8)
}
 0x12b   : > { %6482 = dma.hbm_to_vmem [thread:$0]  (!%p7808_p5), %s7674_s30, 16, %s909_s18, [#allocation17]  }
 0x12c   : > { %s7309_s11 = scalar_lea.hbm %s10254_s12, 128 }
 0x12d   : > { %p7310_p9 = scmp.ne.s32.totalorder %s10254_s12, %s7309_s11  ;;  %p7316_p12 = scmp.lt.u32.totalorder %s7309_s11, %s10254_s12 }
 0x12f   : > { %p7312_p10 = pnand %p7310_p9, %p7820_p7 }
 0x131   : > { %p7313_p11 = pneg %p7312_p10 }
 0x133   : > { %p7318_p3 = pnand %p7316_p12, %p7313_p11 }
 0x135   : > { %7321 = shalt.err (!%p7318_p3)
}
 0x136   : > { %s7322_s28 = scalar_lea.vmem %s931_s25, 128  ;;  %p7330_p2 = scmp.lt.s32.totalorder %s931_s25, %s931_s25 }
 0x137   : > { %p7323_p1 = scmp.ne.s32.totalorder %s931_s25, %s7322_s28  ;;  %p7331_p4 = scmp.lt.s32.totalorder %s7322_s28, %s7322_s28 }
 0x139   : > { %p7325_p13 = pnand %p7323_p1, %p7820_p7  ;;  %p7332_p6 = por %p7331_p4, %p7330_p2 }
 0x13b   : > { %p7326_p0 = pneg %p7325_p13 }
 0x13d   : > { %p7333_p8 = pnand %p7332_p6, %p7326_p0 }
 0x13f   : > { %7336 = shalt.err (!%p7333_p8)
}
 0x140   : > { %6488 = dma.hbm_to_vmem [thread:$0]  (!%p7808_p5), %s10254_s12, 128, %s931_s25, [#allocation20]  }
 0x141   : > { %s7596_s18 = smov [#allocation24]   ;;  %s7597_s22 = smov [#allocation27]  }
 0x142   : > { %s961_s2 = sshll.u32 %s7596_s18, 4  ;;  %s986_s23 = sshll.u32 %s7597_s22, 4  ;;  %s962_s2 = int_to_ptr.vmem [resolvable:$true] %s961_s2  ;;  %s987_s23 = int_to_ptr.vmem [resolvable:$true] %s986_s23 }
 0x143   : > { %s7337_s10 = scalar_lea.hbm %s7709_s20, 16 }
 0x144   : > { %p7338_p9 = scmp.ne.s32.totalorder %s7709_s20, %s7337_s10  ;;  %p7344_p12 = scmp.lt.u32.totalorder %s7337_s10, %s7709_s20 }
 0x146   : > { %p7340_p10 = pnand %p7338_p9, %p7820_p7 }
 0x148   : > { %p7341_p11 = pneg %p7340_p10 }
 0x14a   : > { %p7346_p3 = pnand %p7344_p12, %p7341_p11 }
 0x14c   : > { %7349 = shalt.err (!%p7346_p3)
}
 0x14d   : > { %s7350_s11 = scalar_lea.vmem %s962_s2, 16  ;;  %s7357_s25 = scalar_lea.vmem %s962_s2, 32 }
 0x14e   : > { %p7351_p1 = scmp.ne.s32.totalorder %s962_s2, %s7350_s11  ;;  %p7358_p2 = scmp.lt.s32.totalorder %s962_s2, %s962_s2 }
 0x14f   : > { %p7359_p4 = scmp.lt.s32.totalorder %s7357_s25, %s7350_s11 }
 0x150   : > { %p7353_p13 = pnand %p7351_p1, %p7820_p7 }
 0x151   : > { %p7360_p6 = por %p7359_p4, %p7358_p2 }
 0x152   : > { %p7354_p0 = pneg %p7353_p13 }
 0x154   : > { %p7361_p8 = pnand %p7360_p6, %p7354_p0 }
 0x156   : > { %7364 = shalt.err (!%p7361_p8)
}
 0x157   : > { %s10262_s28 = sld [smem:[#allocation56_spill]] }
 0x158   : > { %6494 = dma.hbm_to_vmem [thread:$0]  (!%p7808_p5), %s7709_s20, 16, %s962_s2, [#allocation23]  }
 0x15d   : > { %s7365_s18 = scalar_lea.hbm %s10262_s28, 16 }
 0x15e   : > { %p7366_p9 = scmp.ne.s32.totalorder %s10262_s28, %s7365_s18  ;;  %p7372_p12 = scmp.lt.u32.totalorder %s7365_s18, %s10262_s28 }
 0x160   : > { %p7368_p10 = pnand %p7366_p9, %p7820_p7 }
 0x162   : > { %p7369_p11 = pneg %p7368_p10 }
 0x164   : > { %p7374_p3 = pnand %p7372_p12, %p7369_p11 }
 0x166   : > { %7377 = shalt.err (!%p7374_p3)
}
 0x167   : > { %s7378_s22 = scalar_lea.vmem %s987_s23, 16  ;;  %s7385_s10 = scalar_lea.vmem %s987_s23, 32 }
 0x168   : > { %p7379_p1 = scmp.ne.s32.totalorder %s987_s23, %s7378_s22  ;;  %p7386_p2 = scmp.lt.s32.totalorder %s987_s23, %s987_s23 }
 0x169   : > { %p7387_p4 = scmp.lt.s32.totalorder %s7385_s10, %s7378_s22 }
 0x16a   : > { %p7381_p13 = pnand %p7379_p1, %p7820_p7 }
 0x16b   : > { %p7388_p6 = por %p7387_p4, %p7386_p2 }
 0x16c   : > { %p7382_p0 = pneg %p7381_p13 }
 0x16e   : > { %p7389_p8 = pnand %p7388_p6, %p7382_p0 }
 0x170   : > { %7392 = shalt.err (!%p7389_p8)
}
 0x171   : > { %s10263_s2 = sld [smem:[#allocation57_spill]]  ;;  %s7598_s11 = smov [#allocation28]  }
 0x172   : > { %6500 = dma.hbm_to_vmem [thread:$0]  (!%p7808_p5), %s10262_s28, 16, %s987_s23, [#allocation26]  }
 0x173   : > { %s997_s25 = sshll.u32 %s7598_s11, 4  ;;  %s998_s25 = int_to_ptr.vmem [resolvable:$true] %s997_s25 }
 0x177   : > { %s7393_s18 = scalar_lea.hbm %s10263_s2, 16 }
 0x178   : > { %p7394_p9 = scmp.ne.s32.totalorder %s10263_s2, %s7393_s18  ;;  %p7400_p12 = scmp.lt.u32.totalorder %s7393_s18, %s10263_s2 }
 0x17a   : > { %p7396_p10 = pnand %p7394_p9, %p7820_p7 }
 0x17c   : > { %p7397_p11 = pneg %p7396_p10 }
 0x17e   : > { %p7402_p3 = pnand %p7400_p12, %p7397_p11 }
 0x180   : > { %7405 = shalt.err (!%p7402_p3)
}
 0x181   : > { %s7406_s22 = scalar_lea.vmem %s998_s25, 16  ;;  %s7413_s10 = scalar_lea.vmem %s998_s25, 32 }
 0x182   : > { %p7407_p1 = scmp.ne.s32.totalorder %s998_s25, %s7406_s22  ;;  %p7414_p2 = scmp.lt.s32.totalorder %s998_s25, %s998_s25 }
 0x183   : > { %p7415_p4 = scmp.lt.s32.totalorder %s7413_s10, %s7406_s22 }
 0x184   : > { %p7409_p13 = pnand %p7407_p1, %p7820_p7 }
 0x185   : > { %p7416_p6 = por %p7415_p4, %p7414_p2 }
 0x186   : > { %p7410_p0 = pneg %p7409_p13 }
 0x188   : > { %p7417_p8 = pnand %p7416_p6, %p7410_p0 }
 0x18a   : > { %7420 = shalt.err (!%p7417_p8)
}
 0x18b   : > { %s10264_s17 = sld [smem:[#allocation40_spill]]  ;;  %s7981_s23 = sadd.s32 1, %s7551_s5  }
 0x18c   : > { %6503 = dma.hbm_to_vmem [thread:$0]  (!%p7808_p5), %s10263_s2, 16, %s998_s25, [#allocation29]  }
 0x18d   : > { %s99_s16 = sadd.s32 1, %s7547_s0  ;;  %s96_s11 = ssub.s32 %s7551_s5, %s7981_s23 }
 0x18e   : > { %p106_p7 = scmp.ne.s32.totalorder %s7547_s0, %s7543_s13  ;;  %s10265_s18 = sld [smem:[#allocation42_spill]] }
 0x18f   : > { %p97_p9 = scmp.eq.s32.totalorder %s96_s11, 0  ;;  %p107_p10 = scmp.eq.s32.totalorder %s7551_s5, 0 }
 0x190   : > { %p112_p11 = scmp.ne.s32.totalorder %s7543_s13, %s7539_s9  ;;  %p6525_p12 = scmp.lt.s32.totalorder %s7551_s5, 2 }
 0x191   : > { %s7993_s22 = scalar_select %p97_p9, %s7547_s0, %s99_s16  }
 0x192   : > { %p108_p3 = por %p107_p10, %p106_p7  ;;  %p10266_p1 = scmp.eq.s32.totalorder %s7791_s27, 0 }
 0x193   : > { %s1026_s25 = sand.u32 1, %s7547_s0   ;;  %s5970_s2 = sshll.u32 %s7551_s5, 7 }
 0x194   : > { %p7997_p13 = por %p10266_p1, %p112_p11  ;;  %s8003_s3 = sshll.u32 %s1026_s25, 3 }
 0x195   : > { %s8006_s4 = scalar_lea.hbm %s10264_s17, %s5970_s2  ;;  %s1030_s9 = scalar_lea.vmem [#allocation5], %s8003_s3 }
 0x196   : > { %s10267_s10 = scalar_select %p7997_p13, 1, 0 }
 0x197   : > { %s1037_s16 = sshll.u32 %s1030_s9, 4  ;;  %p8009_p5 = pnand %p6525_p12, %p108_p3  ;;  %s8013_s16 = int_to_ptr.vmem [resolvable:$true] %s1037_s16 }
 0x198   : > { %s8016_s6 = scalar_lea.hbm %s10265_s18, %s5970_s2  ;;  %s1027_s8 = scalar_lea.sflag [#allocation6], %s1026_s25 }
 0x199   : > { %s7421_s12 = scalar_lea.hbm %s8006_s4, 128  ;;  %p7423_p2 = pneg %p8009_p5 }
 0x19a   : > { %p7422_p0 = scmp.ne.s32.totalorder %s8006_s4, %s7421_s12  ;;  %s7426_s9 = scalar_lea.hbm %s10264_s17, 256 }
 0x19b   : > { %p7427_p8 = scmp.lt.u32.totalorder %s8006_s4, %s10264_s17  ;;  %p7428_p7 = scmp.lt.u32.totalorder %s7426_s9, %s7421_s12 }
 0x19c   : > { %p7424_p4 = pnand %p7423_p2, %p7422_p0  ;;  %p7430_p10 = scmp.lt.u32.totalorder %s7421_s12, %s8006_s4 }
 0x19d   : > { %p7429_p9 = por %p7428_p7, %p7427_p8 }
 0x19e   : > { %p7425_p6 = pneg %p7424_p4 }
 0x19f   : > { %p7431_p11 = por %p7430_p10, %p7429_p9 }
 0x1a1   : > { %p7432_p12 = pnand %p7431_p11, %p7425_p6 }
 0x1a3   : > { %7435 = shalt.err (!%p7432_p12)
}
 0x1a4   : > { %s7436_s2 = scalar_lea.vmem %s8013_s16, 128  ;;  %s7599_s25 = smov [#allocation5]  }
 0x1a5   : > { %p7437_p3 = scmp.ne.s32.totalorder %s8013_s16, %s7436_s2  ;;  %s7441_s14 = sshll.u32 %s7599_s25, 4  ;;  %s7442_s14 = int_to_ptr.vmem [resolvable:$false] %s7441_s14 }
 0x1a6   : > { %s7443_s17 = scalar_lea.vmem %s7442_s14, 256  ;;  %p7444_p0 = scmp.lt.s32.totalorder %s8013_s16, %s7442_s14 }
 0x1a7   : > { %p7439_p1 = pnand %p7437_p3, %p7423_p2  ;;  %p7445_p4 = scmp.lt.s32.totalorder %s7443_s17, %s7436_s2 }
 0x1a9   : > { %p7440_p13 = pneg %p7439_p1  ;;  %p7446_p8 = por %p7445_p4, %p7444_p0 }
 0x1ab   : > { %p7447_p7 = pnand %p7446_p8, %p7440_p13 }
 0x1ad   : > { %7450 = shalt.err (!%p7447_p7)
}
 0x1ae   : > { %6507 = dma.hbm_to_vmem [thread:$0]  (!%p8009_p5), %s8006_s4, 128, %s8013_s16, %s1027_s8  }
 0x1af   : > { %s1051_s12 = sand.u32 1, %s7551_s5   ;;  %s1055_s14 = scalar_lea.vmem [#allocation7], %s8003_s3 }
 0x1b0   : > { %s1062_s17 = sshll.u32 %s1055_s14, 4  ;;  %s1052_s9 = scalar_lea.sflag [#allocation8], %s1051_s12  ;;  %s1063_s17 = int_to_ptr.vmem [resolvable:$true] %s1062_s17 }
 0x1b1   : > { %s7451_s2 = scalar_lea.hbm %s8016_s6, 128  ;;  %s7456_s25 = scalar_lea.hbm %s10265_s18, 256 }
 0x1b2   : > { %p7452_p13 = scmp.ne.s32.totalorder %s8016_s6, %s7451_s2  ;;  %p7457_p10 = scmp.lt.u32.totalorder %s8016_s6, %s10265_s18 }
 0x1b3   : > { %p7458_p11 = scmp.lt.u32.totalorder %s7456_s25, %s7451_s2  ;;  %p7460_p3 = scmp.lt.u32.totalorder %s7451_s2, %s8016_s6 }
 0x1b4   : > { %p7454_p6 = pnand %p7452_p13, %p7423_p2 }
 0x1b5   : > { %p7459_p12 = por %p7458_p11, %p7457_p10 }
 0x1b6   : > { %p7455_p9 = pneg %p7454_p6 }
 0x1b7   : > { %p7461_p1 = por %p7460_p3, %p7459_p12 }
 0x1b9   : > { %p7462_p0 = pnand %p7461_p1, %p7455_p9 }
 0x1bb   : > { %7465 = shalt.err (!%p7462_p0)
}
 0x1bc   : > { %s7466_s8 = scalar_lea.vmem %s1063_s17, 128  ;;  %s7600_s3 = smov [#allocation7]  }
 0x1bd   : > { %p7467_p4 = scmp.ne.s32.totalorder %s1063_s17, %s7466_s8  ;;  %s7471_s4 = sshll.u32 %s7600_s3, 4  ;;  %s7472_s4 = int_to_ptr.vmem [resolvable:$false] %s7471_s4 }
 0x1be   : > { %s7473_s5 = scalar_lea.vmem %s7472_s4, 256  ;;  %p7474_p13 = scmp.lt.s32.totalorder %s1063_s17, %s7472_s4 }
 0x1bf   : > { %p7469_p8 = pnand %p7467_p4, %p7423_p2  ;;  %p7475_p6 = scmp.lt.s32.totalorder %s7473_s5, %s7466_s8 }
 0x1c1   : > { %p7470_p7 = pneg %p7469_p8  ;;  %p7476_p10 = por %p7475_p6, %p7474_p13 }
 0x1c3   : > { %p7477_p11 = pnand %p7476_p10, %p7470_p7 }
 0x1c5   : > { %7480 = shalt.err (!%p7477_p11)
}
 0x1c6   : > { %6510 = dma.hbm_to_vmem [thread:$0]  (!%p8009_p5), %s8016_s6, 128, %s1063_s17, %s1052_s9  }
 0x1c7   : > { %p10269_p9 = scmp.ne.s32.totalorder %s10259_s1, 0 }
 0x1c9   : > { %1071 = sbr.rel (%p10269_p9) target bundleno = 2836 (0xb14), region = 140 }
 0x1d0   : > { %s1073_s16 = sand.u32 1, %s7543_s13   ;;  %p10270_p2 = scmp.ne.s32.totalorder %s10267_s10, 0 }
 0x1d1   : > { %s8059_s12 = sshll.u32 %s1073_s16, 3  ;;  %s1074_s14 = scalar_lea.sflag [#allocation6], %s1073_s16 }
 0x1d2   : > { %s1077_s2 = scalar_lea.vmem [#allocation5], %s8059_s12 }
 0x1d3   : > { %7498 = dma.done.wait (%p10270_p2), %s1074_s14, 128  }
 0x1d4   : > { %7500 = vsyncadd (%p10270_p2), %s1074_s14, 4294967168  ;;  %s1082_s6 = sand.u32 1, %s7791_s27   ;;  %s1086_s1 = scalar_lea.vmem [#allocation7], %s8059_s12 }
 0x1d5   : > { %s1083_s11 = scalar_lea.sflag [#allocation8], %s1082_s6 }
 0x1d6   : > { %7502 = dma.done.wait (%p10270_p2), %s1083_s11, 128  }
 0x1d7   : > { %7504 = vsyncadd (%p10270_p2), %s1083_s11, 4294967168  ;;  %p10271_p5 = scmp.eq.s32.totalorder %s7791_s27, 0 }
 0x1d9   : > { %7506 = dma.done.wait (%p10271_p5), [#allocation8], 16   ;;  %p10272_p12 = pmov %p10271_p5 }
 0x1da   : > { %p10273_p3 = pmov %p10271_p5 }
 0x1db   : > { %7508 = vsyncadd (%p10272_p12), [#allocation8], 4294967280 }
 0x1dc   : > { %7510 = dma.done.wait (%p10273_p3), [#allocation11], 32   ;;  %p10274_p1 = pmov %p10273_p3 }
 0x1de   : > { %7512 = vsyncadd (%p10274_p1), [#allocation11], 4294967264  ;;  %p10275_p0 = pmov %p10274_p1 }
 0x1e0   : > { %7514 = dma.done.wait (%p10275_p0), [#allocation14], 144   ;;  %p10276_p4 = pmov %p10275_p0 }
 0x1e1   : > { %p10277_p8 = pmov %p10275_p0 }
 0x1e2   : > { %7516 = vsyncadd (%p10276_p4), [#allocation14], 4294967152 }
 0x1e3   : > { %7518 = dma.done.wait (%p10277_p8), [#allocation17], 32   ;;  %p10278_p7 = pmov %p10275_p0 }
 0x1e4   : > { %p10279_p13 = pmov %p10275_p0 }
 0x1e5   : > { %7520 = vsyncadd (%p10278_p7), [#allocation17], 4294967264 }
 0x1e6   : > { %7522 = dma.done.wait (%p10279_p13), [#allocation20], 144   ;;  %p10280_p6 = pmov %p10275_p0 }
 0x1e7   : > { %p10281_p10 = pmov %p10275_p0 }
 0x1e8   : > { %7524 = vsyncadd (%p10280_p6), [#allocation20], 4294967152 }
 0x1e9   : > { %7526 = dma.done.wait (%p10281_p10), [#allocation23], 144   ;;  %p10282_p11 = pmov %p10275_p0 }
 0x1ea   : > { %p10283_p9 = pmov %p10275_p0 }
 0x1eb   : > { %7528 = vsyncadd (%p10282_p11), [#allocation23], 4294967152 }
 0x1ec   : > { %7530 = dma.done.wait (%p10283_p9), [#allocation26], 32   ;;  %p10284_p2 = pmov %p10275_p0 }
 0x1ed   : > { %p10285_p5 = pmov %p10275_p0 }
 0x1ee   : > { %7532 = vsyncadd (%p10284_p2), [#allocation26], 4294967264 }
 0x1ef   : > { %7534 = dma.done.wait (%p10285_p5), [#allocation29], 16   ;;  %p10286_p12 = pmov %p10275_p0 }
 0x1f0   : > { %s10287_s10 = sld [smem:[#allocation43_spill]]  ;;  %v7601_v0 = vmov 0.0|0.0   ;;  %vm7602_vm0 = vmmov 0   ;;  %v7603_v1 = vmov 0.0   ;;  %s10288_s17 = sld [smem:[#allocation44_spill]]  ;;  %v8117_v8 = vld [vmem:[%s1077_s2] sm:$0xff]  ;;  %v1548_v26 = vlaneseq }
 0x1f1   : > { %7536 = vsyncadd (%p10286_p12), [#allocation29], 4294967280  ;;  %6357 = vmatprep.subr.bf16.mxu0 %v7601_v0  ;;  %6194 = vmatprep.mubr.msk.f32.mxu0 %vm7602_vm0, %v7603_v1  ;;  %vm1276_vm1 = vcmask 261120   ;;  %s10289_s9 = sld [smem:[#allocation41_spill]]  ;;  %v5997_v15 = vld [vmem:[#allocation9] ss:$0 sm:$0xff] }
 0x1f2   : > { %6363 = vmatprep.subr.bf16.mxu1 %v7601_v0  ;;  %6205 = vmatprep.mubr.msk.f32.mxu1 %vm7602_vm0, %v7603_v1  ;;  %p1242_p3 = scmp.lt.s32.totalorder %s7791_s27, 1  ;;  %s5991_s4 = sshll.u32 %s7791_s27, 3  ;;  %v7604_v27 = vmov 1966171168   ;;  %v8135_v30 = vshrl.u32 %v1548_v26, 7  ;;  %vm5144_vm2 = vcmask 32768  }
 0x1f3   : > { %v1742_v28 = vunpack.c.l.s4 %v7604_v27  ;;  %p1247_p1 = scmp.lt.s32.totalorder %s5991_s4, 15  ;;  %v5999_v33 = vld [vmem:[#allocation10] ss:$0 sm:$0xff]  ;;  %vm1435_vm3 = vcmask 39936   ;;  %v1470_v59 = vld [vmem:[#allocation13] sm:$0x1f] }
 0x1f4   : > { %s1243_s25 = scalar_select %p1242_p3, %s7791_s27, 1  ;;  %vm1474_vm4 = vcmask 1044480   ;;  %v8179_v60 = vsub.s32 0, %v8135_v30  ;;  %v10216_v61 = vsub.s32 2, %v8135_v30  ;;  %vm4709_vm5 = vcmask 253952  }
 0x1f5   : > { %v1743_v31 = vunpack.c.0.s8 %v1742_v28  ;;  %s10338_s4 = smov (!%p1247_p1, %s5991_s4), 15  ;;  %s10292_s16 = sld [smem:[#allocation52_spill]]  ;;  %vm2998_vm6 = vcmask 130112   ;;  %vm3005_vm7 = vcmask 195712   ;;  %vm3012_vm8 = vcmask 261312  }
 0x1f6   : > { %v1265_v2 = vld [vmem:[%s10287_s10] sm:$0xff]  ;;  %v1266_v3 = vld [vmem:[%s10287_s10 + $0x8] sm:$0xff]  ;;  %v1267_v4 = vld [vmem:[%s10287_s10 + $0x10] sm:$0xff]  ;;  %s5990_s8 = sshll.u32 %s1243_s25, 3  ;;  %s8140_s5 = sshll.u32 %s10338_s4, 2  ;;  %v1551_v62 = vrot.slane %v8117_v8, %v8179_v60  ;;  %v1589_v63 = vrot.slane %v8117_v8, %v10216_v61 }
 0x1f7   : > { %v6358_v5 = vpack.c.bf16 %v1266_v3, %v1265_v2  ;;  %v1268_v6 = vld [vmem:[%s10287_s10 + $0x18] sm:$0xff]  ;;  %v1351_v9 = vld [vmem:[%s10288_s17] sm:$0xff]  ;;  %v1352_v10 = vld [vmem:[%s10288_s17 + $0x8] sm:$0xff]  ;;  %s1245_s3 = scalar_lea.vmem %s10289_s9, %s5990_s8  ;;  %v8138_v34 = vsub.s32 %v1743_v31, %v8135_v30  ;;  %s8151_s27 = scalar_lea.vmem %s7763_s15, %s8140_s5  ;;  %v10217_v2 = vsub.s32 1, %v8135_v30  ;;  %v10215_v3 = vsub.s32 3, %v8135_v30 }
 0x1f8   : > { %v6361_v7 = vpack.c.bf16 %v1268_v6, %v1267_v4  ;;  %v1353_v11 = vld [vmem:[%s10288_s17 + $0x10] sm:$0xff]  ;;  %v6364_v12 = vpack.c.bf16 %v1352_v10, %v1351_v9  ;;  %v1354_v13 = vld [vmem:[%s10288_s17 + $0x18] sm:$0xff]  ;;  %v1448_v20 = vld [vmem:[%s1245_s3] sm:$0xff]  ;;  %1553 = vbcast.lane.b32.xlu1 %v1551_v62, 256  ;;  %v10214_v6 = vsub.s32 4, %v8135_v30  ;;  %v10213_v9 = vsub.s32 5, %v8135_v30  ;;  %s8466_s9 = scalar_lea.vmem %s7768_s26, %s8140_s5  ;;  %s8738_s8 = scalar_lea.vmem %s7758_s7, %s8140_s5 }
 0x1f9   : > { %6359 = vmatpush3.bf16.msra.mxu0 %v6358_v5  ;;  %v6367_v14 = vpack.c.bf16 %v1354_v13, %v1353_v11  ;;  %v1449_v21 = vadd.f32 1e-20, %v1448_v20  ;;  %10290 = vst [vmem:[#allocation61_spill] sm:$0xff] %v8138_v34  ;;  %v1570_v4 = vrot.slane %v8117_v8, %v10217_v2  ;;  %v1608_v5 = vrot.slane %v8117_v8, %v10215_v3  ;;  %s10293_s14 = sld [smem:[#allocation48_spill]]  ;;  %s10294_s2 = sld [smem:[#allocation51_spill]] }
 0x1fa   : > { %6360 = vmatprep.subr.bf16.mxu0 %v7601_v0  ;;  %6365 = vmatpush3.bf16.msra.mxu1 %v6364_v12  ;;  %v1646_v10 = vrot.slane %v8117_v8, %v10213_v9  ;;  %v10212_v11 = vsub.s32 6, %v8135_v30  ;;  %v10211_v13 = vsub.s32 7, %v8135_v30  ;;  %s10295_s6 = sld [smem:[#allocation54_spill]]  ;;  %s10296_s11 = sld [smem:[#allocation53_spill]] }
 0x1fb   : > { %6366 = vmatprep.subr.bf16.mxu1 %v7601_v0  ;;  %s2600_s25 = sld [smem:[#allocation3]]  ;;  %s10318_s12 = sld [smem:[#allocation58_spill]] }
 0x1fc   : > { %1557 = vbcast.lane.b32.xlu1 %v1551_v62, 264  ;;  %v1665_v12 = vrot.slane %v8117_v8, %v10212_v11  ;;  %s2431_s3 = sld [smem:[#allocation2]]  ;;  %s10331_s4 = sld [smem:[#allocation60_spill]] }
 0x1fd   : > { %6362 = vmatpush3.bf16.msra.mxu0 %v6361_v7  ;;  %v1627_v7 = vrot.slane %v8117_v8, %v10214_v6  ;;  %s4483_s5 = sld [smem:[#allocation4]] }
 0x1fe   : > { %6208 = vmatprep.subr.mxu0 %v7603_v1  ;;  %6368 = vmatpush3.bf16.msra.mxu1 %v6367_v14  ;;  %v1684_v14 = vrot.slane %v8117_v8, %v10211_v13 }
 0x200   : > { %6195 = vmatmul.mubr.msk.f32.vlgmr.msra.gmra.mrb[0].mxu0 %vm1276_vm1, %v8117_v8  ;;  %1565 = vbcast.lane.b32.xlu1 %v1551_v62, 280 }
 0x201   : > { %6210 = vmatprep.mubr.msk.f32.mxu0 %vm7602_vm0, %v7603_v1  ;;  %6209 = vmatpush3.msk.msra.mxu0 %vm1474_vm4, %v1470_v59 }
 0x202   : > { %6269 = vmatprep.subr.mxu0 %v7603_v1 }
 0x204   : > { %1572 = vbcast.lane.b32.xlu1 %v1570_v4, 256 }
 0x208   : > { %1576 = vbcast.lane.b32.xlu1 %v1570_v4, 264 }
 0x20c   : > { %1580 = vbcast.lane.b32.xlu1 %v1570_v4, 272 }
 0x210   : > { %1584 = vbcast.lane.b32.xlu1 %v1570_v4, 280 }
 0x214   : > { %1591 = vbcast.lane.b32.xlu1 %v1589_v63, 256 }
 0x218   : > { %1599 = vbcast.lane.b32.xlu1 %v1589_v63, 272 }
 0x21c   : > { %1610 = vbcast.lane.b32.xlu1 %v1608_v5, 256 }
 0x220   : > { %1618 = vbcast.lane.b32.xlu1 %v1608_v5, 272 }
 0x224   : > { %1629 = vbcast.lane.b32.xlu1 %v1627_v7, 256 }
 0x228   : > { %1637 = vbcast.lane.b32.xlu1 %v1627_v7, 272 }
 0x22c   : > { %1648 = vbcast.lane.b32.xlu1 %v1646_v10, 256 }
 0x230   : > { %1656 = vbcast.lane.b32.xlu1 %v1646_v10, 272 }
 0x234   : > { %1667 = vbcast.lane.b32.xlu1 %v1665_v12, 256 }
 0x238   : > { %1675 = vbcast.lane.b32.xlu1 %v1665_v12, 272 }
 0x23c   : > { %1686 = vbcast.lane.b32.xlu1 %v1684_v14, 256 }
 0x240   : > { %1694 = vbcast.lane.b32.xlu1 %v1684_v14, 272 }
 0x2d3   : > { %v1346_v16 = vpop.f32.mrb[0].mxu0 }
 0x2d4   : > { %v1347_v17 = vadd.f32 %v5997_v15, %v1346_v16  ;;  %v6196_v18 = vpop.f32.mrb[1].mxu0 }
 0x2d5   : > { %v3380_v18 = vld [vmem:[#allocation21] sm:$0x1f] }
 0x2d6   : > { %6625 = vtanh.f32 %v1347_v17 }
 0x2d7   : > { %6627 = vlog2.f32 %v1449_v21 }
 0x2e0   : > { %v6626_v19 = vpop.eup %6625 }
 0x2e1   : > { %6206 = vmatmul.mubr.msk.f32.vlgmr.msra.gmra.mrb[0].mxu1 %vm1276_vm1, %v6626_v19  ;;  %v6628_v22 = vpop.eup %6627 }
 0x2e2   : > { %v1451_v23 = vmul.f32 0.6931472, %v6628_v22 }
 0x2e4   : > { %v1452_v24 = vsub.f32 0.0, %v1451_v23 }
 0x2e6   : > { %v1453_v25 = vadd.f32 1e-20, %v1452_v24 }
 0x2e8   : > { %6629 = vlog2.f32 %v1453_v25 }
 0x2f2   : > { %v6630_v29 = vpop.eup %6629 }
 0x2f3   : > { %v1455_v32 = vmul.f32 0.6931472, %v6630_v29 }
 0x2f5   : > { %v1456_v35 = vsub.f32 0.0, %v1455_v32 }
 0x3b4   : > { %v1431_v36 = vpop.f32.mrb[0].mxu1 }
 0x3b5   : > { %v8142_v37 = vadd.f32 %v5999_v33, %v1431_v36  ;;  %v6207_v38 = vpop.f32.mrb[1].mxu1  ;;  %v3462_v33 = vld [vmem:[%s10292_s16] sm:$0xff] }
 0x3b6   : > { %v1932_v38 = vld [vmem:[%s10293_s14] sm:$0xff] }
 0x3b7   : > { %10291 = vst [vmem:[#allocation62_spill] sm:$0xff] %v8142_v37  ;;  %v5087_v39 = vcombine.high %v8142_v37, %v8142_v37  ;;  %v5094_v40 = vrot.slane %v8142_v37, %v8138_v34  ;;  %v1457_v41 = vadd.f32 %v1456_v35, %v8142_v37  ;;  %v3463_v35 = vld [vmem:[%s10292_s16 + $0x8] sm:$0xff] }
 0x3b8   : > { %v6378_v36 = vpack.c.bf16 %v3463_v35, %v3462_v33 }
 0x3b9   : > { %v5101_v42 = vrot.slane %v5087_v39, %v8138_v34  ;;  %v5102_v43 = vcombine.high %v5094_v40, %v5094_v40  ;;  %v5110_v44 = vrot.slane %v5094_v40, %v8138_v34  ;;  %v1458_v45 = vsel %vm1435_vm3, %v1457_v41, -inf  ;;  %v1933_v39 = vld [vmem:[%s10293_s14 + $0x8] sm:$0xff]  ;;  %v3464_v40 = vld [vmem:[%s10292_s16 + $0x10] sm:$0xff] }
 0x3ba   : > { %1459 = vmax.xlane.f32.xlu0 %v1458_v45  ;;  %v1935_v45 = vld [vmem:[%s10293_s14 + $0x18] sm:$0xff] }
 0x3bb   : > { %v5103_v46 = vcombine.high %v5101_v42, %v5101_v42  ;;  %v5117_v47 = vrot.slane %v5101_v42, %v8138_v34  ;;  %v5124_v48 = vrot.slane %v5102_v43, %v8138_v34  ;;  %v5132_v49 = vcombine.high %v5110_v44, %v5110_v44  ;;  %5145 = vst.msk [vmem:[%s8151_s27] sm:$0x1] %vm5144_vm2, %v5110_v44  ;;  %v3465_v42 = vld [vmem:[%s10292_s16 + $0x18] sm:$0xff]  ;;  %v1934_v44 = vld [vmem:[%s10293_s14 + $0x10] sm:$0xff] }
 0x3bc   : > { %v6381_v43 = vpack.c.bf16 %v3465_v42, %v3464_v40 }
 0x3bd   : > { %v5131_v50 = vrot.slane %v5103_v46, %v8138_v34  ;;  %v5133_v51 = vcombine.high %v5117_v47, %v5117_v47  ;;  %v5134_v52 = vcombine.high %v5124_v48, %v5124_v48  ;;  %5146 = vst.msk [vmem:[%s8151_s27 + $0x4] sm:$0x1] %vm5144_vm2, %v5124_v48  ;;  %5147 = vst.msk [vmem:[%s8151_s27 + $0x8] sm:$0x1] %vm5144_vm2, %v5132_v49 }
 0x3be   : > { %5149 = vst.msk [vmem:[%s8151_s27 + $0x10] sm:$0x1] %vm5144_vm2, %v5117_v47  ;;  %v6373_v46 = vpack.c.bf16 %v1935_v45, %v1934_v44  ;;  %v1554_v47 = vpop.permute.xlu1 %1553 }
 0x3bf   : > { %v5135_v53 = vcombine.high %v5131_v50, %v5131_v50  ;;  %5148 = vst.msk [vmem:[%s8151_s27 + $0xc] sm:$0x1] %vm5144_vm2, %v5134_v52  ;;  %5150 = vst.msk [vmem:[%s8151_s27 + $0x14] sm:$0x1] %vm5144_vm2, %v5131_v50 }
 0x3c0   : > { %5151 = vst.msk [vmem:[%s8151_s27 + $0x18] sm:$0x1] %vm5144_vm2, %v5133_v51 }
 0x3c1   : > { %5152 = vst.msk [vmem:[%s8151_s27 + $0x1c] sm:$0x1] %vm5144_vm2, %v5135_v53 }
 0x3c2   : > { %v1558_v48 = vpop.permute.xlu1 %1557 }
 0x3c6   : > { %v1566_v49 = vpop.permute.xlu1 %1565 }
 0x3ca   : > { %v1573_v50 = vpop.permute.xlu1 %1572 }
 0x3ce   : > { %v1577_v51 = vpop.permute.xlu1 %1576 }
 0x3d2   : > { %v1581_v52 = vpop.permute.xlu1 %1580 }
 0x3d6   : > { %v1585_v53 = vpop.permute.xlu1 %1584 }
 0x447   : > { %v1460_v54 = vpop.xlane.xlu0 %1459 }
 0x448   : > { %v1461_v55 = vsub.f32 %v1457_v41, %v1460_v54  ;;  %v6369_v41 = vpack.c.bf16 %v1933_v39, %v1932_v38 }
 0x44a   : > { %v1462_v56 = vmul.f32 1.442695, %v1461_v55  ;;  %6370 = vmatprep.subr.bf16.mxu1 %v6369_v41  ;;  %v1592_v55 = vpop.permute.xlu1 %1591 }
 0x44b   : > { %6372 = vmatpush3.bf16.msra.mxu1 %v6369_v41 }
 0x44c   : > { %6631 = vpow2.f32 %v1462_v56  ;;  %6374 = vmatprep.subr.bf16.mxu1 %v6373_v46 }
 0x44e   : > { %v1600_v4 = vpop.permute.xlu1 %1599 }
 0x44f   : > { %6376 = vmatpush3.bf16.msra.mxu1 %v6373_v46 }
 0x456   : > { %v6632_v57 = vpop.eup %6631 }
 0x457   : > { %v1464_v58 = vsel %vm1435_vm3, %v6632_v57, 0.0 }
 0x458   : > { %1465 = vadd.xlane.f32.xlu0 %v1464_v58 }
 0x46e   : > { %1561 = vbcast.lane.b32.xlu0 %v1551_v62, 272 }
 0x472   : > { %1595 = vbcast.lane.b32.xlu0 %v1589_v63, 264 }
 0x476   : > { %1603 = vbcast.lane.b32.xlu0 %v1589_v63, 280 }
 0x47a   : > { %1614 = vbcast.lane.b32.xlu0 %v1608_v5, 264 }
 0x47e   : > { %1622 = vbcast.lane.b32.xlu0 %v1608_v5, 280 }
 0x482   : > { %1633 = vbcast.lane.b32.xlu0 %v1627_v7, 264 }
 0x486   : > { %1641 = vbcast.lane.b32.xlu0 %v1627_v7, 280 }
 0x48a   : > { %1652 = vbcast.lane.b32.xlu0 %v1646_v10, 264 }
 0x48e   : > { %1660 = vbcast.lane.b32.xlu0 %v1646_v10, 280  ;;  %v8265_v10 = vld [vmem:[#allocation12] ss:$0 sm:$0xff] }
 0x48f   : > { %v1714_v42 = vmul.f32 %v8265_v10, %v1585_v53 }
 0x492   : > { %1671 = vbcast.lane.b32.xlu0 %v1665_v12, 264 }
 0x496   : > { %1679 = vbcast.lane.b32.xlu0 %v1665_v12, 280 }
 0x49a   : > { %1690 = vbcast.lane.b32.xlu0 %v1684_v14, 264 }
 0x49e   : > { %1698 = vbcast.lane.b32.xlu0 %v1684_v14, 280 }
 0x4e5   : > { %v1466_v15 = vpop.xlane.xlu0 %1465 }
 0x4e6   : > { %6633 = vrcp.f32 %v1466_v15  ;;  %v1708_v15 = vmul.f32 %v8265_v10, %v1558_v48 }
 0x4e9   : > { %v1562_v54 = vpop.permute.xlu0 %1561 }
 0x4ed   : > { %v1596_v59 = vpop.permute.xlu0 %1595 }
 0x4f0   : > { %v6634_v16 = vpop.eup %6633 }
 0x4f1   : > { %v8211_v17 = vmul.f32 %v6634_v16, %v6632_v57  ;;  %v1604_v12 = vpop.permute.xlu0 %1603  ;;  %v1707_v16 = vmul.f32 %v8265_v10, %v1554_v47 }
 0x4f3   : > { %6211 = vmatmul.mubr.msk.f32.vlgmr.msra.gmra.mrb[2].mxu0 %vm1435_vm3, %v8211_v17  ;;  %v5219_v8 = vcombine.high %v8211_v17, %v8211_v17  ;;  %v5226_v19 = vrot.slane %v8211_v17, %v8138_v34 }
 0x4f4   : > { %6270 = vmatpush3.msk.msra.mxu0 %vm1474_vm4, %v3380_v18  ;;  %6271 = vmatprep.mubr.msk.f32.mxu0 %vm7602_vm0, %v7603_v1  ;;  %v1709_v18 = vmul.f32 %v8265_v10, %v1562_v54 }
 0x4f5   : > { %v5233_v20 = vrot.slane %v5219_v8, %v8138_v34  ;;  %v5234_v21 = vcombine.high %v5226_v19, %v5226_v19  ;;  %v5242_v22 = vrot.slane %v5226_v19, %v8138_v34  ;;  %6377 = vmatprep.subr.bf16.mxu0 %v7601_v0  ;;  %v1611_v8 = vpop.permute.xlu1 %1610 }
 0x4f7   : > { %v5235_v23 = vcombine.high %v5233_v20, %v5233_v20  ;;  %v5249_v24 = vrot.slane %v5233_v20, %v8138_v34  ;;  %v5256_v25 = vrot.slane %v5234_v21, %v8138_v34  ;;  %v5264_v27 = vcombine.high %v5242_v22, %v5242_v22  ;;  %5276 = vst.msk [vmem:[%s8151_s27 + $0x2] sm:$0x1] %vm5144_vm2, %v5242_v22  ;;  %v1615_v22 = vpop.permute.xlu0 %1614 }
 0x4f8   : > { %6272 = vmatmul.mubr.msk.f32.vlgmr.msra.gmra.mrb[4].mxu0 %vm1435_vm3, %v8211_v17  ;;  %v1710_v21 = vmul.f32 %v8265_v10, %v1566_v49 }
 0x4f9   : > { %6282 = vmatprep.mubr.msk.f32.mxu0 %vm7602_vm0, %v7603_v1  ;;  %v5263_v28 = vrot.slane %v5235_v23, %v8138_v34  ;;  %v5265_v29 = vcombine.high %v5249_v24, %v5249_v24  ;;  %v5266_v31 = vcombine.high %v5256_v25, %v5256_v25  ;;  %5277 = vst.msk [vmem:[%s8151_s27 + $0x6] sm:$0x1] %vm5144_vm2, %v5256_v25  ;;  %5278 = vst.msk [vmem:[%s8151_s27 + $0xa] sm:$0x1] %vm5144_vm2, %v5264_v27 }
 0x4fa   : > { %5280 = vst.msk [vmem:[%s8151_s27 + $0x12] sm:$0x1] %vm5144_vm2, %v5249_v24  ;;  %6379 = vmatpush3.bf16.msra.mxu0 %v6378_v36  ;;  %v8273_v24 = vld [vmem:[#allocation15] ss:$0 sm:$0xff]  ;;  %v1711_v25 = vmul.f32 %v8265_v10, %v1573_v50  ;;  %v1713_v36 = vmul.f32 %v8265_v10, %v1581_v52  ;;  %v1716_v50 = vmul.f32 %v8265_v10, %v1596_v59 }
 0x4fb   : > { %v5267_v32 = vcombine.high %v5263_v28, %v5263_v28  ;;  %5279 = vst.msk [vmem:[%s8151_s27 + $0xe] sm:$0x1] %vm5144_vm2, %v5266_v31  ;;  %5281 = vst.msk [vmem:[%s8151_s27 + $0x16] sm:$0x1] %vm5144_vm2, %v5263_v28  ;;  %6380 = vmatprep.subr.bf16.mxu0 %v7601_v0  ;;  %v1623_v41 = vpop.permute.xlu0 %1622  ;;  %v1719_v59 = vmul.f32 %v8265_v10, %v1611_v8  ;;  %v1720_v8 = vmul.f32 %v8265_v10, %v1615_v22 }
 0x4fc   : > { %5282 = vst.msk [vmem:[%s8151_s27 + $0x1a] sm:$0x1] %vm5144_vm2, %v5265_v29  ;;  %v1619_v29 = vpop.permute.xlu1 %1618 }
 0x4fd   : > { %5283 = vst.msk [vmem:[%s8151_s27 + $0x1e] sm:$0x1] %vm5144_vm2, %v5267_v32  ;;  %v1712_v32 = vmul.f32 %v8265_v10, %v1577_v51  ;;  %v1717_v51 = vmul.f32 %v8265_v10, %v1600_v4 }
 0x4fe   : > { %6382 = vmatpush3.bf16.msra.mxu0 %v6381_v43  ;;  %v1715_v43 = vmul.f32 %v8265_v10, %v1592_v55 }
 0x4ff   : > { %6285 = vmatprep.subr.mxu0 %v7603_v1  ;;  %v1634_v52 = vpop.permute.xlu0 %1633 }
 0x500   : > { %v1630_v46 = vpop.permute.xlu1 %1629 }
 0x5c6   : > { %v8258_v56 = vpop.f32.mrb[2].mxu0 }
 0x5c7   : > { %v6212_v57 = vpop.f32.mrb[3].mxu0  ;;  %v1747_v58 = vrot.slane %v8258_v56, %v8138_v34 }
 0x5c9   : > { %v1763_v5 = vrot.slane %v1747_v58, %v8138_v34  ;;  %v1755_v7 = vcombine.high %v1747_v58, %v1747_v58 }
 0x5cb   : > { %v8262_v62 = vpop.f32.mrb[4].mxu0  ;;  %v1792_v14 = vrot.slane %v1763_v5, %v8179_v60  ;;  %v1777_v19 = vrot.slane %v1755_v7, %v8138_v34  ;;  %v1785_v38 = vcombine.high %v1763_v5, %v1763_v5  ;;  %v1718_v5 = vmul.f32 %v8265_v10, %v1604_v12  ;;  %v1638_v7 = vpop.permute.xlu1 %1637 }
 0x5cc   : > { %v6273_v63 = vpop.f32.mrb[5].mxu0 }
 0x5cd   : > { %v1829_v20 = vadd.f32 %v1792_v14, %v1707_v16  ;;  %v1830_v23 = vadd.f32 %v1792_v14, %v1708_v15  ;;  %v1796_v27 = vrot.slane %v1777_v19, %v8179_v60  ;;  %v1831_v28 = vadd.f32 %v1792_v14, %v1709_v18 }
 0x5ce   : > { %v1832_v33 = vadd.f32 %v1792_v14, %v1710_v21  ;;  %v1800_v47 = vrot.slane %v1785_v38, %v8179_v60  ;;  %v1787_v55 = vcombine.high %v1777_v19, %v1777_v19  ;;  %v1740_v63 = vcombine.high %v8258_v56, %v8258_v56  ;;  %v1642_v21 = vpop.permute.xlu0 %1641 }
 0x5cf   : > { %v1868_v31 = vadd.f32 %v8273_v24, %v1829_v20  ;;  %v1869_v35 = vadd.f32 %v8273_v24, %v1830_v23  ;;  %v1833_v39 = vadd.f32 %v1796_v27, %v1711_v25  ;;  %v1870_v40 = vadd.f32 %v8273_v24, %v1831_v28  ;;  %v1649_v28 = vpop.permute.xlu1 %1648 }
 0x5d0   : > { %v1834_v44 = vadd.f32 %v1796_v27, %v1712_v32  ;;  %v1871_v45 = vadd.f32 %v8273_v24, %v1832_v33  ;;  %v1835_v48 = vadd.f32 %v1796_v27, %v1713_v36  ;;  %v1836_v53 = vadd.f32 %v1796_v27, %v1714_v42 }
 0x5d1   : > { %6635 = vtanh.f32 %v1868_v31  ;;  %v1872_v49 = vadd.f32 %v8273_v24, %v1833_v39  ;;  %v1837_v57 = vadd.f32 %v1800_v47, %v1715_v43  ;;  %v1838_v14 = vadd.f32 %v1800_v47, %v1716_v50 }
 0x5d2   : > { %6637 = vtanh.f32 %v1869_v35  ;;  %v1873_v54 = vadd.f32 %v8273_v24, %v1834_v44  ;;  %v1874_v58 = vadd.f32 %v8273_v24, %v1835_v48  ;;  %v1875_v4 = vadd.f32 %v8273_v24, %v1836_v53  ;;  %v1653_v22 = vpop.permute.xlu0 %1652 }
 0x5d3   : > { %6639 = vtanh.f32 %v1870_v40  ;;  %v1804_v16 = vrot.slane %v1787_v55, %v8179_v60  ;;  %v1839_v18 = vadd.f32 %v1800_v47, %v1717_v51  ;;  %v1876_v19 = vadd.f32 %v8273_v24, %v1837_v57  ;;  %v6040_v51 = vld [vmem:[%s10294_s2] ss:$0 sm:$0xff] }
 0x5d4   : > { %6641 = vtanh.f32 %v1871_v45  ;;  %v1754_v56 = vrot.slane %v1740_v63, %v8138_v34  ;;  %v1840_v23 = vadd.f32 %v1800_v47, %v1718_v5  ;;  %v1877_v25 = vadd.f32 %v8273_v24, %v1838_v14 }
 0x5d5   : > { %6643 = vtanh.f32 %v1872_v49  ;;  %v1721_v27 = vmul.f32 %v8265_v10, %v1619_v29  ;;  %v1841_v31 = vadd.f32 %v1804_v16, %v1719_v59  ;;  %v1878_v32 = vadd.f32 %v8273_v24, %v1839_v18  ;;  %v1657_v49 = vpop.permute.xlu1 %1656 }
 0x5d6   : > { %6645 = vtanh.f32 %v1873_v54  ;;  %v8307_v35 = vrot.slane %v1754_v56, %v8138_v34  ;;  %v1842_v38 = vadd.f32 %v1804_v16, %v1720_v8  ;;  %v1879_v39 = vadd.f32 %v8273_v24, %v1840_v23  ;;  %v1661_v57 = vpop.permute.xlu0 %1660 }
 0x5d7   : > { %6647 = vtanh.f32 %v1874_v58  ;;  %v1722_v29 = vmul.f32 %v8265_v10, %v1623_v41  ;;  %v1843_v40 = vadd.f32 %v1804_v16, %v1721_v27  ;;  %v1880_v42 = vadd.f32 %v8273_v24, %v1841_v31 }
 0x5d8   : > { %6649 = vtanh.f32 %v1875_v4  ;;  %v1723_v44 = vmul.f32 %v8265_v10, %v1630_v46  ;;  %v1756_v45 = vcombine.high %v1754_v56, %v1754_v56  ;;  %v1808_v47 = vrot.slane %v8307_v35, %v8179_v60 }
 0x5d9   : > { %6651 = vtanh.f32 %v1876_v19  ;;  %v1881_v50 = vadd.f32 %v8273_v24, %v1842_v38  ;;  %v1724_v41 = vmul.f32 %v8265_v10, %v1634_v52  ;;  %v1844_v53 = vadd.f32 %v1804_v16, %v1722_v29  ;;  %v1668_v14 = vpop.permute.xlu1 %1667 }
 0x5da   : > { %6653 = vtanh.f32 %v1877_v25  ;;  %v1882_v54 = vadd.f32 %v8273_v24, %v1843_v40  ;;  %v1725_v55 = vmul.f32 %v8265_v10, %v1638_v7  ;;  %v8325_v58 = vrot.slane %v1756_v45, %v8138_v34  ;;  %v1672_v56 = vpop.permute.xlu0 %1671 }
 0x5db   : > { %v6636_v15 = vpop.eup %6635  ;;  %6655 = vtanh.f32 %v1878_v32  ;;  %v1845_v63 = vadd.f32 %v1808_v47, %v1723_v44  ;;  %v3458_v59 = vadd.f32 %v6040_v51, %v8262_v62  ;;  %v1726_v52 = vmul.f32 %v8265_v10, %v1642_v21 }
 0x5dc   : > { %v6638_v20 = vpop.eup %6637  ;;  %6221 = vmatprep.mubr.msk.f32.mxu1 %vm1276_vm1, %v6636_v15  ;;  %6657 = vtanh.f32 %v1879_v39  ;;  %v1846_v4 = vadd.f32 %v1808_v47, %v1724_v41  ;;  %v1883_v15 = vadd.f32 %v8273_v24, %v1844_v53  ;;  %v1727_v16 = vmul.f32 %v8265_v10, %v1649_v28 }
 0x5dd   : > { %v6640_v12 = vpop.eup %6639  ;;  %6222 = vmatmul.mubr.msk.f32.vlgmr.msra.gmra.mrb[2].mxu1 %vm1276_vm1, %v6638_v20  ;;  %6659 = vtanh.f32 %v1880_v42  ;;  %v1812_v18 = vrot.slane %v8325_v58, %v8179_v60  ;;  %v1847_v19 = vadd.f32 %v1808_v47, %v1725_v55  ;;  %v1884_v62 = vadd.f32 %v8273_v24, %v1845_v63 }
 0x5de   : > { %6224 = vmatprep.mubr.msk.f32.mxu1 %vm1276_vm1, %v6640_v12  ;;  %v6642_v33 = vpop.eup %6641  ;;  %6661 = vtanh.f32 %v1881_v50  ;;  %v1728_v21 = vmul.f32 %v8265_v10, %v1653_v22  ;;  %v1729_v12 = vmul.f32 %v8265_v10, %v1657_v49  ;;  %v1848_v8 = vadd.f32 %v1808_v47, %v1726_v52  ;;  %v3546_v47 = vld [vmem:[#allocation22] sm:$0x1f] }
 0x5df   : > { %v6644_v36 = vpop.eup %6643  ;;  %6663 = vtanh.f32 %v1882_v54  ;;  %v1885_v23 = vadd.f32 %v8273_v24, %v1846_v4  ;;  %v1786_v27 = vcombine.high %v8307_v35, %v8307_v35  ;;  %v1849_v28 = vadd.f32 %v1812_v18, %v1727_v16 }
 0x5e0   : > { %v6646_v43 = vpop.eup %6645  ;;  %6665 = vtanh.f32 %v3458_v59  ;;  %v1886_v31 = vadd.f32 %v8273_v24, %v1847_v19  ;;  %v1731_v22 = vmul.f32 %v8265_v10, %v1668_v14  ;;  %v1850_v38 = vadd.f32 %v1812_v18, %v1728_v21 }
 0x5e1   : > { %6225 = vmatmul.mubr.msk.f32.gmra.mrb[4].mxu1 %vm1276_vm1, %v6642_v33  ;;  %v6648_v48 = vpop.eup %6647  ;;  %6667 = vtanh.f32 %v1883_v15  ;;  %v1676_v33 = vpop.permute.xlu1 %1675  ;;  %v1887_v39 = vadd.f32 %v8273_v24, %v1848_v8  ;;  %v1816_v35 = vrot.slane %v1786_v27, %v8179_v60  ;;  %v1851_v40 = vadd.f32 %v1812_v18, %v1729_v12 }
 0x5e2   : > { %6227 = vmatprep.mubr.msk.f32.mxu1 %vm1276_vm1, %v6644_v36  ;;  %v6650_v46 = vpop.eup %6649  ;;  %6669 = vtanh.f32 %v1884_v62  ;;  %v1730_v36 = vmul.f32 %v8265_v10, %v1661_v57  ;;  %v1888_v42 = vadd.f32 %v8273_v24, %v1849_v28  ;;  %v1732_v45 = vmul.f32 %v8265_v10, %v1672_v56 }
 0x5e3   : > { %v6652_v5 = vpop.eup %6651  ;;  %6671 = vtanh.f32 %v1885_v23  ;;  %v1889_v50 = vadd.f32 %v8273_v24, %v1850_v38  ;;  %v1733_v51 = vmul.f32 %v8265_v10, %v1676_v33  ;;  %v1788_v53 = vcombine.high %v8325_v58, %v8325_v58 }
 0x5e4   : > { %v6654_v7 = vpop.eup %6653  ;;  %6673 = vtanh.f32 %v1886_v31  ;;  %v1852_v49 = vadd.f32 %v1812_v18, %v1730_v36  ;;  %v1853_v54 = vadd.f32 %v1816_v35, %v1731_v22  ;;  %v1854_v58 = vadd.f32 %v1816_v35, %v1732_v45 }
 0x5e5   : > { %6228 = vmatmul.mubr.msk.f32.gmra.mrb[6].mxu1 %vm1276_vm1, %v6646_v43  ;;  %v6656_v20 = vpop.eup %6655  ;;  %v1680_v43 = vpop.permute.xlu0 %1679  ;;  %6675 = vtanh.f32 %v1887_v39  ;;  %v1855_v4 = vadd.f32 %v1816_v35, %v1733_v51  ;;  %v1820_v15 = vrot.slane %v1788_v53, %v8179_v60  ;;  %v3631_v51 = vld [vmem:[%s10295_s6 + $0x18] sm:$0xff]  ;;  %v8405_v53 = vld [vmem:[#allocation16] ss:$0 sm:$0xff] }
 0x5e6   : > { %6230 = vmatprep.mubr.msk.f32.mxu1 %vm1276_vm1, %v6648_v48  ;;  %v6658_v25 = vpop.eup %6657  ;;  %v1687_v41 = vpop.permute.xlu1 %1686  ;;  %6677 = vtanh.f32 %v1888_v42  ;;  %v1734_v63 = vmul.f32 %v8265_v10, %v1680_v43  ;;  %v1891_v59 = vadd.f32 %v8273_v24, %v1852_v49  ;;  %v1892_v14 = vadd.f32 %v8273_v24, %v1853_v54 }
 0x5e7   : > { %v6660_v32 = vpop.eup %6659  ;;  %6679 = vtanh.f32 %v1889_v50  ;;  %v1735_v52 = vmul.f32 %v8265_v10, %v1687_v41  ;;  %v1893_v19 = vadd.f32 %v8273_v24, %v1854_v58  ;;  %v1894_v21 = vadd.f32 %v8273_v24, %v1855_v4  ;;  %v3630_v50 = vld [vmem:[%s10295_s6 + $0x10] sm:$0xff] }
 0x5e8   : > { %v6662_v29 = vpop.eup %6661  ;;  %v1856_v62 = vadd.f32 %v1816_v35, %v1734_v63  ;;  %v6387_v41 = vpack.c.bf16 %v3631_v51, %v3630_v50 }
 0x5e9   : > { %6231 = vmatmul.mubr.msk.f32.gmra.mrb[8].mxu1 %vm1276_vm1, %v6650_v46  ;;  %v6664_v44 = vpop.eup %6663  ;;  %v1890_v46 = vadd.f32 %v8273_v24, %v1851_v40 }
 0x5ea   : > { %6233 = vmatprep.mubr.msk.f32.mxu1 %vm1276_vm1, %v6652_v5  ;;  %v6666_v48 = vpop.eup %6665  ;;  %v1691_v5 = vpop.permute.xlu0 %1690  ;;  %v1895_v23 = vadd.f32 %v8273_v24, %v1856_v62 }
 0x5eb   : > { %6283 = vmatmul.mubr.msk.f32.vlgmr.msra.gmra.mrb[6].mxu0 %vm1276_vm1, %v6666_v48  ;;  %v6668_v55 = vpop.eup %6667  ;;  %6681 = vtanh.f32 %v1890_v46  ;;  %v1695_v16 = vpop.permute.xlu1 %1694  ;;  %v3629_v48 = vld [vmem:[%s10295_s6 + $0x8] sm:$0xff] }
 0x5ec   : > { %6286 = vmatpush3.msk.msra.mxu0 %vm1474_vm4, %v3546_v47  ;;  %6287 = vmatprep.mubr.msk.f32.mxu0 %vm7602_vm0, %v7603_v1  ;;  %v6670_v57 = vpop.eup %6669  ;;  %6683 = vtanh.f32 %v1891_v59  ;;  %v1737_v56 = vmul.f32 %v8265_v10, %v1695_v16  ;;  %v3628_v47 = vld [vmem:[%s10295_s6] sm:$0xff] }
 0x5ed   : > { %6234 = vmatmul.mubr.msk.f32.gmra.mrb[10].mxu1 %vm1276_vm1, %v6654_v7  ;;  %6383 = vmatprep.subr.bf16.mxu0 %v7601_v0  ;;  %v6672_v7 = vpop.eup %6671  ;;  %6685 = vtanh.f32 %v1892_v14  ;;  %v6384_v49 = vpack.c.bf16 %v3629_v48, %v3628_v47 }
 0x5ee   : > { %6236 = vmatprep.mubr.msk.f32.mxu1 %vm1276_vm1, %v6656_v20  ;;  %v6674_v18 = vpop.eup %6673  ;;  %v1736_v20 = vmul.f32 %v8265_v10, %v1691_v5  ;;  %v1699_v12 = vpop.permute.xlu0 %1698  ;;  %6687 = vtanh.f32 %v1893_v19  ;;  %v1859_v31 = vadd.f32 %v1820_v15, %v1737_v56 }
 0x5ef   : > { %6288 = vmatmul.mubr.msk.f32.vlgmr.msra.gmra.mrb[8].mxu0 %vm1435_vm3, %v8211_v17  ;;  %v1857_v17 = vadd.f32 %v1820_v15, %v1735_v52  ;;  %v6676_v8 = vpop.eup %6675  ;;  %v1738_v27 = vmul.f32 %v8265_v10, %v1699_v12  ;;  %6689 = vtanh.f32 %v1894_v21 }
 0x5f0   : > { %6298 = vmatprep.mubr.msk.f32.mxu0 %vm7602_vm0, %v7603_v1  ;;  %v6678_v1 = vpop.eup %6677  ;;  %6691 = vtanh.f32 %v1895_v23  ;;  %v1898_v38 = vadd.f32 %v8273_v24, %v1859_v31  ;;  %6385 = vmatpush3.bf16.msra.mxu0 %v6384_v49 }
 0x5f1   : > { %6237 = vmatmul.mubr.msk.f32.gmra.mrb[12].mxu1 %vm1276_vm1, %v6658_v25  ;;  %v1858_v25 = vadd.f32 %v1820_v15, %v1736_v20  ;;  %v1896_v28 = vadd.f32 %v8273_v24, %v1857_v17  ;;  %v1860_v22 = vadd.f32 %v1820_v15, %v1738_v27  ;;  %6386 = vmatprep.subr.bf16.mxu0 %v7601_v0  ;;  %v8413_v15 = vld [vmem:[#allocation19] ss:$0 sm:$0xff] }
 0x5f2   : > { %6239 = vmatprep.mubr.msk.f32.mxu1 %vm1276_vm1, %v6660_v32  ;;  %v6680_v32 = vpop.eup %6679 }
 0x5f3   : > { %v1897_v36 = vadd.f32 %v8273_v24, %v1858_v25  ;;  %6693 = vtanh.f32 %v1896_v28 }
 0x5f4   : > { %6388 = vmatpush3.bf16.msra.mxu0 %v6387_v41  ;;  %v6043_v41 = vld [vmem:[%s10296_s11] ss:$0 sm:$0xff] }
 0x5f5   : > { %6240 = vmatmul.mubr.msk.f32.gmra.mrb[14].mxu1 %vm1276_vm1, %v6662_v29  ;;  %v6682_v33 = vpop.eup %6681  ;;  %6695 = vtanh.f32 %v1897_v36  ;;  %v1899_v29 = vadd.f32 %v8273_v24, %v1860_v22 }
 0x5f6   : > { %6242 = vmatprep.mubr.msk.f32.mxu1 %vm1276_vm1, %v6664_v44  ;;  %v6684_v10 = vpop.eup %6683  ;;  %6697 = vtanh.f32 %v1898_v38 }
 0x5f7   : > { %v6686_v39 = vpop.eup %6685  ;;  %6699 = vtanh.f32 %v1899_v29 }
 0x5f8   : > { %v6688_v35 = vpop.eup %6687 }
 0x5f9   : > { %6243 = vmatmul.mubr.msk.f32.gmra.mrb[16].mxu1 %vm1276_vm1, %v6668_v55  ;;  %v6690_v40 = vpop.eup %6689 }
 0x5fa   : > { %6245 = vmatprep.mubr.msk.f32.mxu1 %vm1276_vm1, %v6670_v57  ;;  %v6692_v42 = vpop.eup %6691 }
 0x5fd   : > { %6246 = vmatmul.mubr.msk.f32.gmra.mrb[18].mxu1 %vm1276_vm1, %v6672_v7  ;;  %v6694_v43 = vpop.eup %6693  ;;  %v8415_v7 = vld [vmem:[#allocation18] ss:$0 sm:$0xff] }
 0x5fe   : > { %6248 = vmatprep.mubr.msk.f32.mxu1 %vm1276_vm1, %v6674_v18 }
 0x5ff   : > { %v6696_v24 = vpop.eup %6695 }
 0x600   : > { %v6698_v44 = vpop.eup %6697 }
 0x601   : > { %6249 = vmatmul.mubr.msk.f32.gmra.mrb[20].mxu1 %vm1276_vm1, %v6676_v8  ;;  %v6700_v45 = vpop.eup %6699 }
 0x602   : > { %6251 = vmatprep.mubr.msk.f32.mxu1 %vm1276_vm1, %v6678_v1 }
 0x605   : > { %6252 = vmatmul.mubr.msk.f32.gmra.mrb[22].mxu1 %vm1276_vm1, %v6680_v32 }
 0x606   : > { %6254 = vmatprep.mubr.msk.f32.mxu1 %vm1276_vm1, %v6682_v33 }
 0x609   : > { %6255 = vmatmul.mubr.msk.f32.gmra.mrb[24].mxu1 %vm1276_vm1, %v6684_v10 }
 0x60a   : > { %6257 = vmatprep.mubr.msk.f32.mxu1 %vm1276_vm1, %v6686_v39 }
 0x60d   : > { %6258 = vmatmul.mubr.msk.f32.gmra.mrb[26].mxu1 %vm1276_vm1, %v6688_v35 }
 0x60e   : > { %6260 = vmatprep.mubr.msk.f32.mxu1 %vm1276_vm1, %v6690_v40 }
 0x611   : > { %6261 = vmatmul.mubr.msk.f32.gmra.mrb[28].mxu1 %vm1276_vm1, %v6692_v42 }
 0x612   : > { %6263 = vmatprep.mubr.msk.f32.mxu1 %vm1276_vm1, %v6694_v43 }
 0x615   : > { %6264 = vmatmul.mubr.msk.f32.gmra.mrb[30].mxu1 %vm1276_vm1, %v6696_v24 }
 0x616   : > { %6266 = vmatprep.mubr.msk.f32.mxu1 %vm1276_vm1, %v6698_v44 }
 0x619   : > { %6267 = vmatmul.mubr.msk.f32.gmra.mrb[32].mxu1 %vm1276_vm1, %v6700_v45 }
 0x6b0   : > { %v6223_v54 = vpop.f32.mrb[2].mxu1 }
 0x6b1   : > { %v2111_v46 = vadd.f32 %v6223_v54, %v8405_v53  ;;  %v2105_v55 = vpop.f32.mrb[3].mxu1 }
 0x6b2   : > { %v2106_v57 = vadd.f32 %v8405_v53, %v2105_v55 }
 0x6b3   : > { %6701 = vtanh.f32 %v2111_v46 }
 0x6b4   : > { %6703 = vtanh.f32 %v2106_v57  ;;  %v6226_v63 = vpop.f32.mrb[4].mxu1 }
 0x6b5   : > { %v2121_v5 = vadd.f32 %v6226_v63, %v8405_v53  ;;  %v2115_v58 = vpop.f32.mrb[5].mxu1 }
 0x6b6   : > { %v2116_v0 = vadd.f32 %v8405_v53, %v2115_v58 }
 0x6b7   : > { %6705 = vtanh.f32 %v2121_v5 }
 0x6b8   : > { %v6229_v59 = vpop.f32.mrb[6].mxu1  ;;  %6707 = vtanh.f32 %v2116_v0 }
 0x6b9   : > { %v2131_v52 = vadd.f32 %v6229_v59, %v8405_v53  ;;  %v2125_v14 = vpop.f32.mrb[7].mxu1 }
 0x6ba   : > { %v2126_v4 = vadd.f32 %v8405_v53, %v2125_v14 }
 0x6bb   : > { %6709 = vtanh.f32 %v2131_v52 }
 0x6bc   : > { %6711 = vtanh.f32 %v2126_v4  ;;  %v6232_v16 = vpop.f32.mrb[8].mxu1 }
 0x6bd   : > { %v6702_v18 = vpop.eup %6701  ;;  %v2141_v19 = vadd.f32 %v6232_v16, %v8405_v53  ;;  %v2135_v62 = vpop.f32.mrb[9].mxu1 }
 0x6be   : > { %v6704_v20 = vpop.eup %6703  ;;  %v2136_v21 = vadd.f32 %v8405_v53, %v2135_v62  ;;  %v2473_v17 = vmul.f32 %v6702_v18, %v8413_v15  ;;  %v2304_v56 = vmul.f32 %v6702_v18, %v8415_v7  ;;  %v3542_v0 = vpop.f32.mrb[6].mxu0  ;;  %v6045_v62 = vld [vmem:[#allocation24] ss:$0 sm:$0xff] }
 0x6bf   : > { %6713 = vtanh.f32 %v2141_v19  ;;  %v2472_v12 = vmul.f32 %v6704_v20, %v8413_v15  ;;  %v2303_v25 = vmul.f32 %v6704_v20, %v8415_v7  ;;  %v3543_v14 = vadd.f32 %v6043_v41, %v3542_v0  ;;  %v6284_v4 = vpop.f32.mrb[7].mxu0 }
 0x6c0   : > { %6715 = vtanh.f32 %v2136_v21  ;;  %v6235_v8 = vpop.f32.mrb[10].mxu1  ;;  %v2507_v1 = vsel %vm1276_vm1, %v2473_v17, 0.0  ;;  %v2338_v23 = vsel %vm1276_vm1, %v2304_v56, 0.0 }
 0x6c1   : > { %v6706_v27 = vpop.eup %6705  ;;  %v2151_v28 = vadd.f32 %v6235_v8, %v8405_v53  ;;  %2508 = vadd.xlane.f32.xlu0 %v2507_v1  ;;  %2339 = vadd.xlane.f32.xlu1 %v2338_v23  ;;  %v2145_v31 = vpop.f32.mrb[11].mxu1  ;;  %v2504_v38 = vsel %vm1276_vm1, %v2472_v12, 0.0  ;;  %v2335_v10 = vsel %vm1276_vm1, %v2303_v25, 0.0  ;;  %v5285_v12 = vcombine.high %v3543_v14, %v3543_v14 }
 0x6c2   : > { %v2146_v32 = vadd.f32 %v8405_v53, %v2145_v31  ;;  %v8428_v33 = vmul.f32 %v6706_v27, %v8415_v7  ;;  %v6708_v36 = vpop.eup %6707  ;;  %v2475_v39 = vmul.f32 %v6706_v27, %v8413_v15  ;;  %v5292_v8 = vrot.slane %v3543_v14, %v8138_v34  ;;  %v3623_v27 = vpop.f32.mrb[8].mxu0 }
 0x6c3   : > { %6717 = vtanh.f32 %v2151_v28  ;;  %v2474_v50 = vmul.f32 %v6708_v36, %v8413_v15  ;;  %v2305_v55 = vmul.f32 %v6708_v36, %v8415_v7 }
 0x6c4   : > { %6719 = vtanh.f32 %v2146_v32  ;;  %v6238_v22 = vpop.f32.mrb[12].mxu1  ;;  %v2513_v48 = vsel %vm1276_vm1, %v2475_v39, 0.0  ;;  %v3624_v39 = vadd.f32 %v6045_v62, %v3623_v27 }
 0x6c5   : > { %v6710_v29 = vpop.eup %6709  ;;  %v2161_v35 = vadd.f32 %v6238_v22, %v8405_v53  ;;  %2505 = vadd.xlane.f32.xlu1 %v2504_v38  ;;  %2336 = vadd.xlane.f32.xlu0 %v2335_v10  ;;  %v2155_v40 = vpop.f32.mrb[13].mxu1  ;;  %v2510_v16 = vsel %vm1276_vm1, %v2474_v50, 0.0  ;;  %v2341_v21 = vsel %vm1276_vm1, %v2305_v55, 0.0  ;;  %v5299_v22 = vrot.slane %v5285_v12, %v8138_v34 }
 0x6c6   : > { %v6712_v42 = vpop.eup %6711  ;;  %v2156_v43 = vadd.f32 %v8405_v53, %v2155_v40  ;;  %v2477_v24 = vmul.f32 %v6710_v29, %v8413_v15  ;;  %v8437_v44 = vmul.f32 %v6710_v29, %v8415_v7  ;;  %v5300_v38 = vcombine.high %v5292_v8, %v5292_v8  ;;  %v6289_v29 = vpop.f32.mrb[9].mxu0 }
 0x6c7   : > { %6721 = vtanh.f32 %v2161_v35  ;;  %v8440_v45 = vmul.f32 %v6712_v42, %v8415_v7  ;;  %v2476_v17 = vmul.f32 %v6712_v42, %v8413_v15  ;;  %v5308_v10 = vrot.slane %v5292_v8, %v8138_v34 }
 0x6c8   : > { %v6241_v47 = vpop.f32.mrb[14].mxu1  ;;  %v2519_v49 = vsel %vm1276_vm1, %v2477_v24, 0.0  ;;  %6723 = vtanh.f32 %v2156_v43 }
 0x6c9   : > { %v6714_v51 = vpop.eup %6713  ;;  %v2171_v54 = vadd.f32 %v6241_v47, %v8405_v53  ;;  %2514 = vadd.xlane.f32.xlu0 %v2513_v48  ;;  %2520 = vadd.xlane.f32.xlu1 %v2519_v49  ;;  %v2165_v46 = vpop.f32.mrb[15].mxu1  ;;  %v2516_v43 = vsel %vm1276_vm1, %v2476_v17, 0.0  ;;  %v5301_v47 = vcombine.high %v5299_v22, %v5299_v22  ;;  %v5315_v48 = vrot.slane %v5299_v22, %v8138_v34 }
 0x6ca   : > { %v6716_v57 = vpop.eup %6715  ;;  %v2166_v63 = vadd.f32 %v8405_v53, %v2165_v46  ;;  %v2479_v5 = vmul.f32 %v6714_v51, %v8413_v15  ;;  %v8451_v58 = vmul.f32 %v6714_v51, %v8415_v7  ;;  %v5322_v49 = vrot.slane %v5300_v38, %v8138_v34  ;;  %5342 = vst.msk [vmem:[%s8466_s9] sm:$0x1] %vm4709_vm5, %v5308_v10 }
 0x6cb   : > { %6725 = vtanh.f32 %v2171_v54  ;;  %v2478_v59 = vmul.f32 %v6716_v57, %v8413_v15  ;;  %v8455_v52 = vmul.f32 %v6716_v57, %v8415_v7  ;;  %v5330_v50 = vcombine.high %v5308_v10, %v5308_v10  ;;  %5346 = vst.msk [vmem:[%s8466_s9 + $0x10] sm:$0x1] %vm4709_vm5, %v5315_v48 }
 0x6cc   : > { %6727 = vtanh.f32 %v2166_v63  ;;  %v2525_v18 = vsel %vm1276_vm1, %v2479_v5, 0.0  ;;  %v6244_v20 = vpop.f32.mrb[16].mxu1  ;;  %v5329_v57 = vrot.slane %v5301_v47, %v8138_v34  ;;  %v5331_v63 = vcombine.high %v5315_v48, %v5315_v48  ;;  %5343 = vst.msk [vmem:[%s8466_s9 + $0x4] sm:$0x1] %vm4709_vm5, %v5322_v49 }
 0x6cd   : > { %v6718_v19 = vpop.eup %6717  ;;  %2511 = vadd.xlane.f32.xlu0 %v2510_v16  ;;  %2526 = vadd.xlane.f32.xlu1 %v2525_v18  ;;  %v2181_v1 = vadd.f32 %v6244_v20, %v8405_v53  ;;  %v2175_v23 = vpop.f32.mrb[17].mxu1  ;;  %v2522_v31 = vsel %vm1276_vm1, %v2478_v59, 0.0  ;;  %v5332_v5 = vcombine.high %v5322_v49, %v5322_v49  ;;  %5344 = vst.msk [vmem:[%s8466_s9 + $0x8] sm:$0x1] %vm4709_vm5, %v5330_v50 }
 0x6ce   : > { %v6720_v56 = vpop.eup %6719  ;;  %v2481_v25 = vmul.f32 %v6718_v19, %v8413_v15  ;;  %v2176_v28 = vadd.f32 %v8405_v53, %v2175_v23  ;;  %v8474_v36 = vmul.f32 %v6718_v19, %v8415_v7  ;;  %v5333_v4 = vcombine.high %v5329_v57, %v5329_v57  ;;  %5347 = vst.msk [vmem:[%s8466_s9 + $0x14] sm:$0x1] %vm4709_vm5, %v5329_v57 }
 0x6cf   : > { %v8471_v32 = vmul.f32 %v6720_v56, %v8415_v7  ;;  %6729 = vtanh.f32 %v2181_v1  ;;  %v2480_v24 = vmul.f32 %v6720_v56, %v8413_v15  ;;  %5345 = vst.msk [vmem:[%s8466_s9 + $0xc] sm:$0x1] %vm4709_vm5, %v5332_v5  ;;  %5348 = vst.msk [vmem:[%s8466_s9 + $0x18] sm:$0x1] %vm4709_vm5, %v5331_v63 }
 0x6d0   : > { %v6247_v40 = vpop.f32.mrb[18].mxu1  ;;  %v2531_v42 = vsel %vm1276_vm1, %v2481_v25, 0.0  ;;  %6731 = vtanh.f32 %v3624_v39  ;;  %5349 = vst.msk [vmem:[%s8466_s9 + $0x1c] sm:$0x1] %vm4709_vm5, %v5333_v4 }
 0x6d1   : > { %v6722_v35 = vpop.eup %6721  ;;  %2342 = vadd.xlane.f32.xlu0 %v2341_v21  ;;  %2523 = vadd.xlane.f32.xlu1 %v2522_v31  ;;  %v2185_v51 = vpop.f32.mrb[19].mxu1  ;;  %v2191_v41 = vadd.f32 %v6247_v40, %v8405_v53  ;;  %6733 = vtanh.f32 %v2176_v28  ;;  %v2528_v19 = vsel %vm1276_vm1, %v2480_v24, 0.0 }
 0x6d2   : > { %v2186_v54 = vadd.f32 %v8405_v53, %v2185_v51  ;;  %v2483_v46 = vmul.f32 %v6722_v35, %v8413_v15  ;;  %v6724_v55 = vpop.eup %6723  ;;  %v8513_v12 = vmul.f32 %v6722_v35, %v8415_v7 }
 0x6d3   : > { %6735 = vtanh.f32 %v2191_v41  ;;  %v2482_v21 = vmul.f32 %v6724_v55, %v8413_v15  ;;  %v8507_v17 = vmul.f32 %v6724_v55, %v8415_v7 }
 0x6d4   : > { %v6250_v59 = vpop.f32.mrb[20].mxu1  ;;  %6737 = vtanh.f32 %v2186_v54  ;;  %v2537_v20 = vsel %vm1276_vm1, %v2483_v46, 0.0 }
 0x6d5   : > { %v6726_v0 = vpop.eup %6725  ;;  %2532 = vadd.xlane.f32.xlu1 %v2531_v42  ;;  %2517 = vadd.xlane.f32.xlu0 %v2516_v43  ;;  %v2201_v16 = vadd.f32 %v6250_v59, %v8405_v53  ;;  %v2195_v18 = vpop.f32.mrb[21].mxu1  ;;  %v2534_v22 = vsel %vm1276_vm1, %v2482_v21, 0.0 }
 0x6d6   : > { %v6728_v14 = vpop.eup %6727  ;;  %v2196_v62 = vadd.f32 %v8405_v53, %v2195_v18  ;;  %v8516_v8 = vmul.f32 %v6726_v0, %v8415_v7  ;;  %v2485_v38 = vmul.f32 %v6726_v0, %v8413_v15 }
 0x6d7   : > { %6739 = vtanh.f32 %v2201_v16  ;;  %v2484_v56 = vmul.f32 %v6728_v14, %v8413_v15  ;;  %v8519_v23 = vmul.f32 %v6728_v14, %v8415_v7 }
 0x6d8   : > { %6741 = vtanh.f32 %v2196_v62  ;;  %v6253_v1 = vpop.f32.mrb[22].mxu1  ;;  %v2543_v41 = vsel %vm1276_vm1, %v2485_v38, 0.0 }
 0x6d9   : > { %2538 = vadd.xlane.f32.xlu1 %v2537_v20  ;;  %2529 = vadd.xlane.f32.xlu0 %v2528_v19  ;;  %v2211_v25 = vadd.f32 %v6253_v1, %v8405_v53  ;;  %v2205_v27 = vpop.f32.mrb[23].mxu1  ;;  %v6730_v28 = vpop.eup %6729  ;;  %v2540_v10 = vsel %vm1276_vm1, %v2484_v56, 0.0 }
 0x6da   : > { %v2206_v31 = vadd.f32 %v8405_v53, %v2205_v27  ;;  %v2487_v39 = vmul.f32 %v6730_v28, %v8413_v15  ;;  %v8528_v29 = vmul.f32 %v6730_v28, %v8415_v7  ;;  %v6732_v35 = vpop.eup %6731 }
 0x6db   : > { %6743 = vtanh.f32 %v2211_v25  ;;  %v6734_v42 = vpop.eup %6733  ;;  %6299 = vmatmul.mubr.msk.f32.vlgmr.msra.gmra.mrb[10].mxu0 %vm1276_vm1, %v6732_v35 }
 0x6dc   : > { %6745 = vtanh.f32 %v2206_v31  ;;  %v6256_v40 = vpop.f32.mrb[24].mxu1  ;;  %v2486_v49 = vmul.f32 %v6734_v42, %v8413_v15  ;;  %v8535_v50 = vmul.f32 %v6734_v42, %v8415_v7  ;;  %v2549_v54 = vsel %vm1276_vm1, %v2487_v39, 0.0 }
 0x6dd   : > { %2535 = vadd.xlane.f32.xlu0 %v2534_v22  ;;  %2541 = vadd.xlane.f32.xlu1 %v2540_v10  ;;  %v2221_v43 = vadd.f32 %v6256_v40, %v8405_v53  ;;  %v2215_v24 = vpop.f32.mrb[25].mxu1  ;;  %v6736_v47 = vpop.eup %6735 }
 0x6de   : > { %v2216_v48 = vadd.f32 %v8405_v53, %v2215_v24  ;;  %v6738_v51 = vpop.eup %6737  ;;  %v8540_v46 = vmul.f32 %v6736_v47, %v8415_v7  ;;  %v2546_v16 = vsel %vm1276_vm1, %v2486_v49, 0.0  ;;  %v2489_v18 = vmul.f32 %v6736_v47, %v8413_v15 }
 0x6df   : > { %6747 = vtanh.f32 %v2221_v43  ;;  %v2488_v57 = vmul.f32 %v6738_v51, %v8413_v15  ;;  %v8545_v59 = vmul.f32 %v6738_v51, %v8415_v7 }
 0x6e0   : > { %6749 = vtanh.f32 %v2216_v48  ;;  %v6259_v55 = vpop.f32.mrb[26].mxu1  ;;  %v2555_v22 = vsel %vm1276_vm1, %v2489_v18, 0.0 }
 0x6e1   : > { %2544 = vadd.xlane.f32.xlu0 %v2543_v41  ;;  %2550 = vadd.xlane.f32.xlu1 %v2549_v54  ;;  %v6740_v63 = vpop.eup %6739  ;;  %v2231_v5 = vadd.f32 %v6259_v55, %v8405_v53  ;;  %v2225_v0 = vpop.f32.mrb[27].mxu1  ;;  %v2552_v62 = vsel %vm1276_vm1, %v2488_v57, 0.0 }
 0x6e2   : > { %v6742_v14 = vpop.eup %6741  ;;  %v2226_v4 = vadd.f32 %v8405_v53, %v2225_v0  ;;  %v8551_v19 = vmul.f32 %v6740_v63, %v8415_v7  ;;  %v2491_v20 = vmul.f32 %v6740_v63, %v8413_v15 }
 0x6e3   : > { %6751 = vtanh.f32 %v2231_v5  ;;  %v8556_v21 = vmul.f32 %v6742_v14, %v8415_v7  ;;  %v2490_v38 = vmul.f32 %v6742_v14, %v8413_v15 }
 0x6e4   : > { %6753 = vtanh.f32 %v2226_v4  ;;  %v6262_v56 = vpop.f32.mrb[28].mxu1  ;;  %v2561_v39 = vsel %vm1276_vm1, %v2491_v20, 0.0 }
 0x6e5   : > { %2547 = vadd.xlane.f32.xlu0 %v2546_v16  ;;  %2553 = vadd.xlane.f32.xlu1 %v2552_v62  ;;  %v6744_v1 = vpop.eup %6743  ;;  %v2241_v25 = vadd.f32 %v6262_v56, %v8405_v53  ;;  %v2235_v27 = vpop.f32.mrb[29].mxu1  ;;  %v2558_v51 = vsel %vm1276_vm1, %v2490_v38, 0.0 }
 0x6e6   : > { %v6746_v28 = vpop.eup %6745  ;;  %v2236_v31 = vadd.f32 %v8405_v53, %v2235_v27  ;;  %v8563_v10 = vmul.f32 %v6744_v1, %v8415_v7  ;;  %v2493_v41 = vmul.f32 %v6744_v1, %v8413_v15 }
 0x6e7   : > { %6755 = vtanh.f32 %v2241_v25  ;;  %v2492_v35 = vmul.f32 %v6746_v28, %v8413_v15  ;;  %v8568_v40 = vmul.f32 %v6746_v28, %v8415_v7 }
 0x6e8   : > { %6757 = vtanh.f32 %v2236_v31  ;;  %v6265_v42 = vpop.f32.mrb[30].mxu1  ;;  %v2567_v62 = vsel %vm1276_vm1, %v2493_v41, 0.0 }
 0x6e9   : > { %2556 = vadd.xlane.f32.xlu0 %v2555_v22  ;;  %2562 = vadd.xlane.f32.xlu1 %v2561_v39  ;;  %v6748_v43 = vpop.eup %6747  ;;  %v2251_v24 = vadd.f32 %v6265_v42, %v8405_v53  ;;  %v2245_v47 = vpop.f32.mrb[31].mxu1  ;;  %v2564_v55 = vsel %vm1276_vm1, %v2492_v35, 0.0 }
 0x6ea   : > { %v6750_v48 = vpop.eup %6749  ;;  %v2246_v49 = vadd.f32 %v8405_v53, %v2245_v47  ;;  %v8575_v54 = vmul.f32 %v6748_v43, %v8415_v7  ;;  %v2495_v57 = vmul.f32 %v6748_v43, %v8413_v15 }
 0x6eb   : > { %6759 = vtanh.f32 %v2251_v24  ;;  %v8580_v63 = vmul.f32 %v6750_v48, %v8415_v7  ;;  %v2494_v20 = vmul.f32 %v6750_v48, %v8413_v15 }
 0x6ec   : > { %6761 = vtanh.f32 %v2246_v49  ;;  %v6268_v5 = vpop.f32.mrb[32].mxu1  ;;  %v2573_v1 = vsel %vm1276_vm1, %v2495_v57, 0.0 }
 0x6ed   : > { %2559 = vadd.xlane.f32.xlu0 %v2558_v51  ;;  %2565 = vadd.xlane.f32.xlu1 %v2564_v55  ;;  %v6752_v0 = vpop.eup %6751  ;;  %v2261_v14 = vadd.f32 %v6268_v5, %v8405_v53  ;;  %v2255_v4 = vpop.f32.mrb[33].mxu1  ;;  %v2570_v38 = vsel %vm1276_vm1, %v2494_v20, 0.0 }
 0x6ee   : > { %v6754_v16 = vpop.eup %6753  ;;  %v2256_v18 = vadd.f32 %v8405_v53, %v2255_v4  ;;  %v8587_v56 = vmul.f32 %v6752_v0, %v8415_v7  ;;  %v2497_v31 = vmul.f32 %v6752_v0, %v8413_v15 }
 0x6ef   : > { %6763 = vtanh.f32 %v2261_v14  ;;  %v2496_v25 = vmul.f32 %v6754_v16, %v8413_v15  ;;  %v8592_v27 = vmul.f32 %v6754_v16, %v8415_v7 }
 0x6f0   : > { %6765 = vtanh.f32 %v2256_v18  ;;  %v2579_v47 = vsel %vm1276_vm1, %v2497_v31, 0.0  ;;  %v2359_v31 = vsel %vm1276_vm1, %v8471_v32, 0.0 }
 0x6f1   : > { %2568 = vadd.xlane.f32.xlu0 %v2567_v62  ;;  %2574 = vadd.xlane.f32.xlu1 %v2573_v1  ;;  %v6756_v28 = vpop.eup %6755  ;;  %v2576_v39 = vsel %vm1276_vm1, %v2496_v25, 0.0 }
 0x6f2   : > { %v6758_v53 = vpop.eup %6757  ;;  %v8596_v22 = vmul.f32 %v6756_v28, %v8415_v7  ;;  %v2499_v35 = vmul.f32 %v6756_v28, %v8413_v15  ;;  %v2347_v28 = vsel %vm1276_vm1, %v8440_v45, 0.0  ;;  %v2365_v45 = vsel %vm1276_vm1, %v8507_v17, 0.0 }
 0x6f3   : > { %v2329_v42 = vmul.f32 %v6758_v53, %v8415_v7  ;;  %v2498_v41 = vmul.f32 %v6758_v53, %v8413_v15  ;;  %v2344_v53 = vsel %vm1276_vm1, %v8428_v33, 0.0  ;;  %v2362_v33 = vsel %vm1276_vm1, %v8474_v36, 0.0 }
 0x6f4   : > { %v2585_v51 = vsel %vm1276_vm1, %v2499_v35, 0.0  ;;  %v2377_v36 = vsel %vm1276_vm1, %v8535_v50, 0.0  ;;  %v2401_v17 = vsel %vm1276_vm1, %v8580_v63, 0.0  ;;  %v2383_v50 = vsel %vm1276_vm1, %v8545_v59, 0.0 }
 0x6f5   : > { %2571 = vadd.xlane.f32.xlu0 %v2570_v38  ;;  %2577 = vadd.xlane.f32.xlu1 %v2576_v39  ;;  %v6760_v43 = vpop.eup %6759  ;;  %v2582_v16 = vsel %vm1276_vm1, %v2498_v41, 0.0  ;;  %v2356_v38 = vsel %vm1276_vm1, %v8451_v58, 0.0  ;;  %v2371_v58 = vsel %vm1276_vm1, %v8519_v23, 0.0  ;;  %v2413_v32 = vsel %vm1276_vm1, %v2329_v42, 0.0 }
 0x6f6   : > { %v6762_v24 = vpop.eup %6761  ;;  %v2501_v48 = vmul.f32 %v6760_v43, %v8413_v15  ;;  %v8605_v49 = vmul.f32 %v6760_v43, %v8415_v7  ;;  %v2380_v23 = vsel %vm1276_vm1, %v8528_v29, 0.0  ;;  %v2407_v39 = vsel %vm1276_vm1, %v8592_v27, 0.0 }
 0x6f7   : > { %v2500_v55 = vmul.f32 %v6762_v24, %v8413_v15  ;;  %v2331_v57 = vmul.f32 %v6762_v24, %v8415_v7  ;;  %v2386_v35 = vsel %vm1276_vm1, %v8540_v46, 0.0  ;;  %v2389_v42 = vsel %vm1276_vm1, %v8556_v21, 0.0 }
 0x6f8   : > { %v2591_v1 = vsel %vm1276_vm1, %v2501_v48, 0.0  ;;  %v2392_v29 = vsel %vm1276_vm1, %v8551_v19, 0.0  ;;  %v2395_v27 = vsel %vm1276_vm1, %v8568_v40, 0.0  ;;  %v2398_v59 = vsel %vm1276_vm1, %v8563_v10, 0.0 }
 0x6f9   : > { %2580 = vadd.xlane.f32.xlu0 %v2579_v47  ;;  %2586 = vadd.xlane.f32.xlu1 %v2585_v51  ;;  %v6764_v5 = vpop.eup %6763  ;;  %v2588_v18 = vsel %vm1276_vm1, %v2500_v55, 0.0  ;;  %v2416_v46 = vsel %vm1276_vm1, %v8596_v22, 0.0  ;;  %v2404_v21 = vsel %vm1276_vm1, %v8575_v54, 0.0  ;;  %v2422_v19 = vsel %vm1276_vm1, %v8605_v49, 0.0 }
 0x6fa   : > { %v6766_v0 = vpop.eup %6765  ;;  %v2503_v14 = vmul.f32 %v6764_v5, %v8413_v15  ;;  %v8613_v4 = vmul.f32 %v6764_v5, %v8415_v7  ;;  %v2410_v40 = vsel %vm1276_vm1, %v8587_v56, 0.0  ;;  %v8675_v43 = vstv %s2600_s25 }
 0x6fb   : > { %v2502_v62 = vmul.f32 %v6766_v0, %v8413_v15  ;;  %v2333_v20 = vmul.f32 %v6766_v0, %v8415_v7  ;;  %v2353_v15 = vsel %vm1276_vm1, %v8455_v52, 0.0  ;;  %v2350_v7 = vsel %vm1276_vm1, %v8437_v44, 0.0 }
 0x6fc   : > { %v2597_v25 = vsel %vm1276_vm1, %v2503_v14, 0.0  ;;  %v2368_v44 = vsel %vm1276_vm1, %v8513_v12, 0.0  ;;  %v2374_v52 = vsel %vm1276_vm1, %v8516_v8, 0.0  ;;  %v2419_v8 = vsel %vm1276_vm1, %v2331_v57, 0.0 }
 0x6fd   : > { %2583 = vadd.xlane.f32.xlu0 %v2582_v16  ;;  %2589 = vadd.xlane.f32.xlu1 %v2588_v18  ;;  %v2594_v12 = vsel %vm1276_vm1, %v2502_v62, 0.0  ;;  %v2425_v63 = vsel %vm1276_vm1, %v2333_v20, 0.0 }
 0x701   : > { %2592 = vadd.xlane.f32.xlu0 %v2591_v1  ;;  %2598 = vadd.xlane.f32.xlu1 %v2597_v25 }
 0x705   : > { %2348 = vadd.xlane.f32.xlu0 %v2347_v28  ;;  %2345 = vadd.xlane.f32.xlu1 %v2344_v53  ;;  %v2988_v28 = vand.u32 127, %v1548_v26 }
 0x707   : > { %v3007_v26 = vadd.s32 4294967272, %v2988_v28 }
 0x709   : > { %2354 = vadd.xlane.f32.xlu0 %v2353_v15  ;;  %2351 = vadd.xlane.f32.xlu1 %v2350_v7 }
 0x70d   : > { %2360 = vadd.xlane.f32.xlu0 %v2359_v31  ;;  %2357 = vadd.xlane.f32.xlu1 %v2356_v38 }
 0x711   : > { %2363 = vadd.xlane.f32.xlu0 %v2362_v33  ;;  %2366 = vadd.xlane.f32.xlu1 %v2365_v45  ;;  %v2993_v45 = vadd.s32 4294967288, %v2988_v28 }
 0x715   : > { %2369 = vadd.xlane.f32.xlu0 %v2368_v44  ;;  %2375 = vadd.xlane.f32.xlu1 %v2374_v52  ;;  %v3000_v44 = vadd.s32 4294967280, %v2988_v28 }
 0x719   : > { %2372 = vadd.xlane.f32.xlu0 %v2371_v58  ;;  %2414 = vadd.xlane.f32.xlu1 %v2413_v32 }
 0x71d   : > { %2378 = vadd.xlane.f32.xlu0 %v2377_v36  ;;  %2402 = vadd.xlane.f32.xlu1 %v2401_v17 }
 0x721   : > { %2595 = vadd.xlane.f32.xlu0 %v2594_v12  ;;  %2420 = vadd.xlane.f32.xlu1 %v2419_v8 }
 0x725   : > { %2381 = vadd.xlane.f32.xlu0 %v2380_v23  ;;  %2408 = vadd.xlane.f32.xlu1 %v2407_v39  ;;  %v8702_v39 = vsub.s32 %v2988_v28, %v8135_v30 }
 0x729   : > { %2384 = vadd.xlane.f32.xlu0 %v2383_v50  ;;  %2426 = vadd.xlane.f32.xlu1 %v2425_v63  ;;  %v8705_v50 = vsub.s32 %v2993_v45, %v8135_v30 }
 0x72d   : > { %2387 = vadd.xlane.f32.xlu0 %v2386_v35 }
 0x731   : > { %2390 = vadd.xlane.f32.xlu0 %v2389_v42 }
 0x735   : > { %2393 = vadd.xlane.f32.xlu0 %v2392_v29 }
 0x739   : > { %2396 = vadd.xlane.f32.xlu0 %v2395_v27  ;;  %v8710_v27 = vsub.s32 %v3000_v44, %v8135_v30 }
 0x73d   : > { %2399 = vadd.xlane.f32.xlu0 %v2398_v59  ;;  %v8713_v59 = vsub.s32 %v3007_v26, %v8135_v30 }
 0x741   : > { %2417 = vadd.xlane.f32.xlu0 %v2416_v46 }
 0x745   : > { %2405 = vadd.xlane.f32.xlu0 %v2404_v21 }
 0x749   : > { %2423 = vadd.xlane.f32.xlu0 %v2422_v19 }
 0x74d   : > { %2411 = vadd.xlane.f32.xlu0 %v2410_v40 }
 0x74e   : > { %v2509_v10 = vpop.xlane.xlu0 %2508  ;;  %v8677_v24 = vpop.xlane.xlu1 %2339 }
 0x74f   : > { %v2603_v22 = vadd.f32 %v8675_v43, %v2509_v10 }
 0x751   : > { %v2636_v47 = vmul.f32 1.442695, %v2603_v22 }
 0x752   : > { %v2506_v48 = vpop.xlane.xlu1 %2505  ;;  %v8680_v54 = vpop.xlane.xlu0 %2336 }
 0x753   : > { %6767 = vpow2.f32 %v2636_v47  ;;  %v2602_v51 = vadd.f32 %v8675_v43, %v2506_v48 }
 0x755   : > { %v2634_v49 = vmul.f32 1.442695, %v2602_v51 }
 0x756   : > { %v2515_v41 = vpop.xlane.xlu0 %2514  ;;  %v2521_v55 = vpop.xlane.xlu1 %2520 }
 0x757   : > { %6769 = vpow2.f32 %v2634_v49  ;;  %v2605_v56 = vadd.f32 %v8675_v43, %v2515_v41  ;;  %v2607_v57 = vadd.f32 %v8675_v43, %v2521_v55 }
 0x759   : > { %v2640_v5 = vmul.f32 1.442695, %v2605_v56  ;;  %v2644_v0 = vmul.f32 1.442695, %v2607_v57 }
 0x75a   : > { %v2512_v14 = vpop.xlane.xlu0 %2511  ;;  %v2527_v16 = vpop.xlane.xlu1 %2526 }
 0x75b   : > { %6771 = vpow2.f32 %v2640_v5  ;;  %v2604_v18 = vadd.f32 %v8675_v43, %v2512_v14  ;;  %v2609_v62 = vadd.f32 %v8675_v43, %v2527_v16 }
 0x75c   : > { %6773 = vpow2.f32 %v2644_v0 }
 0x75d   : > { %v6768_v20 = vpop.eup %6767  ;;  %v2638_v1 = vmul.f32 1.442695, %v2604_v18  ;;  %v2648_v25 = vmul.f32 1.442695, %v2609_v62 }
 0x75e   : > { %v8688_v53 = vadd.f32 1e-10, %v6768_v20  ;;  %v8690_v15 = vpop.xlane.xlu0 %2342  ;;  %v2524_v7 = vpop.xlane.xlu1 %2523  ;;  %v4757_v40 = vrot.slane %v6768_v20, %v8705_v50 }
 0x75f   : > { %6775 = vpow2.f32 %v2638_v1  ;;  %v2608_v31 = vadd.f32 %v8675_v43, %v2524_v7 }
 0x760   : > { %6777 = vrsqrt.f32 %v8688_v53  ;;  %vm2739_vm9 = vcmp.eq.f32.partialorder %v8688_v53, inf  ;;  %vm2741_vm10 = vcmp.eq.f32.partialorder %v8688_v53, 0.0  ;;  %v2742_v55 = vand.u32 2147483648, %v8688_v53 }
 0x761   : > { %v6770_v38 = vpop.eup %6769  ;;  %6779 = vpow2.f32 %v2648_v25  ;;  %v2646_v33 = vmul.f32 1.442695, %v2608_v31 }
 0x762   : > { %v8694_v52 = vadd.f32 1e-10, %v6770_v38  ;;  %v2533_v58 = vpop.xlane.xlu1 %2532  ;;  %v2518_v32 = vpop.xlane.xlu0 %2517  ;;  %v4753_v21 = vrot.slane %v6770_v38, %v8702_v39 }
 0x763   : > { %6781 = vpow2.f32 %v2646_v33  ;;  %v2611_v36 = vadd.f32 %v8675_v43, %v2533_v58  ;;  %v2606_v17 = vadd.f32 %v8675_v43, %v2518_v32 }
 0x764   : > { %6783 = vrsqrt.f32 %v8694_v52  ;;  %vm2732_vm11 = vcmp.eq.f32.partialorder %v8694_v52, inf  ;;  %vm2734_vm12 = vcmp.eq.f32.partialorder %v8694_v52, 0.0  ;;  %v4758_v56 = vsel %vm2998_vm6, %v4757_v40, %v4753_v21 }
 0x765   : > { %v6772_v12 = vpop.eup %6771  ;;  %v2652_v8 = vmul.f32 1.442695, %v2611_v36  ;;  %v2642_v35 = vmul.f32 1.442695, %v2606_v17  ;;  %v2735_v20 = vand.u32 2147483648, %v8694_v52 }
 0x766   : > { %v8699_v23 = vpop.eup %6773  ;;  %v8707_v63 = vadd.f32 1e-10, %v6772_v12  ;;  %v2539_v42 = vpop.xlane.xlu1 %2538  ;;  %v4767_v57 = vrot.slane %v6772_v12, %v8713_v59 }
 0x767   : > { %v2530_v29 = vpop.xlane.xlu0 %2529  ;;  %v8716_v46 = vadd.f32 1e-10, %v8699_v23  ;;  %6785 = vpow2.f32 %v2652_v8  ;;  %v2613_v10 = vadd.f32 %v8675_v43, %v2539_v42  ;;  %v4776_v38 = vrot.slane %v8699_v23, %v8705_v50 }
 0x768   : > { %6787 = vrsqrt.f32 %v8707_v63  ;;  %v2610_v28 = vadd.f32 %v8675_v43, %v2530_v29  ;;  %vm2753_vm13 = vcmp.eq.f32.partialorder %v8707_v63, inf  ;;  %vm2755_vm14 = vcmp.eq.f32.partialorder %v8707_v63, 0.0 }
 0x769   : > { %v6776_v19 = vpop.eup %6775  ;;  %6789 = vrsqrt.f32 %v8716_v46  ;;  %v2656_v18 = vmul.f32 1.442695, %v2613_v10  ;;  %v2756_v44 = vand.u32 2147483648, %v8707_v63  ;;  %vm2767_vm15 = vcmp.eq.f32.partialorder %v8716_v46, inf }
 0x76a   : > { %v6778_v22 = vpop.eup %6777  ;;  %v8724_v47 = vadd.f32 1e-10, %v6776_v19  ;;  %v4762_v48 = vrot.slane %v6776_v19, %v8710_v27  ;;  %6791 = vpow2.f32 %v2642_v35  ;;  %v2542_v33 = vpop.xlane.xlu1 %2541  ;;  %v2650_v12 = vmul.f32 1.442695, %v2610_v28 }
 0x76b   : > { %v2536_v51 = vpop.xlane.xlu0 %2535  ;;  %v8727_v49 = vpop.eup %6779  ;;  %v2738_v41 = vmul.f32 %v6778_v22, %v8688_v53  ;;  %v2614_v8 = vadd.f32 %v8675_v43, %v2542_v33  ;;  %vm2769_vm0 = vcmp.eq.f32.partialorder %v8716_v46, 0.0  ;;  %v2770_v40 = vand.u32 2147483648, %v8716_v46 }
 0x76c   : > { %6793 = vrsqrt.f32 %v8724_v47  ;;  %v4763_v14 = vsel %vm3005_vm7, %v4762_v48, %v4758_v56  ;;  %v8748_v16 = vadd.f32 1e-10, %v8727_v49  ;;  %v2612_v26 = vadd.f32 %v8675_v43, %v2536_v51 }
 0x76d   : > { %v8741_v5 = vpop.eup %6781  ;;  %v2740_v0 = vsel %vm2739_vm9, %v8688_v53, %v2738_v41  ;;  %v4768_v1 = vsel %vm3012_vm8, %v4767_v57, %v4763_v14  ;;  %vm2746_vm4 = vcmp.eq.f32.partialorder %v8724_v47, inf  ;;  %vm2748_vm9 = vcmp.eq.f32.partialorder %v8724_v47, 0.0 }
 0x76e   : > { %v6784_v62 = vpop.eup %6783  ;;  %v8753_v25 = vadd.f32 1e-10, %v8741_v5  ;;  %4910 = vst.msk [vmem:[%s8738_s8 + $0x1] sm:$0x1] %vm4709_vm5, %v4768_v1  ;;  %6795 = vrsqrt.f32 %v8748_v16  ;;  %v2743_v45 = vsel %vm2741_vm10, %v2742_v55, %v2740_v0  ;;  %v2654_v51 = vmul.f32 1.442695, %v2612_v26 }
 0x76f   : > { %v2545_v7 = vpop.xlane.xlu0 %2544  ;;  %v2731_v31 = vmul.f32 %v6784_v62, %v8694_v52  ;;  %v2997_v42 = vrot.slane %v2743_v45, %v8705_v50  ;;  %v2658_v56 = vmul.f32 1.442695, %v2614_v8  ;;  %vm2781_vm10 = vcmp.eq.f32.partialorder %v8748_v16, inf }
 0x770   : > { %6797 = vrsqrt.f32 %v8753_v25  ;;  %v4781_v1 = vrot.slane %v8741_v5, %v8710_v27  ;;  %v2615_v45 = vadd.f32 %v8675_v43, %v2545_v7 }
 0x771   : > { %v8768_v58 = vpop.eup %6785  ;;  %v2733_v32 = vsel %vm2732_vm11, %v8694_v52, %v2731_v31  ;;  %6799 = vpow2.f32 %v2656_v18  ;;  %v2749_v18 = vand.u32 2147483648, %v8724_v47  ;;  %vm2783_vm11 = vcmp.eq.f32.partialorder %v8748_v16, 0.0 }
 0x772   : > { %v6788_v36 = vpop.eup %6787  ;;  %v2736_v53 = vsel %vm2734_vm12, %v2735_v20, %v2733_v32  ;;  %v8778_v17 = vadd.f32 1e-10, %v8768_v58  ;;  %v4786_v20 = vrot.slane %v8727_v49, %v8713_v59  ;;  %vm2774_vm12 = vcmp.eq.f32.partialorder %v8753_v25, inf }
 0x773   : > { %v8781_v23 = vpop.xlane.xlu0 %2547  ;;  %v6790_v35 = vpop.eup %6789  ;;  %v2992_v29 = vrot.slane %v2736_v53, %v8702_v39  ;;  %v2752_v21 = vmul.f32 %v6788_v36, %v8707_v63 }
 0x774   : > { %v6792_v19 = vpop.eup %6791  ;;  %v2766_v52 = vmul.f32 %v6790_v35, %v8716_v46  ;;  %6801 = vrsqrt.f32 %v8778_v17 }
 0x775   : > { %v2999_v10 = vsel %vm2998_vm6, %v2997_v42, %v2992_v29  ;;  %v2754_v22 = vsel %vm2753_vm13, %v8707_v63, %v2752_v21  ;;  %v8795_v48 = vadd.f32 1e-10, %v6792_v19  ;;  %v4772_v55 = vrot.slane %v6792_v19, %v8702_v39  ;;  %v2551_v63 = vpop.xlane.xlu1 %2550 }
 0x776   : > { %v6794_v41 = vpop.eup %6793  ;;  %6803 = vpow2.f32 %v2650_v12  ;;  %v2757_v0 = vsel %vm2755_vm14, %v2756_v44, %v2754_v22  ;;  %v2768_v62 = vsel %vm2767_vm15, %v8716_v46, %v2766_v52  ;;  %v2660_v12 = vmul.f32 1.442695, %v2615_v45 }
 0x777   : > { %v8799_v57 = vpop.xlane.xlu0 %2556  ;;  %v2745_v14 = vmul.f32 %v6794_v41, %v8724_v47  ;;  %6805 = vrsqrt.f32 %v8795_v48  ;;  %v4777_v33 = vsel %vm2998_vm6, %v4776_v38, %v4772_v55  ;;  %v3011_v32 = vrot.slane %v2757_v0, %v8713_v59 }
 0x778   : > { %v6796_v28 = vpop.eup %6795  ;;  %6807 = vpow2.f32 %v2654_v51  ;;  %v4782_v5 = vsel %vm3005_vm7, %v4781_v1, %v4777_v33  ;;  %v8830_v38 = vsel %vm2769_vm0, %v2770_v40, %v2768_v62  ;;  %v2617_v42 = vadd.f32 %v8675_v43, %v2551_v63 }
 0x779   : > { %v2747_v31 = vsel %vm2746_vm4, %v8724_v47, %v2745_v14  ;;  %6809 = vpow2.f32 %v2658_v56  ;;  %v4787_v53 = vsel %vm3012_vm8, %v4786_v20, %v4782_v5  ;;  %v2780_v47 = vmul.f32 %v6796_v28, %v8748_v16  ;;  %v2554_v22 = vpop.xlane.xlu1 %2553 }
 0x77a   : > { %v6798_v44 = vpop.eup %6797  ;;  %v2750_v49 = vsel %vm2748_vm9, %v2749_v18, %v2747_v31  ;;  %4911 = vst.msk [vmem:[%s8738_s8 + $0x5] sm:$0x1] %vm4709_vm5, %v4787_v53  ;;  %v2784_v29 = vand.u32 2147483648, %v8748_v16  ;;  %6811 = vpow2.f32 %v2660_v12  ;;  %vm2776_vm13 = vcmp.eq.f32.partialorder %v8753_v25, 0.0 }
 0x77b   : > { %v8824_v26 = vpop.xlane.xlu0 %2559  ;;  %v8826_v36 = vpop.eup %6799  ;;  %v3004_v7 = vrot.slane %v2750_v49, %v8710_v27  ;;  %v2773_v8 = vmul.f32 %v6798_v44, %v8753_v25  ;;  %v2777_v52 = vand.u32 2147483648, %v8753_v25  ;;  %v4795_v40 = vrot.slane %v8768_v58, %v8705_v50 }
 0x77c   : > { %v8839_v35 = vadd.f32 1e-10, %v8826_v36  ;;  %vm2795_vm14 = vcmp.eq.f32.partialorder %v8778_v17, inf  ;;  %v2798_v41 = vand.u32 2147483648, %v8778_v17  ;;  %v2782_v56 = vsel %vm2781_vm10, %v8748_v16, %v2780_v47 }
 0x77d   : > { %v3006_v46 = vsel %vm3005_vm7, %v3004_v7, %v2999_v10  ;;  %v3021_v10 = vrot.slane %v8830_v38, %v8705_v50  ;;  %v2775_v0 = vsel %vm2774_vm12, %v8753_v25, %v2773_v8  ;;  %vm3147_vm15 = vcmask 1041409   ;;  %v2563_v38 = vpop.xlane.xlu1 %2562 }
 0x77e   : > { %v6802_v21 = vpop.eup %6801  ;;  %v8846_v19 = vsel %vm3012_vm8, %v3011_v32, %v3006_v46  ;;  %6813 = vrsqrt.f32 %v8839_v35  ;;  %v2664_v14 = vmul.f32 1.442695, %v2617_v42  ;;  %vm2760_vm0 = vcmp.eq.f32.partialorder %v8795_v48, inf }
 0x77f   : > { %v8852_v51 = vpop.xlane.xlu0 %2568  ;;  %v2794_v58 = vmul.f32 %v6802_v21, %v8778_v17  ;;  %vm2762_vm4 = vcmp.eq.f32.partialorder %v8795_v48, 0.0  ;;  %v2763_v62 = vand.u32 2147483648, %v8795_v48  ;;  %v2616_v28 = vadd.f32 %v8675_v43, %v8781_v23 }
 0x780   : > { %v6804_v55 = vpop.eup %6803  ;;  %6815 = vpow2.f32 %v2664_v14  ;;  %v2785_v45 = vsel %vm2783_vm11, %v2784_v29, %v2782_v56  ;;  %v2778_v44 = vsel %vm2776_vm13, %v2777_v52, %v2775_v0  ;;  %v4805_v32 = vrot.slane %v8826_v36, %v8713_v59 }
 0x781   : > { %v6806_v18 = vpop.eup %6805  ;;  %v8867_v20 = vadd.f32 1e-10, %v6804_v55  ;;  %v4791_v63 = vrot.slane %v6804_v55, %v8702_v39  ;;  %v2796_v23 = vsel %vm2795_vm14, %v8778_v17, %v2794_v58  ;;  %v2618_v25 = vadd.f32 %v8675_v43, %v2554_v22 }
 0x782   : > { %v2759_v1 = vmul.f32 %v6806_v18, %v8795_v48  ;;  %v6808_v33 = vpop.eup %6807  ;;  %v2619_v12 = vadd.f32 %v8675_v43, %v8799_v57  ;;  %v2662_v42 = vmul.f32 1.442695, %v2616_v28  ;;  %v3026_v29 = vrot.slane %v2778_v44, %v8710_v27 }
 0x783   : > { %v8873_v31 = vpop.xlane.xlu0 %2571  ;;  %6817 = vrsqrt.f32 %v8867_v20  ;;  %v8882_v49 = vpop.eup %6809  ;;  %v8890_v16 = vadd.f32 1e-10, %v6808_v33  ;;  %v4800_v7 = vrot.slane %v6808_v33, %v8710_v27  ;;  %v4796_v8 = vsel %vm2998_vm6, %v4795_v40, %v4791_v63 }
 0x784   : > { %v2761_v5 = vsel %vm2760_vm0, %v8795_v48, %v2759_v1  ;;  %v8897_v53 = vadd.f32 1e-10, %v8882_v49  ;;  %v8906_v48 = vpop.eup %6811  ;;  %vm2797_vm9 = vcmp.eq.f32.partialorder %v8778_v17, 0.0  ;;  %v3031_v57 = vrot.slane %v2785_v45, %v8713_v59 }
 0x785   : > { %v2764_v36 = vsel %vm2762_vm4, %v2763_v62, %v2761_v5  ;;  %6819 = vrsqrt.f32 %v8890_v16  ;;  %v4801_v21 = vsel %vm3005_vm7, %v4800_v7, %v4796_v8  ;;  %v2799_v52 = vsel %vm2797_vm9, %v2798_v41, %v2796_v23 }
 0x786   : > { %v3017_v47 = vrot.slane %v2764_v36, %v8702_v39  ;;  %6821 = vrsqrt.f32 %v8897_v53  ;;  %v4806_v22 = vsel %vm3012_vm8, %v4805_v32, %v4801_v21  ;;  %vm2809_vm10 = vcmp.eq.f32.partialorder %v8839_v35, inf }
 0x787   : > { %v8904_v46 = vpop.xlane.xlu0 %2580  ;;  %4912 = vst.msk [vmem:[%s8738_s8 + $0x9] sm:$0x1] %vm4709_vm5, %v4806_v22  ;;  %v8920_v17 = vadd.f32 1e-10, %v8906_v48  ;;  %vm2811_vm11 = vcmp.eq.f32.partialorder %v8839_v35, 0.0  ;;  %6823 = vpow2.f32 %v2662_v42  ;;  %v3040_v18 = vrot.slane %v2799_v52, %v8705_v50 }
 0x788   : > { %v3022_v40 = vsel %vm2998_vm6, %v3021_v10, %v3017_v47  ;;  %v6814_v55 = vpop.eup %6813  ;;  %v2666_v41 = vmul.f32 1.442695, %v2618_v25  ;;  %v2668_v58 = vmul.f32 1.442695, %v2619_v12  ;;  %v2566_v10 = vpop.xlane.xlu1 %2565  ;;  %v2812_v62 = vand.u32 2147483648, %v8839_v35 }
 0x789   : > { %v3027_v56 = vsel %vm3005_vm7, %v3026_v29, %v3022_v40  ;;  %6825 = vrsqrt.f32 %v8920_v17  ;;  %v2808_v28 = vmul.f32 %v6814_v55, %v8839_v35  ;;  %vm2788_vm12 = vcmp.eq.f32.partialorder %v8867_v20, inf }
 0x78a   : > { %v3032_v0 = vsel %vm3012_vm8, %v3031_v57, %v3027_v56  ;;  %v8933_v63 = vpop.eup %6815  ;;  %vm2790_vm13 = vcmp.eq.f32.partialorder %v8867_v20, 0.0  ;;  %v2791_v33 = vand.u32 2147483648, %v8867_v20  ;;  %vm2802_vm14 = vcmp.eq.f32.partialorder %v8890_v16, inf }
 0x78b   : > { %v8924_v14 = vpop.xlane.xlu0 %2583  ;;  %v8930_v1 = vsel %vm3147_vm15, %v3032_v0, %v8846_v19  ;;  %v4810_v44 = vrot.slane %v8882_v49, %v8702_v39  ;;  %v8943_v19 = vadd.f32 1e-10, %v8933_v63  ;;  %6827 = vpow2.f32 %v2666_v41 }
 0x78c   : > { %vm3149_vm15 = vcmask 1042434   ;;  %6829 = vpow2.f32 %v2668_v58  ;;  %v2621_v23 = vadd.f32 %v8675_v43, %v2563_v38  ;;  %v2620_v5 = vadd.f32 %v8675_v43, %v8824_v26  ;;  %v2575_v47 = vpop.xlane.xlu1 %2574 }
 0x78d   : > { %v6818_v45 = vpop.eup %6817  ;;  %vm2804_vm0 = vcmp.eq.f32.partialorder %v8890_v16, 0.0  ;;  %v2805_v36 = vand.u32 2147483648, %v8890_v16  ;;  %vm2816_vm4 = vcmp.eq.f32.partialorder %v8897_v53, inf  ;;  %6831 = vrsqrt.f32 %v8943_v19 }
 0x78e   : > { %v2787_v32 = vmul.f32 %v6818_v45, %v8867_v20  ;;  %v2810_v7 = vsel %vm2809_vm10, %v8839_v35, %v2808_v28  ;;  %v2672_v26 = vmul.f32 1.442695, %v2621_v23  ;;  %v2670_v12 = vmul.f32 1.442695, %v2620_v5 }
 0x78f   : > { %v8949_v25 = vpop.xlane.xlu0 %2592  ;;  %v6820_v49 = vpop.eup %6819  ;;  %vm2818_vm9 = vcmp.eq.f32.partialorder %v8897_v53, 0.0  ;;  %v4814_v21 = vrot.slane %v8906_v48, %v8705_v50  ;;  %v2819_v40 = vand.u32 2147483648, %v8897_v53  ;;  %vm2823_vm10 = vcmp.eq.f32.partialorder %v8920_v17, inf }
 0x790   : > { %v2789_v38 = vsel %vm2788_vm12, %v8867_v20, %v2787_v32  ;;  %v6822_v8 = vpop.eup %6821  ;;  %v2801_v29 = vmul.f32 %v6820_v49, %v8890_v16  ;;  %6833 = vpow2.f32 %v2672_v26  ;;  %v2813_v20 = vsel %vm2811_vm11, %v2812_v62, %v2810_v7  ;;  %v8995_v5 = vpop.xlane.xlu1 %2577 }
 0x791   : > { %v2792_v42 = vsel %vm2790_vm13, %v2791_v33, %v2789_v38  ;;  %v2815_v52 = vmul.f32 %v6822_v8, %v8897_v53  ;;  %6835 = vpow2.f32 %v2670_v12  ;;  %v6824_v48 = vpop.eup %6823  ;;  %v2826_v35 = vand.u32 2147483648, %v8920_v17 }
 0x792   : > { %v3036_v57 = vrot.slane %v2792_v42, %v8702_v39  ;;  %v2803_v55 = vsel %vm2802_vm14, %v8890_v16, %v2801_v29  ;;  %v4815_v28 = vsel %vm2998_vm6, %v4814_v21, %v4810_v44  ;;  %v8987_v33 = vadd.f32 1e-10, %v6824_v48 }
 0x793   : > { %v8970_v22 = vpop.xlane.xlu0 %2348  ;;  %v2806_v0 = vsel %vm2804_vm0, %v2805_v36, %v2803_v55  ;;  %v2817_v41 = vsel %vm2816_vm4, %v8897_v53, %v2815_v52  ;;  %v6826_v58 = vpop.eup %6825  ;;  %v4819_v45 = vrot.slane %v6824_v48, %v8710_v27  ;;  %v4824_v32 = vrot.slane %v8933_v63, %v8713_v59 }
 0x794   : > { %v3041_v56 = vsel %vm2998_vm6, %v3040_v18, %v3036_v57  ;;  %v3045_v62 = vrot.slane %v2806_v0, %v8710_v27  ;;  %v3050_v18 = vrot.slane %v2813_v20, %v8713_v59  ;;  %v2822_v16 = vmul.f32 %v6826_v58, %v8920_v17  ;;  %v2587_v0 = vpop.xlane.xlu1 %2586 }
 0x795   : > { %v2622_v23 = vadd.f32 %v8675_v43, %v2566_v10  ;;  %v6828_v49 = vpop.eup %6827  ;;  %v2820_v7 = vsel %vm2818_vm9, %v2819_v40, %v2817_v41  ;;  %6837 = vrsqrt.f32 %v8987_v33  ;;  %v2623_v38 = vadd.f32 %v8675_v43, %v8852_v51 }
 0x796   : > { %v3046_v44 = vsel %vm3005_vm7, %v3045_v62, %v3041_v56  ;;  %v6830_v26 = vpop.eup %6829  ;;  %v2824_v10 = vsel %vm2823_vm10, %v8920_v17, %v2822_v16  ;;  %vm2825_vm11 = vcmp.eq.f32.partialorder %v8920_v17, 0.0  ;;  %v4820_v12 = vsel %vm3005_vm7, %v4819_v45, %v4815_v28 }
 0x797   : > { %v8997_v36 = vpop.xlane.xlu0 %2354  ;;  %v3051_v63 = vsel %vm3012_vm8, %v3050_v18, %v3046_v44  ;;  %v6832_v8 = vpop.eup %6831  ;;  %v2827_v42 = vsel %vm2825_vm11, %v2826_v35, %v2824_v10  ;;  %v4825_v29 = vsel %vm3012_vm8, %v4824_v32, %v4820_v12  ;;  %v9016_v51 = vadd.f32 1e-10, %v6828_v49 }
 0x798   : > { %v9013_v53 = vsel %vm3149_vm15, %v3051_v63, %v8930_v1  ;;  %v3055_v21 = vrot.slane %v2820_v7, %v8702_v39  ;;  %v3059_v57 = vrot.slane %v2827_v42, %v8705_v50  ;;  %4913 = vst.msk [vmem:[%s8738_s8 + $0xd] sm:$0x1] %vm4709_vm5, %v4825_v29  ;;  %v9022_v52 = vadd.f32 1e-10, %v6830_v26 }
 0x799   : > { %v2674_v17 = vmul.f32 1.442695, %v2622_v23  ;;  %v2836_v20 = vmul.f32 %v6832_v8, %v8943_v19  ;;  %6839 = vrsqrt.f32 %v9016_v51  ;;  %v2676_v1 = vmul.f32 1.442695, %v2623_v38 }
 0x79a   : > { %v6834_v55 = vpop.eup %6833  ;;  %v3060_v48 = vsel %vm2998_vm6, %v3059_v57, %v3055_v21  ;;  %6841 = vrsqrt.f32 %v9022_v52  ;;  %v2625_v56 = vadd.f32 %v8675_v43, %v2575_v47  ;;  %vm2837_vm12 = vcmp.eq.f32.partialorder %v8943_v19, inf }
 0x79b   : > { %v9024_v40 = vpop.xlane.xlu0 %2360  ;;  %v6836_v41 = vpop.eup %6835  ;;  %vm2839_vm13 = vcmp.eq.f32.partialorder %v8943_v19, 0.0  ;;  %v4833_v35 = vrot.slane %v6830_v26, %v8705_v50  ;;  %v2840_v58 = vand.u32 2147483648, %v8943_v19  ;;  %v9035_v62 = vadd.f32 1e-10, %v6834_v55 }
 0x79c   : > { %v9037_v28 = vadd.f32 1e-10, %v6836_v41  ;;  %6843 = vpow2.f32 %v2674_v17  ;;  %v2838_v18 = vsel %vm2837_vm12, %v8943_v19, %v2836_v20  ;;  %vm3151_vm14 = vcmask 1043459  }
 0x79d   : > { %v4829_v47 = vrot.slane %v6828_v49, %v8702_v39  ;;  %v4838_v16 = vrot.slane %v6836_v41, %v8710_v27  ;;  %6845 = vpow2.f32 %v2676_v1  ;;  %vm2830_vm15 = vcmp.eq.f32.partialorder %v8987_v33, inf }
 0x79e   : > { %6847 = vrsqrt.f32 %v9035_v62  ;;  %v2680_v32 = vmul.f32 1.442695, %v2625_v56  ;;  %v2624_v23 = vadd.f32 %v8675_v43, %v8873_v31  ;;  %vm2832_vm0 = vcmp.eq.f32.partialorder %v8987_v33, 0.0  ;;  %v9057_v31 = vpop.xlane.xlu1 %2589 }
 0x79f   : > { %v9039_v45 = vpop.xlane.xlu0 %2363  ;;  %v6838_v44 = vpop.eup %6837  ;;  %v4834_v7 = vsel %vm2998_vm6, %v4833_v35, %v4829_v47  ;;  %v4843_v38 = vrot.slane %v6834_v55, %v8713_v59  ;;  %6849 = vrsqrt.f32 %v9037_v28  ;;  %v2841_v49 = vsel %vm2839_vm13, %v2840_v58, %v2838_v18 }
 0x7a0   : > { %v2829_v26 = vmul.f32 %v6838_v44, %v8987_v33  ;;  %v2833_v63 = vand.u32 2147483648, %v8987_v33  ;;  %v4839_v10 = vsel %vm3005_vm7, %v4838_v16, %v4834_v7  ;;  %vm2844_vm4 = vcmp.eq.f32.partialorder %v9016_v51, inf }
 0x7a1   : > { %vm2846_vm9 = vcmp.eq.f32.partialorder %v9016_v51, 0.0  ;;  %v2847_v8 = vand.u32 2147483648, %v9016_v51  ;;  %v4844_v42 = vsel %vm3012_vm8, %v4843_v38, %v4839_v10  ;;  %vm2851_vm10 = vcmp.eq.f32.partialorder %v9022_v52, inf }
 0x7a2   : > { %v2831_v19 = vsel %vm2830_vm15, %v8987_v33, %v2829_v26  ;;  %vm2853_vm11 = vcmp.eq.f32.partialorder %v9022_v52, 0.0  ;;  %4914 = vst.msk [vmem:[%s8738_s8 + $0x11] sm:$0x1] %vm4709_vm5, %v4844_v42  ;;  %v2678_v29 = vmul.f32 1.442695, %v2624_v23  ;;  %v3069_v57 = vrot.slane %v2841_v49, %v8713_v59  ;;  %v9094_v44 = vpop.xlane.xlu1 %2598 }
 0x7a3   : > { %v9059_v12 = vpop.xlane.xlu0 %2369  ;;  %v6840_v21 = vpop.eup %6839  ;;  %v2834_v17 = vsel %vm2832_vm0, %v2833_v63, %v2831_v19  ;;  %v2854_v20 = vand.u32 2147483648, %v9022_v52  ;;  %vm2865_vm12 = vcmp.eq.f32.partialorder %v9035_v62, inf  ;;  %vm2867_vm13 = vcmp.eq.f32.partialorder %v9035_v62, 0.0 }
 0x7a4   : > { %v6842_v1 = vpop.eup %6841  ;;  %v3064_v55 = vrot.slane %v2834_v17, %v8710_v27  ;;  %v2843_v56 = vmul.f32 %v6840_v21, %v9016_v51  ;;  %6851 = vpow2.f32 %v2680_v32  ;;  %v2626_v33 = vadd.f32 %v8675_v43, %v8995_v5 }
 0x7a5   : > { %v2850_v35 = vmul.f32 %v6842_v1, %v9022_v52  ;;  %6853 = vpow2.f32 %v2678_v29  ;;  %v2627_v58 = vadd.f32 %v8675_v43, %v8904_v46  ;;  %v2629_v32 = vadd.f32 %v8675_v43, %v2587_v0 }
 0x7a6   : > { %v6844_v18 = vpop.eup %6843  ;;  %v3065_v47 = vsel %vm3005_vm7, %v3064_v55, %v3060_v48  ;;  %v2845_v16 = vsel %vm2844_vm4, %v9016_v51, %v2843_v56  ;;  %v2628_v23 = vadd.f32 %v8675_v43, %v8924_v14  ;;  %v2682_v38 = vmul.f32 1.442695, %v2626_v33  ;;  %v2346_v55 = vpop.xlane.xlu1 %2345 }
 0x7a7   : > { %v9080_v41 = vpop.xlane.xlu0 %2372  ;;  %v6846_v7 = vpop.eup %6845  ;;  %v3070_v5 = vsel %vm3012_vm8, %v3069_v57, %v3065_v47  ;;  %v2848_v46 = vsel %vm2846_vm9, %v2847_v8, %v2845_v16  ;;  %v2852_v48 = vsel %vm2851_vm10, %v9022_v52, %v2850_v35  ;;  %v2868_v26 = vand.u32 2147483648, %v9035_v62 }
 0x7a8   : > { %v6848_v49 = vpop.eup %6847  ;;  %v3152_v0 = vsel %vm3151_vm14, %v3070_v5, %v9013_v53  ;;  %v2855_v14 = vsel %vm2853_vm11, %v2854_v20, %v2852_v48  ;;  %v2684_v63 = vmul.f32 1.442695, %v2627_v58  ;;  %v3074_v51 = vrot.slane %v2848_v46, %v8702_v39 }
 0x7a9   : > { %v6850_v42 = vpop.eup %6849  ;;  %v3078_v8 = vrot.slane %v2855_v14, %v8705_v50  ;;  %v2864_v19 = vmul.f32 %v6848_v49, %v9035_v62  ;;  %vm2858_vm15 = vcmp.eq.f32.partialorder %v9037_v28, inf  ;;  %v2688_v53 = vmul.f32 1.442695, %v2629_v32 }
 0x7aa   : > { %v2857_v29 = vmul.f32 %v6850_v42, %v9037_v28  ;;  %6855 = vpow2.f32 %v2684_v63  ;;  %v2686_v52 = vmul.f32 1.442695, %v2628_v23  ;;  %v2861_v17 = vand.u32 2147483648, %v9037_v28  ;;  %v2352_v42 = vpop.xlane.xlu1 %2351 }
 0x7ab   : > { %v9107_v10 = vpop.xlane.xlu0 %2378  ;;  %v3079_v21 = vsel %vm2998_vm6, %v3078_v8, %v3074_v51  ;;  %v2866_v57 = vsel %vm2865_vm12, %v9035_v62, %v2864_v19  ;;  %6857 = vpow2.f32 %v2682_v38  ;;  %vm2860_vm14 = vcmp.eq.f32.partialorder %v9037_v28, 0.0 }
 0x7ac   : > { %v2869_v20 = vsel %vm2867_vm13, %v2868_v26, %v2866_v57  ;;  %v2859_v1 = vsel %vm2858_vm15, %v9037_v28, %v2857_v29  ;;  %6859 = vpow2.f32 %v2686_v52  ;;  %v4852_v47 = vrot.slane %v6846_v7, %v8705_v50  ;;  %v6048_v57 = vld [vmem:[#allocation25] ss:$0 sm:$0xff] }
 0x7ad   : > { %v2862_v35 = vsel %vm2860_vm14, %v2861_v17, %v2859_v1  ;;  %6861 = vpow2.f32 %v2688_v53  ;;  %v3088_v62 = vrot.slane %v2869_v20, %v8713_v59  ;;  %vm3153_vm0 = vcmask 1044484  }
 0x7ae   : > { %v9125_v33 = vpop.eup %6851  ;;  %v3083_v58 = vrot.slane %v2862_v35, %v8710_v27  ;;  %v3708_v32 = vpop.f32.mrb[10].mxu0  ;;  %v4848_v23 = vrot.slane %v6844_v18, %v8702_v39  ;;  %v9137_v38 = vadd.f32 1e-10, %v6844_v18  ;;  %v9174_v35 = vstv %s2431_s3 }
 0x7af   : > { %v9123_v56 = vpop.xlane.xlu0 %2595  ;;  %v9129_v16 = vpop.eup %6853  ;;  %v4862_v63 = vrot.slane %v9125_v33, %v8713_v59 }
 0x7b0   : > { %v3084_v28 = vsel %vm3005_vm7, %v3083_v58, %v3079_v21  ;;  %v6300_v5 = vpop.f32.mrb[11].mxu0  ;;  %v4857_v49 = vrot.slane %v9129_v16, %v8710_v27  ;;  %v4853_v26 = vsel %vm2998_vm6, %v4852_v47, %v4848_v23  ;;  %6863 = vrsqrt.f32 %v9137_v38  ;;  %v9165_v17 = vpop.xlane.xlu1 %2357 }
 0x7b1   : > { %v3089_v48 = vsel %vm3012_vm8, %v3088_v62, %v3084_v28  ;;  %v9178_v58 = vadd.f32 %v9174_v35, %v8680_v54  ;;  %v3709_v28 = vadd.f32 %v6048_v57, %v3708_v32  ;;  %vm2872_vm4 = vcmp.eq.f32.partialorder %v9137_v38, inf }
 0x7b2   : > { %v9141_v14 = vsel %vm3153_vm0, %v3089_v48, %v3152_v0  ;;  %v4858_v51 = vsel %vm3005_vm7, %v4857_v49, %v4853_v26  ;;  %v9155_v0 = vadd.f32 1e-10, %v6846_v7  ;;  %v9188_v48 = vadd.f32 %v9174_v35, %v8677_v24 }
 0x7b3   : > { %v9134_v46 = vpop.xlane.xlu0 %2381  ;;  %v4863_v19 = vsel %vm3012_vm8, %v4862_v63, %v4858_v51  ;;  %v9192_v49 = vadd.f32 %v9174_v35, %v8690_v15  ;;  %v4552_v32 = vrot.slane %v9178_v58, %v8702_v39  ;;  %v2630_v51 = vadd.f32 %v8675_v43, %v9057_v31 }
 0x7b4   : > { %v9147_v8 = vpop.eup %6855  ;;  %4915 = vst.msk [vmem:[%s8738_s8 + $0x15] sm:$0x1] %vm4709_vm5, %v4863_v19  ;;  %6865 = vrsqrt.f32 %v9155_v0  ;;  %v9197_v26 = vpop.xlane.xlu1 %2366  ;;  %v3712_v19 = vmul.f32 1.442695, %v3709_v28  ;;  %v2631_v24 = vadd.f32 %v8675_v43, %v8949_v25  ;;  %v9206_v15 = vadd.f32 %v9174_v35, %v2346_v55 }
 0x7b5   : > { %v9152_v29 = vpop.eup %6857  ;;  %v4871_v52 = vrot.slane %v9147_v8, %v8705_v50  ;;  %v4556_v57 = vrot.slane %v9188_v48, %v8705_v50  ;;  %v2633_v25 = vadd.f32 %v8675_v43, %v9094_v44  ;;  %vm2874_vm9 = vcmp.eq.f32.partialorder %v9137_v38, 0.0 }
 0x7b6   : > { %v9159_v53 = vpop.eup %6859  ;;  %v4867_v7 = vrot.slane %v9152_v29, %v8702_v39  ;;  %6867 = vpow2.f32 %v3712_v19  ;;  %v2692_v28 = vmul.f32 1.442695, %v2631_v24  ;;  %v4566_v55 = vrot.slane %v9206_v15, %v8713_v59 }
 0x7b7   : > { %v9150_v18 = vpop.xlane.xlu0 %2384  ;;  %v9163_v21 = vpop.eup %6861  ;;  %v4876_v1 = vrot.slane %v9159_v53, %v8710_v27  ;;  %v4557_v31 = vsel %vm2998_vm6, %v4556_v57, %v4552_v32  ;;  %v9238_v19 = vadd.f32 1e-10, %v9125_v33  ;;  %v9242_v24 = vadd.f32 %v9174_v35, %v8997_v36 }
 0x7b8   : > { %v4872_v47 = vsel %vm2998_vm6, %v4871_v52, %v4867_v7  ;;  %v4881_v62 = vrot.slane %v9163_v21, %v8713_v59  ;;  %v4561_v7 = vrot.slane %v9192_v49, %v8710_v27  ;;  %v2696_v57 = vmul.f32 1.442695, %v2633_v25 }
 0x7b9   : > { %v4877_v23 = vsel %vm3005_vm7, %v4876_v1, %v4872_v47  ;;  %vm2879_vm10 = vcmp.eq.f32.partialorder %v9155_v0, inf  ;;  %v9253_v33 = vadd.f32 1e-10, %v9129_v16  ;;  %v4580_v25 = vrot.slane %v9242_v24, %v8710_v27 }
 0x7ba   : > { %v4882_v54 = vsel %vm3012_vm8, %v4881_v62, %v4877_v23  ;;  %v6864_v63 = vpop.eup %6863  ;;  %v2690_v62 = vmul.f32 1.442695, %v2630_v51  ;;  %v9221_v23 = vadd.f32 %v9174_v35, %v2352_v42  ;;  %v9234_v51 = vadd.f32 %v9174_v35, %v8970_v22 }
 0x7bb   : > { %v9167_v20 = vpop.xlane.xlu0 %2387  ;;  %4916 = vst.msk [vmem:[%s8738_s8 + $0x19] sm:$0x1] %vm4709_vm5, %v4882_v54  ;;  %v2871_v1 = vmul.f32 %v6864_v63, %v9137_v38  ;;  %v9223_v54 = vpop.xlane.xlu1 %2375  ;;  %v4562_v63 = vsel %vm3005_vm7, %v4561_v7, %v4557_v31  ;;  %v2875_v42 = vand.u32 2147483648, %v9137_v38  ;;  %v9268_v16 = vadd.f32 %v9174_v35, %v9024_v40 }
 0x7bc   : > { %6869 = vpow2.f32 %v2690_v62  ;;  %v4567_v7 = vsel %vm3012_vm8, %v4566_v55, %v4562_v63  ;;  %v4571_v31 = vrot.slane %v9234_v51, %v8702_v39  ;;  %v9272_v55 = vadd.f32 %v9174_v35, %v9165_v17 }
 0x7bd   : > { %v2873_v32 = vsel %vm2872_vm4, %v9137_v38, %v2871_v1  ;;  %6871 = vpow2.f32 %v2692_v28  ;;  %v4575_v1 = vrot.slane %v9221_v23, %v8705_v50  ;;  %4710 = vst.msk [vmem:[%s8738_s8] sm:$0x1] %vm4709_vm5, %v4567_v7  ;;  %v2882_v38 = vand.u32 2147483648, %v9155_v0 }
 0x7be   : > { %v6866_v47 = vpop.eup %6865  ;;  %v9249_v22 = vsel %vm2874_vm9, %v2875_v42, %v2873_v32  ;;  %6873 = vrsqrt.f32 %v9238_v19  ;;  %vm2881_vm11 = vcmp.eq.f32.partialorder %v9155_v0, 0.0  ;;  %v9284_v40 = vadd.f32 1e-10, %v9152_v29 }
 0x7bf   : > { %v9184_v5 = vpop.xlane.xlu0 %2390  ;;  %v2878_v44 = vmul.f32 %v6866_v47, %v9155_v0  ;;  %v9261_v62 = vpop.xlane.xlu1 %2414  ;;  %6875 = vpow2.f32 %v2696_v57  ;;  %v4576_v32 = vsel %vm2998_vm6, %v4575_v1, %v4571_v31  ;;  %v9287_v17 = vadd.f32 1e-10, %v9147_v8 }
 0x7c0   : > { %v6868_v28 = vpop.eup %6867  ;;  %6877 = vrsqrt.f32 %v9253_v33  ;;  %v9294_v57 = vadd.f32 %v9174_v35, %v9039_v45  ;;  %v4590_v1 = vrot.slane %v9268_v16, %v8702_v39  ;;  %v4581_v29 = vsel %vm3005_vm7, %v4580_v25, %v4576_v32 }
 0x7c1   : > { %v2880_v36 = vsel %vm2879_vm10, %v9155_v0, %v2878_v44  ;;  %v5351_v7 = vcombine.high %v6868_v28, %v6868_v28  ;;  %v5358_v11 = vrot.slane %v6868_v28, %v8138_v34  ;;  %v4585_v0 = vrot.slane %v9272_v55, %v8713_v59 }
 0x7c2   : > { %v9280_v42 = vsel %vm2881_vm11, %v2882_v38, %v2880_v36  ;;  %v9301_v36 = vadd.f32 %v9174_v35, %v9197_v26  ;;  %v9305_v8 = vadd.f32 %v9174_v35, %v9059_v12  ;;  %v4594_v26 = vrot.slane %v9294_v57, %v8705_v50 }
 0x7c3   : > { %v9208_v52 = vpop.xlane.xlu0 %2393  ;;  %v5365_v38 = vrot.slane %v5351_v7, %v8138_v34  ;;  %v5366_v31 = vcombine.high %v5358_v11, %v5358_v11  ;;  %v5374_v45 = vrot.slane %v5358_v11, %v8138_v34  ;;  %v4586_v28 = vsel %vm3012_vm8, %v4585_v0, %v4581_v29  ;;  %v9310_v9 = vpop.xlane.xlu1 %2402 }
 0x7c4   : > { %4711 = vst.msk [vmem:[%s8738_s8 + $0x4] sm:$0x1] %vm4709_vm5, %v4586_v28  ;;  %v4599_v12 = vrot.slane %v9301_v36, %v8710_v27  ;;  %v4604_v25 = vrot.slane %v9305_v8, %v8713_v59  ;;  %v9324_v11 = vadd.f32 %v9174_v35, %v9080_v41  ;;  %6879 = vrsqrt.f32 %v9284_v40 }
 0x7c5   : > { %v5367_v7 = vcombine.high %v5365_v38, %v5365_v38  ;;  %v5381_v0 = vrot.slane %v5365_v38, %v8138_v34  ;;  %v5388_v29 = vrot.slane %v5366_v31, %v8138_v34  ;;  %v5396_v28 = vcombine.high %v5374_v45, %v5374_v45  ;;  %5408 = vst.msk [vmem:[%s8466_s9 + $0x1] sm:$0x1] %vm4709_vm5, %v5374_v45 }
 0x7c6   : > { %v9312_v6 = vpop.eup %6869  ;;  %v9336_v61 = vadd.f32 1e-10, %v9163_v21  ;;  %v9339_v41 = vadd.f32 1e-10, %v9159_v53  ;;  %v4595_v2 = vsel %vm2998_vm6, %v4594_v26, %v4590_v1  ;;  %v9351_v21 = vadd.f32 %v9174_v35, %v9223_v54 }
 0x7c7   : > { %v9225_v13 = vpop.xlane.xlu0 %2396  ;;  %v9326_v32 = vpop.eup %6871  ;;  %v5395_v38 = vrot.slane %v5367_v7, %v8138_v34  ;;  %v5397_v31 = vcombine.high %v5381_v0, %v5381_v0  ;;  %v5398_v63 = vcombine.high %v5388_v29, %v5388_v29  ;;  %5409 = vst.msk [vmem:[%s8466_s9 + $0x5] sm:$0x1] %vm4709_vm5, %v5388_v29  ;;  %5410 = vst.msk [vmem:[%s8466_s9 + $0x9] sm:$0x1] %vm4709_vm5, %v5396_v28  ;;  %6881 = vrsqrt.f32 %v9287_v17 }
 0x7c8   : > { %5412 = vst.msk [vmem:[%s8466_s9 + $0x11] sm:$0x1] %vm4709_vm5, %v5381_v0  ;;  %10297 = vst [vmem:[#allocation63_spill] sm:$0xff] %v9351_v21  ;;  %v9353_v53 = vpop.eup %6873  ;;  %v9357_v1 = vadd.f32 1e-10, %v9312_v6  ;;  %v4600_v26 = vsel %vm3005_vm7, %v4599_v12, %v4595_v2  ;;  %v4609_v29 = vrot.slane %v9324_v11, %v8702_v39  ;;  %v9376_v28 = vadd.f32 %v9174_v35, %v9107_v10  ;;  %v9378_v2 = vpop.xlane.xlu1 %2420 }
 0x7c9   : > { %v9360_v45 = vadd.f32 1e-10, %v9326_v32  ;;  %v9363_v7 = vpop.eup %6875  ;;  %v5399_v0 = vcombine.high %v5395_v38, %v5395_v38  ;;  %5411 = vst.msk [vmem:[%s8466_s9 + $0xd] sm:$0x1] %vm4709_vm5, %v5398_v63  ;;  %5413 = vst.msk [vmem:[%s8466_s9 + $0x15] sm:$0x1] %vm4709_vm5, %v5395_v38  ;;  %v4605_v54 = vsel %vm3012_vm8, %v4604_v25, %v4600_v26  ;;  %v3097_v34 = vrot.slane %v9280_v42, %v8705_v50 }
 0x7ca   : > { %5414 = vst.msk [vmem:[%s8466_s9 + $0x19] sm:$0x1] %vm4709_vm5, %v5397_v31  ;;  %v6878_v12 = vpop.eup %6877  ;;  %6883 = vrsqrt.f32 %v9339_v41  ;;  %4712 = vst.msk [vmem:[%s8738_s8 + $0x8] sm:$0x1] %vm4709_vm5, %v4605_v54  ;;  %v2632_v25 = vadd.f32 %v8675_v43, %v9123_v56  ;;  %v4613_v10 = vrot.slane %v9351_v21, %v8705_v50  ;;  %v4618_v38 = vrot.slane %v9376_v28, %v8710_v27 }
 0x7cb   : > { %v9247_v47 = vpop.xlane.xlu0 %2399  ;;  %6885 = vrsqrt.f32 %v9336_v61  ;;  %5415 = vst.msk [vmem:[%s8466_s9 + $0x1d] sm:$0x1] %vm4709_vm5, %v5399_v0  ;;  %v9397_v42 = vadd.f32 %v9174_v35, %v9134_v46  ;;  %v9404_v43 = vadd.f32 1e-10, %v9363_v7  ;;  %v9412_v46 = vadd.f32 %v9174_v35, %v9150_v18 }
 0x7cc   : > { %6887 = vrsqrt.f32 %v9357_v1  ;;  %v2694_v56 = vmul.f32 1.442695, %v2632_v25  ;;  %v4614_v0 = vsel %vm2998_vm6, %v4613_v10, %v4609_v29  ;;  %v10299_v63 = vrot.slane %v9249_v22, %v8702_v39 }
 0x7cd   : > { %10298 = vst [vmem:[#allocation64_spill] sm:$0xff] %v9397_v42  ;;  %6889 = vrsqrt.f32 %v9360_v45  ;;  %v4623_v54 = vrot.slane %v9397_v42, %v8713_v59  ;;  %v4619_v37 = vsel %vm3005_vm7, %v4618_v38, %v4614_v0  ;;  %v9424_v29 = vadd.f32 %v9174_v35, %v9310_v9  ;;  %v2409_v42 = vpop.xlane.xlu1 %2408 }
 0x7ce   : > { %v9418_v26 = vsel %vm2998_vm6, %v3097_v34, %v10299_v63  ;;  %6891 = vpow2.f32 %v2694_v56  ;;  %v9429_v18 = vadd.f32 %v9174_v35, %v9167_v20  ;;  %v9433_v34 = vadd.f32 %v9174_v35, %v9184_v5  ;;  %v6880_v22 = vpop.eup %6879 }
 0x7cf   : > { %v9278_v44 = vpop.xlane.xlu0 %2417  ;;  %10300 = vst [vmem:[#allocation65_spill] sm:$0xff] %v9424_v29  ;;  %v4624_v10 = vsel %vm3012_vm8, %v4623_v54, %v4619_v37  ;;  %6893 = vrsqrt.f32 %v9404_v43  ;;  %v9440_v9 = vadd.f32 %v9174_v35, %v9208_v52  ;;  %v9444_v37 = vadd.f32 %v9174_v35, %v9225_v13 }
 0x7d0   : > { %10301 = vst [vmem:[#allocation66_spill] sm:$0xff] %v9429_v18  ;;  %4713 = vst.msk [vmem:[%s8738_s8 + $0xc] sm:$0x1] %vm4709_vm5, %v4624_v10  ;;  %v9448_v20 = vadd.f32 %v9174_v35, %v9247_v47  ;;  %vm2886_vm12 = vcmp.eq.f32.partialorder %v9253_v33, inf  ;;  %vm2907_vm13 = vcmp.eq.f32.partialorder %v9287_v17, inf  ;;  %v4628_v5 = vrot.slane %v9412_v46, %v8702_v39 }
 0x7d1   : > { %10302 = vst [vmem:[#allocation67_spill] sm:$0xff] %v9440_v9  ;;  %10303 = vst [vmem:[#allocation68_spill] sm:$0xff] %v9444_v37  ;;  %v4632_v63 = vrot.slane %v9429_v18, %v8705_v50  ;;  %v4637_v52 = vrot.slane %v9433_v34, %v8710_v27  ;;  %v6882_v47 = vpop.eup %6881  ;;  %v9463_v56 = vadd.f32 %v9174_v35, %v2409_v42  ;;  %vm2900_vm15 = vcmp.eq.f32.partialorder %v9284_v40, inf }
 0x7d2   : > { %10304 = vst [vmem:[#allocation69_spill] sm:$0xff] %v9448_v20  ;;  %v4642_v0 = vrot.slane %v9440_v9, %v8713_v59  ;;  %v4647_v54 = vrot.slane %v9444_v37, %v8702_v39  ;;  %v4651_v10 = vrot.slane %v9448_v20, %v8705_v50  ;;  %v4656_v25 = vrot.slane %v9424_v29, %v8710_v27 }
 0x7d3   : > { %v9332_v3 = vpop.xlane.xlu0 %2405  ;;  %10306 = vst [vmem:[#allocation71_spill] sm:$0xff] %v9463_v56  ;;  %v4633_v42 = vsel %vm2998_vm6, %v4632_v63, %v4628_v5  ;;  %vm2893_vm14 = vcmp.eq.f32.partialorder %v9238_v19, inf  ;;  %v2885_v5 = vmul.f32 %v6878_v12, %v9253_v33  ;;  %vm2888_vm0 = vcmp.eq.f32.partialorder %v9253_v33, 0.0 }
 0x7d4   : > { %v9460_v13 = vadd.f32 %v9174_v35, %v9332_v3  ;;  %v9474_v3 = vadd.f32 %v9174_v35, %v9261_v62  ;;  %v6884_v18 = vpop.eup %6883  ;;  %v4638_v20 = vsel %vm3005_vm7, %v4637_v52, %v4633_v42  ;;  %v4652_v37 = vsel %vm2998_vm6, %v4651_v10, %v4647_v54 }
 0x7d5   : > { %v9486_v62 = vadd.f32 %v9174_v35, %v9278_v44  ;;  %v6886_v29 = vpop.eup %6885  ;;  %vm2909_vm4 = vcmp.eq.f32.partialorder %v9287_v17, 0.0  ;;  %v4643_v63 = vsel %vm3012_vm8, %v4642_v0, %v4638_v20  ;;  %v4657_v52 = vsel %vm3005_vm7, %v4656_v25, %v4652_v37 }
 0x7d6   : > { %10305 = vst [vmem:[#allocation70_spill] sm:$0xff] %v9460_v13  ;;  %v4661_v9 = vrot.slane %v9460_v13, %v8713_v59  ;;  %v6888_v54 = vpop.eup %6887  ;;  %v2906_v10 = vmul.f32 %v6882_v47, %v9287_v17  ;;  %v4666_v44 = vrot.slane %v9463_v56, %v8702_v39  ;;  %4714 = vst.msk [vmem:[%s8738_s8 + $0x10] sm:$0x1] %vm4709_vm5, %v4643_v63  ;;  %vm2895_vm9 = vcmp.eq.f32.partialorder %v9238_v19, 0.0 }
 0x7d7   : > { %v9399_v31 = vpop.xlane.xlu0 %2423  ;;  %v6890_v42 = vpop.eup %6889  ;;  %v2910_v20 = vand.u32 2147483648, %v9287_v17  ;;  %v2913_v25 = vmul.f32 %v6884_v18, %v9339_v41  ;;  %v4890_v37 = vrot.slane %v9326_v32, %v8705_v50  ;;  %v4675_v47 = vrot.slane %v9474_v3, %v8710_v27 }
 0x7d8   : > { %v6892_v0 = vpop.eup %6891  ;;  %v2899_v63 = vmul.f32 %v6880_v22, %v9284_v40  ;;  %v4886_v32 = vrot.slane %v9312_v6, %v8702_v39  ;;  %v2908_v22 = vsel %vm2907_vm13, %v9287_v17, %v2906_v10  ;;  %vm2914_vm10 = vcmp.eq.f32.partialorder %v9339_v41, inf }
 0x7d9   : > { %v4895_v56 = vrot.slane %v6892_v0, %v8710_v27  ;;  %v6894_v13 = vpop.eup %6893  ;;  %v2915_v6 = vsel %vm2914_vm10, %v9339_v41, %v2913_v25  ;;  %vm2916_vm11 = vcmp.eq.f32.partialorder %v9339_v41, 0.0  ;;  %v2917_v10 = vand.u32 2147483648, %v9339_v41 }
 0x7da   : > { %v2920_v41 = vmul.f32 %v6886_v29, %v9336_v61  ;;  %vm2921_vm13 = vcmp.eq.f32.partialorder %v9336_v61, inf  ;;  %v2924_v29 = vand.u32 2147483648, %v9336_v61  ;;  %vm2949_vm10 = vcmp.eq.f32.partialorder %v9404_v43, inf }
 0x7db   : > { %v2412_v38 = vpop.xlane.xlu0 %2411 }
 0x7dc   : > { %v9489_v21 = vadd.f32 %v9174_v35, %v2412_v38  ;;  %v4662_v38 = vsel %vm3012_vm8, %v4661_v9, %v4657_v52  ;;  %v2892_v9 = vmul.f32 %v9353_v53, %v9238_v19  ;;  %v4680_v52 = vrot.slane %v9486_v62, %v8713_v59 }
 0x7dd   : > { %4715 = vst.msk [vmem:[%s8738_s8 + $0x14] sm:$0x1] %vm4709_vm5, %v4662_v38  ;;  %v2887_v53 = vsel %vm2886_vm12, %v9253_v33, %v2885_v5  ;;  %v2901_v5 = vsel %vm2900_vm15, %v9284_v40, %v2899_v63  ;;  %vm2902_vm12 = vcmp.eq.f32.partialorder %v9284_v40, 0.0  ;;  %vm2923_vm15 = vcmp.eq.f32.partialorder %v9336_v61, 0.0 }
 0x7de   : > { %10307 = vst [vmem:[#allocation72_spill] sm:$0xff] %v9489_v21  ;;  %v4670_v12 = vrot.slane %v9489_v21, %v8705_v50  ;;  %v9521_v21 = vadd.f32 1e-10, %v6892_v0  ;;  %v2934_v0 = vmul.f32 %v6890_v42, %v9360_v45  ;;  %v2927_v42 = vmul.f32 %v6888_v54, %v9357_v1 }
 0x7e0   : > { %v4671_v18 = vsel %vm2998_vm6, %v4670_v12, %v4666_v44  ;;  %v4891_v12 = vsel %vm2998_vm6, %v4890_v37, %v4886_v32  ;;  %6895 = vrsqrt.f32 %v9521_v21  ;;  %v2894_v37 = vsel %vm2893_vm14, %v9238_v19, %v2892_v9 }
 0x7e1   : > { %v4676_v38 = vsel %vm3005_vm7, %v4675_v47, %v4671_v18  ;;  %v4900_v47 = vrot.slane %v9363_v7, %v8713_v59  ;;  %v4896_v25 = vsel %vm3005_vm7, %v4895_v56, %v4891_v12  ;;  %v2911_v7 = vsel %vm2909_vm4, %v2910_v20, %v2908_v22 }
 0x7e2   : > { %v4681_v44 = vsel %vm3012_vm8, %v4680_v52, %v4676_v38  ;;  %v10308_v18 = vand.u32 2147483648, %v9253_v33  ;;  %v2918_v56 = vsel %vm2916_vm11, %v2917_v10, %v2915_v6  ;;  %v10309_v9 = vand.u32 2147483648, %v9284_v40 }
 0x7e3   : > { %4716 = vst.msk [vmem:[%s8738_s8 + $0x18] sm:$0x1] %vm4709_vm5, %v4681_v44  ;;  %v4901_v52 = vsel %vm3012_vm8, %v4900_v47, %v4896_v25  ;;  %v10310_v20 = vand.u32 2147483648, %v9238_v19  ;;  %v3116_v32 = vrot.slane %v2911_v7, %v8705_v50  ;;  %vm2935_vm14 = vcmp.eq.f32.partialorder %v9360_v45, inf }
 0x7e4   : > { %v2890_v63 = vsel %vm2888_vm0, %v10308_v18, %v2887_v53  ;;  %4917 = vst.msk [vmem:[%s8738_s8 + $0x1d] sm:$0x1] %vm4709_vm5, %v4901_v52  ;;  %v2904_v17 = vsel %vm2902_vm12, %v10309_v9, %v2901_v5  ;;  %v3121_v38 = vrot.slane %v2918_v56, %v8710_v27  ;;  %v2936_v53 = vsel %vm2935_vm14, %v9360_v45, %v2934_v0 }
 0x7e5   : > { %v2897_v33 = vsel %vm2895_vm9, %v10310_v20, %v2894_v37  ;;  %v3102_v40 = vrot.slane %v2890_v63, %v8710_v27  ;;  %v2948_v22 = vmul.f32 %v6894_v13, %v9404_v43  ;;  %v3112_v54 = vrot.slane %v2904_v17, %v8702_v39 }
 0x7e6   : > { %v2922_v44 = vsel %vm2921_vm13, %v9336_v61, %v2920_v41  ;;  %vm2928_vm0 = vcmp.eq.f32.partialorder %v9357_v1, inf  ;;  %v2938_v19 = vand.u32 2147483648, %v9360_v45  ;;  %v3107_v6 = vrot.slane %v2897_v33, %v8713_v59 }
 0x7e7   : > { %v2929_v12 = vsel %vm2928_vm0, %v9357_v1, %v2927_v42  ;;  %vm2930_vm4 = vcmp.eq.f32.partialorder %v9357_v1, 0.0  ;;  %vm2937_vm9 = vcmp.eq.f32.partialorder %v9360_v45, 0.0  ;;  %v3117_v47 = vsel %vm2998_vm6, %v3116_v32, %v3112_v54 }
 0x7e8   : > { %v2931_v13 = vand.u32 2147483648, %v9357_v1  ;;  %v2939_v5 = vsel %vm2937_vm9, %v2938_v19, %v2936_v53  ;;  %v3103_v25 = vsel %vm3005_vm7, %v3102_v40, %v9418_v26  ;;  %v2925_v37 = vsel %vm2923_vm15, %v2924_v29, %v2922_v44  ;;  %v2954_v40 = vld [vmem:[%s1086_s1] sm:$0xff]  ;;  %s10330_s1 = sld [smem:[#allocation59_spill]] }
 0x7e9   : > { %v3122_v7 = vsel %vm3005_vm7, %v3121_v38, %v3117_v47  ;;  %v2950_v0 = vsel %vm2949_vm10, %v9404_v43, %v2948_v22  ;;  %v2952_v45 = vand.u32 2147483648, %v9404_v43  ;;  %v3135_v1 = vrot.slane %v2939_v5, %v8705_v50 }
 0x7ea   : > { %v6896_v10 = vpop.eup %6895  ;;  %v2932_v52 = vsel %vm2930_vm4, %v2931_v13, %v2929_v12  ;;  %vm2951_vm11 = vcmp.eq.f32.partialorder %v9404_v43, 0.0  ;;  %vm2942_vm12 = vcmp.eq.f32.partialorder %v9521_v21, inf  ;;  %v2945_v26 = vand.u32 2147483648, %v9521_v21 }
 0x7eb   : > { %v2941_v18 = vmul.f32 %v6896_v10, %v9521_v21  ;;  %v7605_v63 = vmov 0   ;;  %v3126_v61 = vrot.slane %v2925_v37, %v8713_v59  ;;  %v2953_v41 = vsel %vm2951_vm11, %v2952_v45, %v2950_v0 }
 0x7ec   : > { %6624 = vset.pattern.permute.xlu0 %v7605_v63  ;;  %6623 = vset.pattern.permute.xlu1 %v7605_v63  ;;  %vm2944_vm13 = vcmp.eq.f32.partialorder %v9521_v21, 0.0  ;;  %vm3155_vm15 = vcmask 1045509   ;;  %v3108_v9 = vsel %vm3012_vm8, %v3107_v6, %v3103_v25  ;;  %v3131_v43 = vrot.slane %v2932_v52, %v8702_v39 }
 0x7ed   : > { %v2943_v56 = vsel %vm2942_vm12, %v9521_v21, %v2941_v18  ;;  %v3127_v42 = vsel %vm3012_vm8, %v3126_v61, %v3122_v7  ;;  %vm3157_vm14 = vcmask 1046534   ;;  %v3145_v32 = vrot.slane %v2953_v41, %v8713_v59 }
 0x7ee   : > { %v2946_v17 = vsel %vm2944_vm13, %v2945_v26, %v2943_v56  ;;  %v3136_v33 = vsel %vm2998_vm6, %v3135_v1, %v3131_v43  ;;  %vm3159_vm0 = vcmask 1047559   ;;  %v3156_v29 = vsel %vm3155_vm15, %v3108_v9, %v9141_v14 }
 0x7ef   : > { %v3140_v20 = vrot.slane %v2946_v17, %v8710_v27  ;;  %v3158_v53 = vsel %vm3157_vm14, %v3127_v42, %v3156_v29  ;;  %v10311_v19 = vsub.s32 1, %v8135_v30  ;;  %v10312_v14 = vsub.s32 2, %v8135_v30 }
 0x7f0   : > { %v10314_v13 = vsub.s32 4, %v8135_v30  ;;  %v2428_v10 = vsel %vm1276_vm1, %v8613_v4, 0.0  ;;  %v10315_v25 = vsub.s32 5, %v8135_v30  ;;  %v10316_v7 = vsub.s32 6, %v8135_v30  ;;  %v9631_v4 = vpop.xlane.xlu1 %2426 }
 0x7f1   : > { %v3141_v21 = vsel %vm3005_vm7, %v3140_v20, %v3136_v33  ;;  %v10317_v52 = vsub.s32 7, %v8135_v30  ;;  %v3984_v33 = vld [vmem:[%s10318_s12] sm:$0xff] }
 0x7f2   : > { %v3146_v38 = vsel %vm3012_vm8, %v3145_v32, %v3141_v21  ;;  %v3985_v32 = vld [vmem:[%s10318_s12 + $0x8] sm:$0xff] }
 0x7f3   : > { %v3160_v22 = vsel %vm3159_vm0, %v3146_v38, %v3158_v53  ;;  %v3987_v38 = vld [vmem:[%s10318_s12 + $0x18] sm:$0xff] }
 0x7f4   : > { %v3162_v54 = vmul.f32 %v3160_v22, %v2954_v40  ;;  %v3986_v40 = vld [vmem:[%s10318_s12 + $0x10] sm:$0xff] }
 0x7f6   : > { %v3167_v44 = vrot.slane %v3162_v54, %v8179_v60  ;;  %v3186_v6 = vrot.slane %v3162_v54, %v10311_v19  ;;  %v3205_v12 = vrot.slane %v3162_v54, %v10312_v14  ;;  %v10313_v60 = vsub.s32 3, %v8135_v30 }
 0x7f7   : > { %v3243_v5 = vrot.slane %v3162_v54, %v10314_v13  ;;  %v3262_v37 = vrot.slane %v3162_v54, %v10315_v25  ;;  %v3281_v0 = vrot.slane %v3162_v54, %v10316_v7  ;;  %v3300_v45 = vrot.slane %v3162_v54, %v10317_v52 }
 0x7f8   : > { %3173 = vbcast.lane.b32.xlu0 %v3167_v44, 264  ;;  %3169 = vbcast.lane.b32.xlu1 %v3167_v44, 256  ;;  %v3224_v47 = vrot.slane %v3162_v54, %v10313_v60  ;;  %v2463_v13 = vadd.f32 %v9174_v35, %v9631_v4 }
 0x7fc   : > { %3177 = vbcast.lane.b32.xlu0 %v3167_v44, 272  ;;  %3181 = vbcast.lane.b32.xlu1 %v3167_v44, 280 }
 0x800   : > { %3188 = vbcast.lane.b32.xlu0 %v3186_v6, 256  ;;  %3196 = vbcast.lane.b32.xlu1 %v3186_v6, 272 }
 0x804   : > { %3192 = vbcast.lane.b32.xlu0 %v3186_v6, 264  ;;  %3200 = vbcast.lane.b32.xlu1 %v3186_v6, 280 }
 0x808   : > { %3207 = vbcast.lane.b32.xlu1 %v3205_v12, 256 }
 0x80c   : > { %3211 = vbcast.lane.b32.xlu1 %v3205_v12, 264 }
 0x810   : > { %3215 = vbcast.lane.b32.xlu1 %v3205_v12, 272 }
 0x814   : > { %3219 = vbcast.lane.b32.xlu1 %v3205_v12, 280 }
 0x818   : > { %3226 = vbcast.lane.b32.xlu1 %v3224_v47, 256 }
 0x81c   : > { %3234 = vbcast.lane.b32.xlu1 %v3224_v47, 272 }
 0x820   : > { %3245 = vbcast.lane.b32.xlu1 %v3243_v5, 256 }
 0x823   : > { %2429 = vadd.xlane.f32.xlu0 %v2428_v10 }
 0x824   : > { %3253 = vbcast.lane.b32.xlu1 %v3243_v5, 272 }
 0x828   : > { %3257 = vbcast.lane.b32.xlu1 %v3243_v5, 280 }
 0x82c   : > { %3268 = vbcast.lane.b32.xlu1 %v3262_v37, 264 }
 0x830   : > { %3291 = vbcast.lane.b32.xlu1 %v3281_v0, 272 }
 0x834   : > { %3295 = vbcast.lane.b32.xlu1 %v3281_v0, 280 }
 0x838   : > { %3272 = vbcast.lane.b32.xlu1 %v3262_v37, 272 }
 0x839   : > { %3230 = vbcast.lane.b32.xlu0 %v3224_v47, 264 }
 0x83c   : > { %3276 = vbcast.lane.b32.xlu1 %v3262_v37, 280 }
 0x83d   : > { %3238 = vbcast.lane.b32.xlu0 %v3224_v47, 280 }
 0x840   : > { %3302 = vbcast.lane.b32.xlu1 %v3300_v45, 256 }
 0x841   : > { %3249 = vbcast.lane.b32.xlu0 %v3243_v5, 264 }
 0x844   : > { %3283 = vbcast.lane.b32.xlu1 %v3281_v0, 256 }
 0x845   : > { %3264 = vbcast.lane.b32.xlu0 %v3262_v37, 256  ;;  %v4694_v37 = vrot.slane %v2463_v13, %v8710_v27 }
 0x848   : > { %3310 = vbcast.lane.b32.xlu1 %v3300_v45, 272 }
 0x849   : > { %3306 = vbcast.lane.b32.xlu0 %v3300_v45, 264 }
 0x84d   : > { %3287 = vbcast.lane.b32.xlu0 %v3281_v0, 264 }
 0x851   : > { %3314 = vbcast.lane.b32.xlu0 %v3300_v45, 280  ;;  %v10319_v45 = vld [vmem:[#allocation63_spill] sm:$0xff] }
 0x86a   : > { %v3174_v18 = vpop.permute.xlu0 %3173  ;;  %v3170_v1 = vpop.permute.xlu1 %3169 }
 0x86b   : > { %v3349_v26 = vadd.f32 %v3174_v18, %v9188_v48  ;;  %v3348_v63 = vadd.f32 %v3170_v1, %v9178_v58  ;;  %v10320_v1 = vld [vmem:[#allocation64_spill] sm:$0xff] }
 0x86d   : > { %3722 = vperm.xlu0 %6624, %v3349_v26   ;;  %3717 = vperm.xlu1 %6623, %v3348_v63  }
 0x86e   : > { %v3178_v30 = vpop.permute.xlu0 %3177  ;;  %v3182_v61 = vpop.permute.xlu1 %3181 }
 0x86f   : > { %v3350_v41 = vadd.f32 %v3178_v30, %v9192_v49  ;;  %v3351_v43 = vadd.f32 %v3182_v61, %v9206_v15  ;;  %v10321_v30 = vld [vmem:[#allocation66_spill] sm:$0xff] }
 0x871   : > { %3727 = vperm.xlu1 %6623, %v3350_v41  }
 0x872   : > { %v3189_v56 = vpop.permute.xlu0 %3188  ;;  %v3197_v9 = vpop.permute.xlu1 %3196 }
 0x873   : > { %v3352_v17 = vadd.f32 %v3189_v56, %v9234_v51  ;;  %v3354_v42 = vadd.f32 %v3197_v9, %v9242_v24  ;;  %v6389_v51 = vpack.c.bf16 %v3985_v32, %v3984_v33  ;;  %v10322_v9 = vld [vmem:[#allocation67_spill] sm:$0xff]  ;;  %v10325_v32 = vld [vmem:[#allocation65_spill] sm:$0xff] }
 0x875   : > { %3737 = vperm.xlu0 %6624, %v3352_v17   ;;  %3732 = vperm.xlu1 %6623, %v3351_v43   ;;  %v10323_v17 = vld [vmem:[#allocation68_spill] sm:$0xff] }
 0x876   : > { %v3193_v48 = vpop.permute.xlu0 %3192  ;;  %v3201_v58 = vpop.permute.xlu1 %3200  ;;  %6390 = vmatprep.subr.bf16.mxu0 %v6389_v51  ;;  %6397 = vmatprep.subr.bf16.mxu1 %v6389_v51 }
 0x877   : > { %v3353_v20 = vadd.f32 %v3193_v48, %v9221_v23  ;;  %v3355_v29 = vadd.f32 %v3201_v58, %v9272_v55  ;;  %6392 = vmatpush3.bf16.msra.mxu0 %v6389_v51  ;;  %v6393_v23 = vpack.c.bf16 %v3987_v38, %v3986_v40  ;;  %6399 = vmatpush3.bf16.msra.mxu1 %v6389_v51  ;;  %v10324_v58 = vld [vmem:[#allocation69_spill] sm:$0xff] }
 0x879   : > { %3742 = vperm.xlu1 %6623, %v3353_v20   ;;  %3747 = vperm.xlu0 %6624, %v3354_v42  }
 0x87a   : > { %v3208_v49 = vpop.permute.xlu1 %3207  ;;  %6394 = vmatprep.subr.bf16.mxu0 %v6393_v23  ;;  %6398 = vmatprep.subr.bf16.mxu1 %v6393_v23 }
 0x87b   : > { %v3356_v15 = vadd.f32 %v3208_v49, %v9268_v16  ;;  %6396 = vmatpush3.bf16.msra.mxu0 %v6393_v23  ;;  %6400 = vmatpush3.bf16.msra.mxu1 %v6393_v23  ;;  %v10327_v23 = vld [vmem:[#allocation71_spill] sm:$0xff] }
 0x87d   : > { %3752 = vperm.xlu1 %6623, %v3355_v29   ;;  %3757 = vperm.xlu0 %6624, %v3356_v15  }
 0x87e   : > { %v3212_v21 = vpop.permute.xlu1 %3211 }
 0x87f   : > { %v3357_v24 = vadd.f32 %v3212_v21, %v9294_v57  ;;  %v10326_v21 = vld [vmem:[#allocation70_spill] sm:$0xff] }
 0x881   : > { %3762 = vperm.xlu1 %6623, %v3357_v24  }
 0x882   : > { %v3216_v53 = vpop.permute.xlu1 %3215 }
 0x883   : > { %v3358_v55 = vadd.f32 %v3216_v53, %v9301_v36 }
 0x885   : > { %3767 = vperm.xlu0 %6624, %v3358_v55  }
 0x886   : > { %v3220_v16 = vpop.permute.xlu1 %3219 }
 0x887   : > { %v3359_v22 = vadd.f32 %v3220_v16, %v9305_v8  ;;  %v2462_v8 = vadd.f32 %v9174_v35, %v9399_v31 }
 0x889   : > { %3772 = vperm.xlu1 %6623, %v3359_v22  }
 0x88a   : > { %v3227_v54 = vpop.permute.xlu1 %3226 }
 0x88b   : > { %v3360_v44 = vadd.f32 %v3227_v54, %v9324_v11  ;;  %v2461_v11 = vadd.f32 %v9174_v35, %v9378_v2 }
 0x88d   : > { %3777 = vperm.xlu0 %6624, %v3360_v44   ;;  %v4685_v5 = vrot.slane %v2461_v11, %v8702_v39 }
 0x88e   : > { %v3235_v57 = vpop.permute.xlu1 %3234 }
 0x88f   : > { %v3362_v19 = vadd.f32 %v3235_v57, %v9376_v28  ;;  %v4689_v28 = vrot.slane %v2462_v8, %v8705_v50  ;;  %v9681_v57 = vld [vmem:[#allocation27] ss:$0 sm:$0xff] }
 0x891   : > { %3787 = vperm.xlu0 %6624, %v3362_v19   ;;  %v9683_v19 = vld [vmem:[#allocation28] ss:$0 sm:$0xff] }
 0x892   : > { %v3246_v6 = vpop.permute.xlu1 %3245 }
 0x893   : > { %v3364_v14 = vadd.f32 %v3246_v6, %v9412_v46 }
 0x895   : > { %3797 = vperm.xlu0 %6624, %v3364_v14  }
 0x896   : > { %v3254_v36 = vpop.permute.xlu1 %3253 }
 0x897   : > { %v3366_v12 = vadd.f32 %v3254_v36, %v9433_v34  ;;  %v4690_v34 = vsel %vm2998_vm6, %v4689_v28, %v4685_v5 }
 0x898   : > { %v4695_v2 = vsel %vm3005_vm7, %v4694_v37, %v4690_v34 }
 0x899   : > { %3807 = vperm.xlu0 %6624, %v3366_v12  }
 0x89a   : > { %v3258_v60 = vpop.permute.xlu1 %3257 }
 0x89b   : > { %v3367_v43 = vadd.f32 %v3258_v60, %v10322_v9 }
 0x89e   : > { %v3269_v47 = vpop.permute.xlu1 %3268 }
 0x89f   : > { %v3369_v42 = vadd.f32 %v3269_v47, %v10324_v58 }
 0x8a2   : > { %v3292_v46 = vpop.permute.xlu1 %3291 }
 0x8a3   : > { %v3374_v20 = vadd.f32 %v3292_v46, %v9474_v3 }
 0x8a6   : > { %v3296_v7 = vpop.permute.xlu1 %3295 }
 0x8a7   : > { %v3375_v33 = vadd.f32 %v3296_v7, %v9486_v62  ;;  %v10328_v62 = vld [vmem:[#allocation72_spill] sm:$0xff] }
 0x8aa   : > { %v3273_v63 = vpop.permute.xlu1 %3272 }
 0x8ab   : > { %v3370_v29 = vadd.f32 %v3273_v63, %v10325_v32 }
 0x8ae   : > { %v3277_v41 = vpop.permute.xlu1 %3276 }
 0x8af   : > { %v3371_v40 = vadd.f32 %v3277_v41, %v10326_v21 }
 0x8b0   : > { %v2430_v10 = vpop.xlane.xlu0 %2429 }
 0x8b1   : > { %v2464_v25 = vadd.f32 %v9174_v35, %v2430_v10 }
 0x8b2   : > { %v3303_v49 = vpop.permute.xlu1 %3302 }
 0x8b3   : > { %v4699_v31 = vrot.slane %v2464_v25, %v8713_v59  ;;  %v3376_v38 = vadd.f32 %v3303_v49, %v2461_v11 }
 0x8b4   : > { %v3231_v0 = vpop.permute.xlu0 %3230 }
 0x8b5   : > { %v4700_v52 = vsel %vm3012_vm8, %v4699_v31, %v4695_v2  ;;  %v3361_v4 = vadd.f32 %v3231_v0, %v10319_v45  ;;  %v10329_v31 = vld [vmem:[#allocation62_spill] sm:$0xff] }
 0x8b6   : > { %4717 = vst.msk [vmem:[%s8738_s8 + $0x1c] sm:$0x1] %vm4709_vm5, %v4700_v52  ;;  %v3284_v51 = vpop.permute.xlu1 %3283  ;;  %v1436_v7 = vsel %vm1435_vm3, %v10329_v31, -inf }
 0x8b7   : > { %3782 = vperm.xlu1 %6623, %v3361_v4   ;;  %v3372_v53 = vadd.f32 %v3284_v51, %v10327_v23 }
 0x8b8   : > { %v3239_v18 = vpop.permute.xlu0 %3238 }
 0x8b9   : > { %v3363_v26 = vadd.f32 %v3239_v18, %v10320_v1 }
 0x8ba   : > { %v3311_v55 = vpop.permute.xlu1 %3310 }
 0x8bb   : > { %3792 = vperm.xlu1 %6623, %v3363_v26   ;;  %v3378_v16 = vadd.f32 %v3311_v55, %v2463_v13 }
 0x8bc   : > { %v3250_v35 = vpop.permute.xlu0 %3249 }
 0x8bd   : > { %v3365_v61 = vadd.f32 %v3250_v35, %v10321_v30 }
 0x8bf   : > { %3802 = vperm.xlu1 %6623, %v3365_v61  }
 0x8c0   : > { %v3265_v56 = vpop.permute.xlu0 %3264 }
 0x8c1   : > { %v3368_v48 = vadd.f32 %v3265_v56, %v10323_v17 }
 0x8c3   : > { %3817 = vperm.xlu0 %6624, %v3368_v48   ;;  %3812 = vperm.xlu1 %6623, %v3367_v43  }
 0x8c4   : > { %v3307_v15 = vpop.permute.xlu0 %3306 }
 0x8c5   : > { %v3377_v3 = vadd.f32 %v3307_v15, %v2462_v8 }
 0x8c7   : > { %3822 = vperm.xlu1 %6623, %v3369_v42   ;;  %3847 = vperm.xlu0 %6624, %v3374_v20  }
 0x8c8   : > { %v3288_v24 = vpop.permute.xlu0 %3287 }
 0x8c9   : > { %v3373_v22 = vadd.f32 %v3288_v24, %v10328_v62 }
 0x8cb   : > { %3852 = vperm.xlu1 %6623, %v3375_v33   ;;  %3827 = vperm.xlu0 %6624, %v3370_v29  }
 0x8cc   : > { %v3315_v54 = vpop.permute.xlu0 %3314 }
 0x8cd   : > { %v3379_v44 = vadd.f32 %v3315_v54, %v2464_v25 }
 0x8cf   : > { %3832 = vperm.xlu1 %6623, %v3371_v40   ;;  %3857 = vperm.xlu0 %6624, %v3376_v38  }
 0x8d3   : > { %3862 = vperm.xlu1 %6623, %v3377_v3   ;;  %3837 = vperm.xlu0 %6624, %v3372_v53  }
 0x8d7   : > { %3842 = vperm.xlu1 %6623, %v3373_v22   ;;  %3867 = vperm.xlu0 %6624, %v3378_v16  }
 0x8db   : > { %3872 = vperm.xlu1 %6623, %v3379_v44  }
 0x8ec   : > { %v3723_v6 = vpop.permute.xlu0 %3722  ;;  %v3718_v14 = vpop.permute.xlu1 %3717 }
 0x8ed   : > { %v3882_v36 = vmul.f32 %v9681_v57, %v3723_v6  ;;  %v3881_v12 = vmul.f32 %v9681_v57, %v3718_v14  ;;  %v4925_v28 = vrot.slane %v3723_v6, %v8705_v50  ;;  %v4921_v13 = vrot.slane %v3718_v14, %v8702_v39 }
 0x8ef   : > { %v3921_v60 = vadd.f32 %v9683_v19, %v3882_v36  ;;  %v3920_v47 = vadd.f32 %v9683_v19, %v3881_v12  ;;  %v4926_v2 = vsel %vm2998_vm6, %v4925_v28, %v4921_v13 }
 0x8f0   : > { %v3728_v8 = vpop.permute.xlu1 %3727 }
 0x8f1   : > { %6897 = vtanh.f32 %v3921_v60  ;;  %v3883_v11 = vmul.f32 %v9681_v57, %v3728_v8  ;;  %v4930_v5 = vrot.slane %v3728_v8, %v8710_v27 }
 0x8f2   : > { %6899 = vtanh.f32 %v3920_v47 }
 0x8f3   : > { %v3922_v46 = vadd.f32 %v9683_v19, %v3883_v11  ;;  %v4931_v52 = vsel %vm3005_vm7, %v4930_v5, %v4926_v2 }
 0x8f4   : > { %v3738_v10 = vpop.permute.xlu0 %3737  ;;  %v3733_v34 = vpop.permute.xlu1 %3732 }
 0x8f5   : > { %6901 = vtanh.f32 %v3922_v46  ;;  %v3885_v25 = vmul.f32 %v9681_v57, %v3738_v10  ;;  %v3884_v37 = vmul.f32 %v9681_v57, %v3733_v34  ;;  %v4935_v0 = vrot.slane %v3733_v34, %v8713_v59 }
 0x8f6   : > { %1437 = vmax.xlane.f32.xlu0 %v1436_v7  ;;  %v4940_v30 = vrot.slane %v3738_v10, %v8702_v39 }
 0x8f7   : > { %v3924_v45 = vadd.f32 %v9683_v19, %v3885_v25  ;;  %v3923_v4 = vadd.f32 %v9683_v19, %v3884_v37  ;;  %v4936_v18 = vsel %vm3012_vm8, %v4935_v0, %v4931_v52 }
 0x8f8   : > { %v3748_v1 = vpop.permute.xlu0 %3747  ;;  %v3743_v26 = vpop.permute.xlu1 %3742  ;;  %5078 = vst.msk [vmem:[%s8738_s8 + $0x2] sm:$0x1] %vm4709_vm5, %v4936_v18 }
 0x8f9   : > { %6903 = vtanh.f32 %v3924_v45  ;;  %v3887_v63 = vmul.f32 %v9681_v57, %v3748_v1  ;;  %v3886_v35 = vmul.f32 %v9681_v57, %v3743_v26  ;;  %v4944_v61 = vrot.slane %v3743_v26, %v8705_v50 }
 0x8fa   : > { %6905 = vtanh.f32 %v3923_v4  ;;  %v4949_v9 = vrot.slane %v3748_v1, %v8710_v27 }
 0x8fb   : > { %v6898_v41 = vpop.eup %6897  ;;  %v3926_v56 = vadd.f32 %v9683_v19, %v3887_v63  ;;  %v3925_v43 = vadd.f32 %v9683_v19, %v3886_v35  ;;  %v4945_v48 = vsel %vm2998_vm6, %v4944_v61, %v4940_v30 }
 0x8fc   : > { %v6900_v17 = vpop.eup %6899  ;;  %v3758_v58 = vpop.permute.xlu0 %3757  ;;  %v4950_v15 = vsel %vm3005_vm7, %v4949_v9, %v4945_v48 }
 0x8fd   : > { %v3753_v42 = vpop.permute.xlu1 %3752  ;;  %6907 = vtanh.f32 %v3926_v56  ;;  %v3889_v20 = vmul.f32 %v9681_v57, %v3758_v58  ;;  %6309 = vmatprep.mubr.msk.f32.mxu0 %vm1276_vm1, %v6900_v17  ;;  %v4959_v54 = vrot.slane %v3758_v58, %v8702_v39 }
 0x8fe   : > { %6909 = vtanh.f32 %v3925_v43  ;;  %v3888_v49 = vmul.f32 %v9681_v57, %v3753_v42  ;;  %v4954_v33 = vrot.slane %v3753_v42, %v8713_v59  ;;  %6310 = vmatmul.mubr.msk.f32.vlgmr.msra.gmra.mrb[12].mxu0 %vm1276_vm1, %v6898_v41 }
 0x8ff   : > { %v6902_v32 = vpop.eup %6901  ;;  %v3928_v29 = vadd.f32 %v9683_v19, %v3889_v20 }
 0x900   : > { %v3927_v51 = vadd.f32 %v9683_v19, %v3888_v49  ;;  %v4955_v21 = vsel %vm3012_vm8, %v4954_v33, %v4950_v15  ;;  %6312 = vmatprep.mubr.msk.f32.mxu0 %vm1276_vm1, %v6902_v32 }
 0x901   : > { %v3763_v40 = vpop.permute.xlu1 %3762  ;;  %6911 = vtanh.f32 %v3928_v29  ;;  %5079 = vst.msk [vmem:[%s8738_s8 + $0x6] sm:$0x1] %vm4709_vm5, %v4955_v21 }
 0x902   : > { %v3890_v38 = vmul.f32 %v9681_v57, %v3763_v40  ;;  %6913 = vtanh.f32 %v3927_v51  ;;  %v4963_v55 = vrot.slane %v3763_v40, %v8705_v50 }
 0x903   : > { %v6904_v24 = vpop.eup %6903 }
 0x904   : > { %v3929_v23 = vadd.f32 %v9683_v19, %v3890_v38  ;;  %v6906_v53 = vpop.eup %6905  ;;  %v3768_v3 = vpop.permute.xlu0 %3767  ;;  %v4964_v36 = vsel %vm2998_vm6, %v4963_v55, %v4959_v54 }
 0x905   : > { %v3891_v16 = vmul.f32 %v9681_v57, %v3768_v3  ;;  %6313 = vmatmul.mubr.msk.f32.gmra.mrb[14].mxu0 %vm1276_vm1, %v6906_v53  ;;  %v4968_v62 = vrot.slane %v3768_v3, %v8710_v27 }
 0x906   : > { %6915 = vtanh.f32 %v3929_v23  ;;  %6315 = vmatprep.mubr.msk.f32.mxu0 %vm1276_vm1, %v6904_v24 }
 0x907   : > { %v6908_v22 = vpop.eup %6907  ;;  %v3930_v44 = vadd.f32 %v9683_v19, %v3891_v16  ;;  %v4969_v47 = vsel %vm3005_vm7, %v4968_v62, %v4964_v36 }
 0x908   : > { %v6910_v6 = vpop.eup %6909  ;;  %v3773_v14 = vpop.permute.xlu1 %3772 }
 0x909   : > { %6917 = vtanh.f32 %v3930_v44  ;;  %v3892_v12 = vmul.f32 %v9681_v57, %v3773_v14  ;;  %v4973_v60 = vrot.slane %v3773_v14, %v8713_v59  ;;  %6316 = vmatmul.mubr.msk.f32.gmra.mrb[16].mxu0 %vm1276_vm1, %v6910_v6 }
 0x90a   : > { %6318 = vmatprep.mubr.msk.f32.mxu0 %vm1276_vm1, %v6908_v22 }
 0x90b   : > { %v6912_v8 = vpop.eup %6911  ;;  %v3931_v11 = vadd.f32 %v9683_v19, %v3892_v12  ;;  %v4974_v28 = vsel %vm3012_vm8, %v4973_v60, %v4969_v47 }
 0x90c   : > { %v6914_v13 = vpop.eup %6913  ;;  %5080 = vst.msk [vmem:[%s8738_s8 + $0xa] sm:$0x1] %vm4709_vm5, %v4974_v28  ;;  %v3778_v46 = vpop.permute.xlu0 %3777 }
 0x90d   : > { %6919 = vtanh.f32 %v3931_v11  ;;  %v3893_v5 = vmul.f32 %v9681_v57, %v3778_v46  ;;  %6319 = vmatmul.mubr.msk.f32.gmra.mrb[18].mxu0 %vm1276_vm1, %v6914_v13  ;;  %v4978_v4 = vrot.slane %v3778_v46, %v8702_v39 }
 0x90e   : > { %6321 = vmatprep.mubr.msk.f32.mxu0 %vm1276_vm1, %v6912_v8 }
 0x90f   : > { %v3932_v34 = vadd.f32 %v9683_v19, %v3893_v5 }
 0x910   : > { %v6916_v10 = vpop.eup %6915  ;;  %v3788_v2 = vpop.permute.xlu0 %3787 }
 0x911   : > { %6921 = vtanh.f32 %v3932_v34  ;;  %6322 = vmatmul.mubr.msk.f32.gmra.mrb[20].mxu0 %vm1276_vm1, %v6916_v10  ;;  %v3895_v52 = vmul.f32 %v9681_v57, %v3788_v2  ;;  %v4987_v41 = vrot.slane %v3788_v2, %v8710_v27 }
 0x913   : > { %v6918_v25 = vpop.eup %6917  ;;  %v3934_v26 = vadd.f32 %v9683_v19, %v3895_v52 }
 0x914   : > { %6324 = vmatprep.mubr.msk.f32.mxu0 %vm1276_vm1, %v6918_v25  ;;  %v3798_v0 = vpop.permute.xlu0 %3797 }
 0x915   : > { %v3897_v63 = vmul.f32 %v9681_v57, %v3798_v0  ;;  %v4997_v29 = vrot.slane %v3798_v0, %v8702_v39 }
 0x917   : > { %v6920_v37 = vpop.eup %6919  ;;  %v3936_v17 = vadd.f32 %v9683_v19, %v3897_v63 }
 0x918   : > { %6325 = vmatmul.mubr.msk.f32.gmra.mrb[22].mxu0 %vm1276_vm1, %v6920_v37  ;;  %v3808_v35 = vpop.permute.xlu0 %3807 }
 0x919   : > { %v3899_v48 = vmul.f32 %v9681_v57, %v3808_v35  ;;  %v5006_v24 = vrot.slane %v3808_v35, %v8710_v27 }
 0x91b   : > { %v6922_v7 = vpop.eup %6921  ;;  %v3938_v15 = vadd.f32 %v9683_v19, %v3899_v48 }
 0x91c   : > { %6327 = vmatprep.mubr.msk.f32.mxu0 %vm1276_vm1, %v6922_v7 }
 0x936   : > { %v3783_v45 = vpop.permute.xlu1 %3782 }
 0x937   : > { %v3894_v18 = vmul.f32 %v9681_v57, %v3783_v45  ;;  %v4982_v1 = vrot.slane %v3783_v45, %v8705_v50 }
 0x939   : > { %v3933_v30 = vadd.f32 %v9683_v19, %v3894_v18  ;;  %v4983_v61 = vsel %vm2998_vm6, %v4982_v1, %v4978_v4 }
 0x93a   : > { %v3793_v56 = vpop.permute.xlu1 %3792  ;;  %v4988_v58 = vsel %vm3005_vm7, %v4987_v41, %v4983_v61 }
 0x93b   : > { %6923 = vtanh.f32 %v3933_v30  ;;  %v3896_v9 = vmul.f32 %v9681_v57, %v3793_v56  ;;  %v4992_v43 = vrot.slane %v3793_v56, %v8713_v59 }
 0x93c   : > { %6925 = vtanh.f32 %v3934_v26 }
 0x93d   : > { %v3935_v42 = vadd.f32 %v9683_v19, %v3896_v9  ;;  %v4993_v20 = vsel %vm3012_vm8, %v4992_v43, %v4988_v58 }
 0x93e   : > { %5081 = vst.msk [vmem:[%s8738_s8 + $0xe] sm:$0x1] %vm4709_vm5, %v4993_v20  ;;  %v3803_v49 = vpop.permute.xlu1 %3802 }
 0x93f   : > { %6927 = vtanh.f32 %v3935_v42  ;;  %v3898_v33 = vmul.f32 %v9681_v57, %v3803_v49  ;;  %v5001_v32 = vrot.slane %v3803_v49, %v8705_v50 }
 0x940   : > { %6929 = vtanh.f32 %v3936_v17 }
 0x941   : > { %v3937_v51 = vadd.f32 %v9683_v19, %v3898_v33  ;;  %v5002_v21 = vsel %vm2998_vm6, %v5001_v32, %v4997_v29 }
 0x942   : > { %v3818_v40 = vpop.permute.xlu0 %3817  ;;  %v3813_v38 = vpop.permute.xlu1 %3812  ;;  %v5007_v62 = vsel %vm3005_vm7, %v5006_v24, %v5002_v21 }
 0x943   : > { %6931 = vtanh.f32 %v3937_v51  ;;  %v3901_v23 = vmul.f32 %v9681_v57, %v3818_v40  ;;  %v3900_v53 = vmul.f32 %v9681_v57, %v3813_v38  ;;  %v5011_v3 = vrot.slane %v3813_v38, %v8713_v59 }
 0x944   : > { %6933 = vtanh.f32 %v3938_v15  ;;  %v5016_v0 = vrot.slane %v3818_v40, %v8702_v39 }
 0x945   : > { %v6924_v55 = vpop.eup %6923  ;;  %v3940_v16 = vadd.f32 %v9683_v19, %v3901_v23  ;;  %v3939_v22 = vadd.f32 %v9683_v19, %v3900_v53  ;;  %v5012_v44 = vsel %vm3012_vm8, %v5011_v3, %v5007_v62 }
 0x946   : > { %v6926_v54 = vpop.eup %6925  ;;  %v9785_v6 = vpop.permute.xlu0 %3847  ;;  %6328 = vmatmul.mubr.msk.f32.gmra.mrb[24].mxu0 %vm1276_vm1, %v6924_v55  ;;  %5082 = vst.msk [vmem:[%s8738_s8 + $0x12] sm:$0x1] %vm4709_vm5, %v5012_v44 }
 0x947   : > { %v3823_v14 = vpop.permute.xlu1 %3822  ;;  %6935 = vtanh.f32 %v3940_v16  ;;  %v3907_v36 = vmul.f32 %v9681_v57, %v9785_v6  ;;  %6330 = vmatprep.mubr.msk.f32.mxu0 %vm1276_vm1, %v6926_v54  ;;  %v5044_v53 = vrot.slane %v9785_v6, %v8710_v27 }
 0x948   : > { %v3902_v12 = vmul.f32 %v9681_v57, %v3823_v14  ;;  %6937 = vtanh.f32 %v3939_v22  ;;  %v5020_v10 = vrot.slane %v3823_v14, %v8705_v50 }
 0x949   : > { %v6928_v60 = vpop.eup %6927  ;;  %v3946_v47 = vadd.f32 %v9683_v19, %v3907_v36 }
 0x94a   : > { %v3941_v8 = vadd.f32 %v9683_v19, %v3902_v12  ;;  %v6930_v11 = vpop.eup %6929  ;;  %v3828_v28 = vpop.permute.xlu0 %3827  ;;  %6331 = vmatmul.mubr.msk.f32.gmra.mrb[26].mxu0 %vm1276_vm1, %v6928_v60  ;;  %v5021_v1 = vsel %vm2998_vm6, %v5020_v10, %v5016_v0 }
 0x94b   : > { %v9796_v13 = vpop.permute.xlu1 %3852  ;;  %6939 = vtanh.f32 %v3946_v47  ;;  %v3903_v46 = vmul.f32 %v9681_v57, %v3828_v28  ;;  %6333 = vmatprep.mubr.msk.f32.mxu0 %vm1276_vm1, %v6930_v11  ;;  %v5025_v37 = vrot.slane %v3828_v28, %v8710_v27 }
 0x94c   : > { %v3908_v5 = vmul.f32 %v9681_v57, %v9796_v13  ;;  %6941 = vtanh.f32 %v3941_v8  ;;  %v5049_v62 = vrot.slane %v9796_v13, %v8713_v59 }
 0x94d   : > { %v6932_v34 = vpop.eup %6931  ;;  %v3942_v25 = vadd.f32 %v9683_v19, %v3903_v46  ;;  %v5026_v35 = vsel %vm3005_vm7, %v5025_v37, %v5021_v1 }
 0x94e   : > { %v3947_v7 = vadd.f32 %v9683_v19, %v3908_v5  ;;  %v6934_v2 = vpop.eup %6933  ;;  %v3858_v52 = vpop.permute.xlu0 %3857  ;;  %6334 = vmatmul.mubr.msk.f32.gmra.mrb[28].mxu0 %vm1276_vm1, %v6932_v34 }
 0x94f   : > { %v3833_v45 = vpop.permute.xlu1 %3832  ;;  %6943 = vtanh.f32 %v3942_v25  ;;  %v3909_v4 = vmul.f32 %v9681_v57, %v3858_v52  ;;  %6336 = vmatprep.mubr.msk.f32.mxu0 %vm1276_vm1, %v6934_v2  ;;  %v5054_v15 = vrot.slane %v3858_v52, %v8702_v39  ;;  %v9866_v2 = vld [vmem:[%s10330_s1] ss:$0 sm:$0xff] }
 0x950   : > { %v3904_v18 = vmul.f32 %v9681_v57, %v3833_v45  ;;  %6945 = vtanh.f32 %v3947_v7  ;;  %v5030_v26 = vrot.slane %v3833_v45, %v8713_v59 }
 0x951   : > { %v6936_v63 = vpop.eup %6935  ;;  %v3948_v30 = vadd.f32 %v9683_v19, %v3909_v4 }
 0x952   : > { %v3943_v61 = vadd.f32 %v9683_v19, %v3904_v18  ;;  %v6938_v41 = vpop.eup %6937  ;;  %v5031_v56 = vsel %vm3012_vm8, %v5030_v26, %v5026_v35  ;;  %v3838_v9 = vpop.permute.xlu0 %3837  ;;  %v9871_v26 = vld [vmem:[%s10331_s4] ss:$0 sm:$0xff] }
 0x953   : > { %v3863_v43 = vpop.permute.xlu1 %3862  ;;  %6947 = vtanh.f32 %v3948_v30  ;;  %5083 = vst.msk [vmem:[%s8738_s8 + $0x16] sm:$0x1] %vm4709_vm5, %v5031_v56  ;;  %v3905_v17 = vmul.f32 %v9681_v57, %v3838_v9  ;;  %6337 = vmatmul.mubr.msk.f32.gmra.mrb[30].mxu0 %vm1276_vm1, %v6938_v41  ;;  %v5035_v40 = vrot.slane %v3838_v9, %v8702_v39 }
 0x954   : > { %v3910_v48 = vmul.f32 %v9681_v57, %v3863_v43  ;;  %6949 = vtanh.f32 %v3943_v61  ;;  %6339 = vmatprep.mubr.msk.f32.mxu0 %vm1276_vm1, %v6936_v63  ;;  %v5058_v33 = vrot.slane %v3863_v43, %v8705_v50 }
 0x955   : > { %v6940_v58 = vpop.eup %6939  ;;  %v3944_v42 = vadd.f32 %v9683_v19, %v3905_v17 }
 0x956   : > { %v3949_v20 = vadd.f32 %v9683_v19, %v3910_v48  ;;  %v6942_v49 = vpop.eup %6941  ;;  %6348 = vmatprep.mubr.msk.f32.mxu1 %vm1276_vm1, %v6940_v58  ;;  %v3868_v32 = vpop.permute.xlu0 %3867  ;;  %v5059_v22 = vsel %vm2998_vm6, %v5058_v33, %v5054_v15 }
 0x957   : > { %v3843_v29 = vpop.permute.xlu1 %3842  ;;  %6951 = vtanh.f32 %v3944_v42  ;;  %v3911_v51 = vmul.f32 %v9681_v57, %v3868_v32  ;;  %6340 = vmatmul.mubr.msk.f32.gmra.mrb[32].mxu0 %vm1276_vm1, %v6942_v49  ;;  %v5063_v38 = vrot.slane %v3868_v32, %v8710_v27 }
 0x958   : > { %v3906_v21 = vmul.f32 %v9681_v57, %v3843_v29  ;;  %6953 = vtanh.f32 %v3949_v20  ;;  %v5039_v24 = vrot.slane %v3843_v29, %v8705_v50 }
 0x959   : > { %v6944_v23 = vpop.eup %6943  ;;  %v3950_v3 = vadd.f32 %v9683_v19, %v3911_v51  ;;  %v5064_v12 = vsel %vm3005_vm7, %v5063_v38, %v5059_v22  ;;  %v10332_v22 = vld [vmem:[#allocation61_spill] sm:$0xff] }
 0x95a   : > { %v3945_v55 = vadd.f32 %v9683_v19, %v3906_v21  ;;  %v6946_v16 = vpop.eup %6945  ;;  %v5040_v54 = vsel %vm2998_vm6, %v5039_v24, %v5035_v40  ;;  %6342 = vmatprep.mubr.msk.f32.mxu0 %vm1276_vm1, %v6944_v23 }
 0x95b   : > { %v3873_v44 = vpop.permute.xlu1 %3872  ;;  %6955 = vtanh.f32 %v3950_v3  ;;  %v5045_v6 = vsel %vm3005_vm7, %v5044_v53, %v5040_v54  ;;  %6349 = vmatmul.mubr.msk.f32.vlgmr.msra.gmra.mrb[34].mxu1 %vm1276_vm1, %v6946_v16 }
 0x95c   : > { %v3912_v14 = vmul.f32 %v9681_v57, %v3873_v44  ;;  %v5068_v36 = vrot.slane %v3873_v44, %v8713_v59  ;;  %6957 = vtanh.f32 %v3945_v55  ;;  %v5050_v60 = vsel %vm3012_vm8, %v5049_v62, %v5045_v6 }
 0x95d   : > { %v6948_v47 = vpop.eup %6947  ;;  %5084 = vst.msk [vmem:[%s8738_s8 + $0x1a] sm:$0x1] %vm4709_vm5, %v5050_v60 }
 0x95e   : > { %v3951_v8 = vadd.f32 %v9683_v19, %v3912_v14  ;;  %v5069_v11 = vsel %vm3012_vm8, %v5068_v36, %v5064_v12  ;;  %v6950_v28 = vpop.eup %6949  ;;  %6351 = vmatprep.mubr.msk.f32.mxu1 %vm1276_vm1, %v6948_v47 }
 0x95f   : > { %5085 = vst.msk [vmem:[%s8738_s8 + $0x1e] sm:$0x1] %vm4709_vm5, %v5069_v11  ;;  %6343 = vmatmul.mubr.msk.f32.gmra.mrb[34].mxu0 %vm1276_vm1, %v6950_v28 }
 0x960   : > { %6959 = vtanh.f32 %v3951_v8 }
 0x961   : > { %v6952_v57 = vpop.eup %6951 }
 0x962   : > { %v6954_v13 = vpop.eup %6953  ;;  %6345 = vmatprep.mubr.msk.f32.mxu0 %vm1276_vm1, %v6952_v57 }
 0x963   : > { %6352 = vmatmul.mubr.msk.f32.gmra.mrb[36].mxu1 %vm1276_vm1, %v6954_v13 }
 0x965   : > { %v6956_v46 = vpop.eup %6955 }
 0x966   : > { %v6958_v5 = vpop.eup %6957  ;;  %6354 = vmatprep.mubr.msk.f32.mxu1 %vm1276_vm1, %v6956_v46 }
 0x967   : > { %6346 = vmatmul.mubr.msk.f32.gmra.mrb[36].mxu0 %vm1276_vm1, %v6958_v5 }
 0x96a   : > { %v6960_v19 = vpop.eup %6959 }
 0x96b   : > { %6355 = vmatmul.mubr.msk.f32.gmra.mrb[38].mxu1 %vm1276_vm1, %v6960_v19 }
 0x983   : > { %v1438_v10 = vpop.xlane.xlu0 %1437 }
 0x984   : > { %v1439_v34 = vsub.f32 %v10329_v31, %v1438_v10 }
 0x986   : > { %v1440_v25 = vmul.f32 1.442695, %v1439_v34 }
 0x988   : > { %6961 = vpow2.f32 %v1440_v25 }
 0x992   : > { %v6962_v37 = vpop.eup %6961 }
 0x993   : > { %v1442_v7 = vsel %vm1435_vm3, %v6962_v37, 0.0 }
 0x994   : > { %1443 = vadd.xlane.f32.xlu1 %v1442_v7 }
 0x9d1   : > { %v6311_v0 = vpop.f32.mrb[12].mxu0 }
 0x9d2   : > { %v4163_v52 = vadd.f32 %v6311_v0, %v9866_v2  ;;  %v4157_v45 = vpop.f32.mrb[13].mxu0 }
 0x9d3   : > { %v4158_v4 = vadd.f32 %v9866_v2, %v4157_v45 }
 0x9d4   : > { %6963 = vtanh.f32 %v4163_v52 }
 0x9d5   : > { %6965 = vtanh.f32 %v4158_v4 }
 0x9d8   : > { %v6314_v18 = vpop.f32.mrb[14].mxu0 }
 0x9d9   : > { %v4167_v1 = vpop.f32.mrb[15].mxu0  ;;  %v4173_v3 = vadd.f32 %v6314_v18, %v9866_v2 }
 0x9da   : > { %v4168_v60 = vadd.f32 %v9866_v2, %v4167_v1 }
 0x9dc   : > { %v6317_v31 = vpop.f32.mrb[16].mxu0 }
 0x9dd   : > { %v9873_v63 = vpop.f32.mrb[17].mxu0  ;;  %v4183_v46 = vadd.f32 %v6317_v31, %v9866_v2 }
 0x9de   : > { %v6964_v35 = vpop.eup %6963  ;;  %v4178_v52 = vadd.f32 %v9866_v2, %v9873_v63 }
 0x9df   : > { %v6966_v30 = vpop.eup %6965  ;;  %v4356_v61 = vmul.f32 %v6964_v35, %v9871_v26 }
 0x9e0   : > { %v9876_v41 = vpop.f32.mrb[18].mxu0  ;;  %v4355_v43 = vmul.f32 %v6966_v30, %v9871_v26 }
 0x9e1   : > { %v9878_v56 = vpop.f32.mrb[19].mxu0  ;;  %v4390_v9 = vsel %vm1276_vm1, %v4356_v61, 0.0  ;;  %v4193_v31 = vadd.f32 %v9876_v41, %v9866_v2 }
 0x9e2   : > { %4391 = vadd.xlane.f32.xlu0 %v4390_v9  ;;  %v4387_v58 = vsel %vm1276_vm1, %v4355_v43, 0.0  ;;  %v4188_v41 = vadd.f32 %v9866_v2, %v9878_v56 }
 0x9e4   : > { %v9882_v17 = vpop.f32.mrb[20].mxu0 }
 0x9e5   : > { %v9884_v48 = vpop.f32.mrb[21].mxu0 }
 0x9e6   : > { %4388 = vadd.xlane.f32.xlu0 %v4387_v58  ;;  %v4198_v61 = vadd.f32 %v9866_v2, %v9884_v48 }
 0x9eb   : > { %v9887_v42 = vpop.f32.mrb[22].mxu0 }
 0x9ec   : > { %v9889_v20 = vpop.f32.mrb[23].mxu0 }
 0x9ed   : > { %v4208_v56 = vadd.f32 %v9866_v2, %v9889_v20 }
 0xa19   : > { %v9891_v49 = vpop.f32.mrb[24].mxu0 }
 0xa1a   : > { %v9893_v33 = vpop.f32.mrb[25].mxu0 }
 0xa1b   : > { %v4218_v20 = vadd.f32 %v9866_v2, %v9893_v33 }
 0xa1d   : > { %v9895_v32 = vpop.f32.mrb[26].mxu0 }
 0xa1e   : > { %v9897_v29 = vpop.f32.mrb[27].mxu0 }
 0xa21   : > { %v1444_v15 = vpop.xlane.xlu1 %1443  ;;  %v9899_v51 = vpop.f32.mrb[28].mxu0 }
 0xa22   : > { %6967 = vrcp.f32 %v1444_v15  ;;  %v9901_v21 = vpop.f32.mrb[29].mxu0 }
 0xa23   : > { %6969 = vtanh.f32 %v4173_v3  ;;  %v4213_v3 = vadd.f32 %v9887_v42, %v9866_v2  ;;  %v4238_v33 = vadd.f32 %v9866_v2, %v9901_v21 }
 0xa26   : > { %v9903_v40 = vpop.f32.mrb[30].mxu0 }
 0xa27   : > { %v9905_v38 = vpop.f32.mrb[31].mxu0  ;;  %v4253_v21 = vadd.f32 %v9903_v40, %v9866_v2 }
 0xa28   : > { %v4248_v40 = vadd.f32 %v9866_v2, %v9905_v38 }
 0xa2a   : > { %v9907_v24 = vpop.f32.mrb[32].mxu0 }
 0xa2b   : > { %v9909_v23 = vpop.f32.mrb[33].mxu0 }
 0xa2c   : > { %v6968_v53 = vpop.eup %6967  ;;  %v4258_v38 = vadd.f32 %v9866_v2, %v9909_v23 }
 0xa2d   : > { %v1447_v55 = vmul.f32 %v6968_v53, %v6962_v37  ;;  %v6970_v4 = vpop.eup %6969 }
 0xa2e   : > { %v9912_v16 = vpop.f32.mrb[34].mxu1  ;;  %v4358_v58 = vmul.f32 %v6970_v4, %v9871_v26 }
 0xa2f   : > { %v5154_v62 = vcombine.high %v1447_v55, %v1447_v55  ;;  %v5161_v54 = vrot.slane %v1447_v55, %v10332_v22  ;;  %v4287_v44 = vpop.f32.mrb[35].mxu1 }
 0xa30   : > { %v4288_v6 = vadd.f32 %v9866_v2, %v4287_v44  ;;  %v4396_v55 = vsel %vm1276_vm1, %v4358_v58, 0.0 }
 0xa31   : > { %v5168_v14 = vrot.slane %v5154_v62, %v10332_v22  ;;  %v5169_v36 = vcombine.high %v5161_v54, %v5161_v54  ;;  %v5177_v12 = vrot.slane %v5161_v54, %v10332_v22  ;;  %v4203_v54 = vadd.f32 %v9882_v17, %v9866_v2 }
 0xa32   : > { %6971 = vtanh.f32 %v4288_v6  ;;  %v9919_v47 = vpop.f32.mrb[34].mxu0  ;;  %v4223_v17 = vadd.f32 %v9891_v49, %v9866_v2  ;;  %v4233_v49 = vadd.f32 %v9895_v32, %v9866_v2  ;;  %v4228_v32 = vadd.f32 %v9866_v2, %v9897_v29 }
 0xa33   : > { %v5170_v8 = vcombine.high %v5168_v14, %v5168_v14  ;;  %v5184_v11 = vrot.slane %v5168_v14, %v10332_v22  ;;  %v5191_v28 = vrot.slane %v5169_v36, %v10332_v22  ;;  %v5199_v57 = vcombine.high %v5177_v12, %v5177_v12  ;;  %5211 = vst.msk [vmem:[%s8151_s27 + $0x1] sm:$0x1] %vm5144_vm2, %v5177_v12  ;;  %v9925_v13 = vpop.f32.mrb[35].mxu0 }
 0xa34   : > { %6973 = vtanh.f32 %v4168_v60  ;;  %v4243_v29 = vadd.f32 %v9899_v51, %v9866_v2  ;;  %v4263_v51 = vadd.f32 %v9907_v24, %v9866_v2  ;;  %v4273_v24 = vadd.f32 %v9919_v47, %v9866_v2 }
 0xa35   : > { %v5198_v5 = vrot.slane %v5170_v8, %v10332_v22  ;;  %v5200_v19 = vcombine.high %v5184_v11, %v5184_v11  ;;  %v5201_v10 = vcombine.high %v5191_v28, %v5191_v28  ;;  %5212 = vst.msk [vmem:[%s8151_s27 + $0x5] sm:$0x1] %vm5144_vm2, %v5191_v28  ;;  %5213 = vst.msk [vmem:[%s8151_s27 + $0x9] sm:$0x1] %vm5144_vm2, %v5199_v57  ;;  %6975 = vtanh.f32 %v4183_v46 }
 0xa36   : > { %5215 = vst.msk [vmem:[%s8151_s27 + $0x11] sm:$0x1] %vm5144_vm2, %v5184_v11  ;;  %v6353_v34 = vpop.f32.mrb[36].mxu1  ;;  %v4268_v47 = vadd.f32 %v9866_v2, %v9925_v13 }
 0xa37   : > { %v5202_v25 = vcombine.high %v5198_v5, %v5198_v5  ;;  %5214 = vst.msk [vmem:[%s8151_s27 + $0xd] sm:$0x1] %vm5144_vm2, %v5201_v10  ;;  %5216 = vst.msk [vmem:[%s8151_s27 + $0x15] sm:$0x1] %vm5144_vm2, %v5198_v5  ;;  %v4303_v37 = vadd.f32 %v6353_v34, %v9866_v2  ;;  %v4297_v7 = vpop.f32.mrb[37].mxu1 }
 0xa38   : > { %5217 = vst.msk [vmem:[%s8151_s27 + $0x19] sm:$0x1] %vm5144_vm2, %v5200_v19  ;;  %v4298_v0 = vadd.f32 %v9866_v2, %v4297_v7 }
 0xa39   : > { %5218 = vst.msk [vmem:[%s8151_s27 + $0x1d] sm:$0x1] %vm5144_vm2, %v5202_v25  ;;  %6977 = vtanh.f32 %v4303_v37 }
 0xa3a   : > { %6979 = vtanh.f32 %v4298_v0  ;;  %v9947_v45 = vpop.f32.mrb[36].mxu0 }
 0xa3b   : > { %v9949_v18 = vpop.f32.mrb[37].mxu0  ;;  %6981 = vtanh.f32 %v4178_v52  ;;  %v4283_v13 = vadd.f32 %v9947_v45, %v9866_v2 }
 0xa3c   : > { %v6972_v1 = vpop.eup %6971  ;;  %6983 = vtanh.f32 %v4193_v31  ;;  %v4278_v23 = vadd.f32 %v9866_v2, %v9949_v18 }
 0xa3d   : > { %v4381_v30 = vmul.f32 %v6972_v1, %v9871_v26 }
 0xa3e   : > { %v9953_v35 = vpop.f32.mrb[38].mxu1  ;;  %v6974_v15 = vpop.eup %6973 }
 0xa3f   : > { %v4307_v9 = vpop.f32.mrb[39].mxu1  ;;  %v4465_v43 = vsel %vm1276_vm1, %v4381_v30, 0.0  ;;  %v6976_v53 = vpop.eup %6975  ;;  %v4357_v36 = vmul.f32 %v6974_v15, %v9871_v26 }
 0xa40   : > { %v4308_v63 = vadd.f32 %v9866_v2, %v4307_v9  ;;  %4466 = vadd.xlane.f32.xlu1 %v4465_v43  ;;  %v4360_v42 = vmul.f32 %v6976_v53, %v9871_v26 }
 0xa41   : > { %v4393_v28 = vsel %vm1276_vm1, %v4357_v36, 0.0 }
 0xa42   : > { %6985 = vtanh.f32 %v4308_v63  ;;  %v4402_v8 = vsel %vm1276_vm1, %v4360_v42, 0.0 }
 0xa43   : > { %6987 = vtanh.f32 %v4198_v61  ;;  %v6978_v48 = vpop.eup %6977 }
 0xa44   : > { %v6980_v62 = vpop.eup %6979  ;;  %4397 = vadd.xlane.f32.xlu1 %v4396_v55  ;;  %v4384_v22 = vmul.f32 %v6978_v48, %v9871_v26  ;;  %6989 = vtanh.f32 %v4188_v41 }
 0xa45   : > { %v4383_v44 = vmul.f32 %v6980_v62, %v9871_v26  ;;  %6991 = vtanh.f32 %v4213_v3  ;;  %v6982_v12 = vpop.eup %6981 }
 0xa46   : > { %v4474_v6 = vsel %vm1276_vm1, %v4384_v22, 0.0  ;;  %6993 = vtanh.f32 %v4203_v54  ;;  %v6984_v60 = vpop.eup %6983  ;;  %v4359_v57 = vmul.f32 %v6982_v12, %v9871_v26 }
 0xa47   : > { %4475 = vadd.xlane.f32.xlu0 %v4474_v6  ;;  %v4471_v14 = vsel %vm1276_vm1, %v4383_v44, 0.0  ;;  %6995 = vtanh.f32 %v4208_v56  ;;  %v4362_v10 = vmul.f32 %v6984_v60, %v9871_v26 }
 0xa48   : > { %4472 = vadd.xlane.f32.xlu1 %v4471_v14  ;;  %6997 = vtanh.f32 %v4223_v17  ;;  %v4399_v25 = vsel %vm1276_vm1, %v4359_v57, 0.0  ;;  %v4293_v14 = vadd.f32 %v9912_v16, %v9866_v2 }
 0xa49   : > { %6999 = vtanh.f32 %v4218_v20  ;;  %v4408_v0 = vsel %vm1276_vm1, %v4362_v10, 0.0 }
 0xa4a   : > { %7001 = vtanh.f32 %v4233_v49 }
 0xa4b   : > { %4403 = vadd.xlane.f32.xlu0 %v4402_v8  ;;  %7003 = vtanh.f32 %v4238_v33 }
 0xa4c   : > { %v6986_v11 = vpop.eup %6985  ;;  %4394 = vadd.xlane.f32.xlu1 %v4393_v28  ;;  %7005 = vtanh.f32 %v4228_v32 }
 0xa4d   : > { %v6988_v46 = vpop.eup %6987  ;;  %v4385_v5 = vmul.f32 %v6986_v11, %v9871_v26  ;;  %7007 = vtanh.f32 %v4253_v21 }
 0xa4e   : > { %v6990_v34 = vpop.eup %6989  ;;  %v4363_v37 = vmul.f32 %v6988_v46, %v9871_v26  ;;  %7009 = vtanh.f32 %v4243_v29 }
 0xa4f   : > { %v4477_v19 = vsel %vm1276_vm1, %v4385_v5, 0.0  ;;  %v6992_v7 = vpop.eup %6991  ;;  %v4361_v52 = vmul.f32 %v6990_v34, %v9871_v26  ;;  %7011 = vtanh.f32 %v4248_v40  ;;  %v4313_v5 = vadd.f32 %v9953_v35, %v9866_v2 }
 0xa50   : > { %4478 = vadd.xlane.f32.xlu0 %v4477_v19  ;;  %4400 = vadd.xlane.f32.xlu1 %v4399_v25  ;;  %v6994_v4 = vpop.eup %6993  ;;  %v4411_v1 = vsel %vm1276_vm1, %v4363_v37, 0.0  ;;  %v4366_v31 = vmul.f32 %v6992_v7, %v9871_v26  ;;  %7013 = vtanh.f32 %v4263_v51 }
 0xa51   : > { %v6996_v30 = vpop.eup %6995  ;;  %v4405_v61 = vsel %vm1276_vm1, %v4361_v52, 0.0  ;;  %v4364_v9 = vmul.f32 %v6994_v4, %v9871_v26  ;;  %7015 = vtanh.f32 %v4258_v38  ;;  %v10060_v38 = vstv %s4483_s5 }
 0xa52   : > { %v6998_v63 = vpop.eup %6997  ;;  %v4420_v43 = vsel %vm1276_vm1, %v4366_v31, 0.0  ;;  %v4365_v58 = vmul.f32 %v6996_v30, %v9871_v26  ;;  %7017 = vtanh.f32 %v4273_v24 }
 0xa53   : > { %v7000_v15 = vpop.eup %6999  ;;  %v4414_v41 = vsel %vm1276_vm1, %v4364_v9, 0.0  ;;  %v4368_v53 = vmul.f32 %v6998_v63, %v9871_v26  ;;  %7019 = vtanh.f32 %v4278_v23 }
 0xa54   : > { %4409 = vadd.xlane.f32.xlu0 %v4408_v0  ;;  %4412 = vadd.xlane.f32.xlu1 %v4411_v1  ;;  %v7002_v3 = vpop.eup %7001  ;;  %v4417_v48 = vsel %vm1276_vm1, %v4365_v58, 0.0  ;;  %v4367_v55 = vmul.f32 %v7000_v15, %v9871_v26  ;;  %7021 = vtanh.f32 %v4268_v47 }
 0xa55   : > { %v7004_v62 = vpop.eup %7003  ;;  %v4426_v22 = vsel %vm1276_vm1, %v4368_v53, 0.0  ;;  %v4370_v54 = vmul.f32 %v7002_v3, %v9871_v26  ;;  %7023 = vtanh.f32 %v4293_v14 }
 0xa56   : > { %v7006_v44 = vpop.eup %7005  ;;  %v4423_v56 = vsel %vm1276_vm1, %v4367_v55, 0.0  ;;  %v4371_v6 = vmul.f32 %v7004_v62, %v9871_v26  ;;  %7025 = vtanh.f32 %v4283_v13 }
 0xa57   : > { %v7008_v42 = vpop.eup %7007  ;;  %v4432_v18 = vsel %vm1276_vm1, %v4370_v54, 0.0  ;;  %v4369_v36 = vmul.f32 %v7006_v44, %v9871_v26  ;;  %7027 = vtanh.f32 %v4313_v5 }
 0xa58   : > { %4406 = vadd.xlane.f32.xlu0 %v4405_v61  ;;  %4421 = vadd.xlane.f32.xlu1 %v4420_v43  ;;  %v7010_v12 = vpop.eup %7009  ;;  %v4435_v17 = vsel %vm1276_vm1, %v4371_v6, 0.0  ;;  %v4374_v60 = vmul.f32 %v7008_v42, %v9871_v26 }
 0xa59   : > { %v7012_v20 = vpop.eup %7011  ;;  %v4429_v16 = vsel %vm1276_vm1, %v4369_v36, 0.0  ;;  %v4372_v8 = vmul.f32 %v7010_v12, %v9871_v26 }
 0xa5a   : > { %v7014_v11 = vpop.eup %7013  ;;  %v4444_v28 = vsel %vm1276_vm1, %v4374_v60, 0.0  ;;  %v4373_v57 = vmul.f32 %v7012_v20, %v9871_v26 }
 0xa5b   : > { %v7016_v46 = vpop.eup %7015  ;;  %v4438_v49 = vsel %vm1276_vm1, %v4372_v8, 0.0  ;;  %v4376_v45 = vmul.f32 %v7014_v11, %v9871_v26 }
 0xa5c   : > { %4415 = vadd.xlane.f32.xlu0 %v4414_v41  ;;  %4418 = vadd.xlane.f32.xlu1 %v4417_v48  ;;  %v7018_v33 = vpop.eup %7017  ;;  %v4441_v19 = vsel %vm1276_vm1, %v4373_v57, 0.0  ;;  %v4375_v10 = vmul.f32 %v7016_v46, %v9871_v26 }
 0xa5d   : > { %v7020_v34 = vpop.eup %7019  ;;  %v4450_v25 = vsel %vm1276_vm1, %v4376_v45, 0.0  ;;  %v4378_v37 = vmul.f32 %v7018_v33, %v9871_v26 }
 0xa5e   : > { %v7022_v7 = vpop.eup %7021  ;;  %v4447_v2 = vsel %vm1276_vm1, %v4375_v10, 0.0  ;;  %v4379_v35 = vmul.f32 %v7020_v34, %v9871_v26 }
 0xa5f   : > { %v7024_v32 = vpop.eup %7023  ;;  %v4456_v21 = vsel %vm1276_vm1, %v4378_v37, 0.0  ;;  %v4377_v0 = vmul.f32 %v7022_v7, %v9871_v26 }
 0xa60   : > { %4427 = vadd.xlane.f32.xlu0 %v4426_v22  ;;  %4424 = vadd.xlane.f32.xlu1 %v4423_v56  ;;  %v7026_v52 = vpop.eup %7025  ;;  %v4459_v4 = vsel %vm1276_vm1, %v4379_v35, 0.0  ;;  %v4382_v1 = vmul.f32 %v7024_v32, %v9871_v26 }
 0xa61   : > { %v4453_v31 = vsel %vm1276_vm1, %v4377_v0, 0.0  ;;  %v4380_v30 = vmul.f32 %v7026_v52, %v9871_v26  ;;  %v7028_v29 = vpop.eup %7027 }
 0xa62   : > { %v4468_v40 = vsel %vm1276_vm1, %v4382_v1, 0.0  ;;  %v4386_v9 = vmul.f32 %v7028_v29, %v9871_v26 }
 0xa63   : > { %v4462_v61 = vsel %vm1276_vm1, %v4380_v30, 0.0 }
 0xa64   : > { %4433 = vadd.xlane.f32.xlu0 %v4432_v18  ;;  %4436 = vadd.xlane.f32.xlu1 %v4435_v17  ;;  %v4480_v63 = vsel %vm1276_vm1, %v4386_v9, 0.0 }
 0xa68   : > { %4430 = vadd.xlane.f32.xlu0 %v4429_v16  ;;  %4445 = vadd.xlane.f32.xlu1 %v4444_v28 }
 0xa6c   : > { %4439 = vadd.xlane.f32.xlu0 %v4438_v49  ;;  %4442 = vadd.xlane.f32.xlu1 %v4441_v19 }
 0xa6f   : > { %v4392_v43 = vpop.xlane.xlu0 %4391 }
 0xa70   : > { %4451 = vadd.xlane.f32.xlu0 %v4450_v25  ;;  %4448 = vadd.xlane.f32.xlu1 %v4447_v2  ;;  %v4486_v26 = vadd.f32 %v10060_v38, %v4392_v43 }
 0xa72   : > { %v5455_v22 = vrot.slane %v4486_v26, %v8705_v50 }
 0xa73   : > { %v4389_v15 = vpop.xlane.xlu0 %4388 }
 0xa74   : > { %4457 = vadd.xlane.f32.xlu0 %v4456_v21  ;;  %4460 = vadd.xlane.f32.xlu1 %v4459_v4  ;;  %v4485_v53 = vadd.f32 %v10060_v38, %v4389_v15 }
 0xa76   : > { %v5451_v55 = vrot.slane %v4485_v53, %v8702_v39 }
 0xa78   : > { %4454 = vadd.xlane.f32.xlu0 %v4453_v31  ;;  %4469 = vadd.xlane.f32.xlu1 %v4468_v40  ;;  %v5456_v56 = vsel %vm2998_vm6, %v5455_v22, %v5451_v55 }
 0xa7c   : > { %4463 = vadd.xlane.f32.xlu0 %v4462_v61 }
 0xa80   : > { %4481 = vadd.xlane.f32.xlu0 %v4480_v63 }
 0xacd   : > { %v10058_v58 = vpop.xlane.xlu1 %4466 }
 0xad1   : > { %v4398_v51 = vpop.xlane.xlu1 %4397 }
 0xad2   : > { %v4488_v62 = vadd.f32 %v10060_v38, %v4398_v51 }
 0xad4   : > { %v10062_v41 = vpop.xlane.xlu0 %4475  ;;  %v5465_v6 = vrot.slane %v4488_v62, %v8713_v59 }
 0xad5   : > { %v10065_v3 = vpop.xlane.xlu1 %4472 }
 0xad8   : > { %v4404_v48 = vpop.xlane.xlu0 %4403 }
 0xad9   : > { %v4395_v24 = vpop.xlane.xlu1 %4394  ;;  %v4490_v17 = vadd.f32 %v10060_v38, %v4404_v48 }
 0xada   : > { %v4487_v23 = vadd.f32 %v10060_v38, %v4395_v24 }
 0xadb   : > { %v5474_v11 = vrot.slane %v4490_v17, %v8705_v50 }
 0xadc   : > { %v5460_v54 = vrot.slane %v4487_v23, %v8710_v27 }
 0xadd   : > { %v10073_v44 = vpop.xlane.xlu0 %4478  ;;  %v4401_v42 = vpop.xlane.xlu1 %4400 }
 0xade   : > { %v5461_v47 = vsel %vm3005_vm7, %v5460_v54, %v5456_v56  ;;  %v4489_v18 = vadd.f32 %v10060_v38, %v4401_v42 }
 0xadf   : > { %v5466_v14 = vsel %vm3012_vm8, %v5465_v6, %v5461_v47 }
 0xae0   : > { %5608 = vst.msk [vmem:[%s8466_s9 + $0x2] sm:$0x1] %vm4709_vm5, %v5466_v14  ;;  %v5470_v60 = vrot.slane %v4489_v18, %v8702_v39 }
 0xae1   : > { %v4410_v36 = vpop.xlane.xlu0 %4409  ;;  %v4413_v12 = vpop.xlane.xlu1 %4412 }
 0xae2   : > { %v4492_v20 = vadd.f32 %v10060_v38, %v4410_v36  ;;  %v4493_v28 = vadd.f32 %v10060_v38, %v4413_v12  ;;  %v5475_v46 = vsel %vm2998_vm6, %v5474_v11, %v5470_v60 }
 0xae4   : > { %v5484_v5 = vrot.slane %v4492_v20, %v8713_v59  ;;  %v5489_v37 = vrot.slane %v4493_v28, %v8702_v39 }
 0xae5   : > { %v4407_v13 = vpop.xlane.xlu0 %4406  ;;  %v4422_v16 = vpop.xlane.xlu1 %4421 }
 0xae6   : > { %v4491_v8 = vadd.f32 %v10060_v38, %v4407_v13  ;;  %v4496_v45 = vadd.f32 %v10060_v38, %v4422_v16 }
 0xae8   : > { %v5479_v57 = vrot.slane %v4491_v8, %v8710_v27  ;;  %v5503_v32 = vrot.slane %v4496_v45, %v8713_v59  ;;  %v4514_v45 = vadd.f32 %v10060_v38, %v10062_v41 }
 0xae9   : > { %v4416_v49 = vpop.xlane.xlu0 %4415  ;;  %v4419_v19 = vpop.xlane.xlu1 %4418 }
 0xaea   : > { %v5480_v33 = vsel %vm3005_vm7, %v5479_v57, %v5475_v46  ;;  %v4494_v10 = vadd.f32 %v10060_v38, %v4416_v49  ;;  %v4495_v25 = vadd.f32 %v10060_v38, %v4419_v19 }
 0xaeb   : > { %v5485_v34 = vsel %vm3012_vm8, %v5484_v5, %v5480_v33  ;;  %v4513_v33 = vadd.f32 %v10060_v38, %v10065_v3 }
 0xaec   : > { %5609 = vst.msk [vmem:[%s8466_s9 + $0x6] sm:$0x1] %vm4709_vm5, %v5485_v34  ;;  %v5493_v7 = vrot.slane %v4494_v10, %v8705_v50  ;;  %v5498_v2 = vrot.slane %v4495_v25, %v8710_v27  ;;  %v4511_v34 = vadd.f32 %v10060_v38, %v10058_v58  ;;  %v4515_v25 = vadd.f32 %v10060_v38, %v10073_v44 }
 0xaed   : > { %v4428_v35 = vpop.xlane.xlu0 %4427  ;;  %v4425_v0 = vpop.xlane.xlu1 %4424  ;;  %v5584_v58 = vrot.slane %v4513_v33, %v8702_v39 }
 0xaee   : > { %v5494_v21 = vsel %vm2998_vm6, %v5493_v7, %v5489_v37  ;;  %v4497_v1 = vadd.f32 %v10060_v38, %v4425_v0  ;;  %v4498_v31 = vadd.f32 %v10060_v38, %v4428_v35 }
 0xaef   : > { %v5499_v52 = vsel %vm3005_vm7, %v5498_v2, %v5494_v21  ;;  %v5588_v21 = vrot.slane %v4514_v45, %v8705_v50 }
 0xaf0   : > { %v5504_v4 = vsel %vm3012_vm8, %v5503_v32, %v5499_v52  ;;  %v5508_v40 = vrot.slane %v4497_v1, %v8702_v39  ;;  %v5512_v61 = vrot.slane %v4498_v31, %v8705_v50  ;;  %v5574_v52 = vrot.slane %v4511_v34, %v8710_v27 }
 0xaf1   : > { %5610 = vst.msk [vmem:[%s8466_s9 + $0xa] sm:$0x1] %vm4709_vm5, %v5504_v4  ;;  %v4434_v30 = vpop.xlane.xlu0 %4433  ;;  %v4437_v29 = vpop.xlane.xlu1 %4436  ;;  %v5593_v4 = vrot.slane %v4515_v25, %v8710_v27 }
 0xaf2   : > { %v4500_v9 = vadd.f32 %v10060_v38, %v4434_v30  ;;  %v4501_v51 = vadd.f32 %v10060_v38, %v4437_v29  ;;  %v5513_v26 = vsel %vm2998_vm6, %v5512_v61, %v5508_v40 }
 0xaf4   : > { %v5522_v48 = vrot.slane %v4500_v9, %v8713_v59  ;;  %v5527_v6 = vrot.slane %v4501_v51, %v8702_v39 }
 0xaf5   : > { %v4431_v63 = vpop.xlane.xlu0 %4430  ;;  %v4446_v43 = vpop.xlane.xlu1 %4445 }
 0xaf6   : > { %v4499_v15 = vadd.f32 %v10060_v38, %v4431_v63  ;;  %v4504_v62 = vadd.f32 %v10060_v38, %v4446_v43 }
 0xaf8   : > { %v5517_v53 = vrot.slane %v4499_v15, %v8710_v27  ;;  %v5541_v18 = vrot.slane %v4504_v62, %v8713_v59 }
 0xaf9   : > { %v4440_v55 = vpop.xlane.xlu0 %4439  ;;  %v4443_v23 = vpop.xlane.xlu1 %4442 }
 0xafa   : > { %v5518_v24 = vsel %vm3005_vm7, %v5517_v53, %v5513_v26  ;;  %v4502_v22 = vadd.f32 %v10060_v38, %v4440_v55  ;;  %v4503_v56 = vadd.f32 %v10060_v38, %v4443_v23 }
 0xafb   : > { %v5523_v54 = vsel %vm3012_vm8, %v5522_v48, %v5518_v24 }
 0xafc   : > { %5611 = vst.msk [vmem:[%s8466_s9 + $0xe] sm:$0x1] %vm4709_vm5, %v5523_v54  ;;  %v5531_v42 = vrot.slane %v4502_v22, %v8705_v50  ;;  %v5536_v47 = vrot.slane %v4503_v56, %v8710_v27 }
 0xafd   : > { %v4452_v14 = vpop.xlane.xlu0 %4451  ;;  %v4449_v12 = vpop.xlane.xlu1 %4448 }
 0xafe   : > { %v5532_v36 = vsel %vm2998_vm6, %v5531_v42, %v5527_v6  ;;  %v4505_v20 = vadd.f32 %v10060_v38, %v4449_v12  ;;  %v4506_v13 = vadd.f32 %v10060_v38, %v4452_v14 }
 0xaff   : > { %v5537_v17 = vsel %vm3005_vm7, %v5536_v47, %v5532_v36 }
 0xb00   : > { %v5542_v60 = vsel %vm3012_vm8, %v5541_v18, %v5537_v17  ;;  %v5546_v11 = vrot.slane %v4505_v20, %v8702_v39  ;;  %v5550_v28 = vrot.slane %v4506_v13, %v8705_v50 }
 0xb01   : > { %5612 = vst.msk [vmem:[%s8466_s9 + $0x12] sm:$0x1] %vm4709_vm5, %v5542_v60  ;;  %v4458_v16 = vpop.xlane.xlu0 %4457  ;;  %v4461_v8 = vpop.xlane.xlu1 %4460 }
 0xb02   : > { %v4508_v57 = vadd.f32 %v10060_v38, %v4458_v16  ;;  %v4509_v19 = vadd.f32 %v10060_v38, %v4461_v8  ;;  %v5551_v37 = vsel %vm2998_vm6, %v5550_v28, %v5546_v11 }
 0xb04   : > { %v5560_v7 = vrot.slane %v4508_v57, %v8713_v59  ;;  %v5565_v44 = vrot.slane %v4509_v19, %v8702_v39  ;;  %v5589_v39 = vsel %vm2998_vm6, %v5588_v21, %v5584_v58 }
 0xb05   : > { %v4455_v46 = vpop.xlane.xlu0 %4454  ;;  %v4470_v49 = vpop.xlane.xlu1 %4469 }
 0xb06   : > { %v4507_v5 = vadd.f32 %v10060_v38, %v4455_v46  ;;  %v4512_v41 = vadd.f32 %v10060_v38, %v4470_v49 }
 0xb08   : > { %v5555_v10 = vrot.slane %v4507_v5, %v8710_v27  ;;  %v5579_v31 = vrot.slane %v4512_v41, %v8713_v59 }
 0xb09   : > { %v4464_v2 = vpop.xlane.xlu0 %4463 }
 0xb0a   : > { %v5556_v35 = vsel %vm3005_vm7, %v5555_v10, %v5551_v37  ;;  %v4510_v3 = vadd.f32 %v10060_v38, %v4464_v2 }
 0xb0b   : > { %v5561_v32 = vsel %vm3012_vm8, %v5560_v7, %v5556_v35 }
 0xb0c   : > { %5613 = vst.msk [vmem:[%s8466_s9 + $0x16] sm:$0x1] %vm4709_vm5, %v5561_v32  ;;  %v5569_v0 = vrot.slane %v4510_v3, %v8705_v50  ;;  %v5594_v50 = vsel %vm3005_vm7, %v5593_v4, %v5589_v39 }
 0xb0d   : > { %v4482_v1 = vpop.xlane.xlu0 %4481 }
 0xb0e   : > { %v5570_v30 = vsel %vm2998_vm6, %v5569_v0, %v5565_v44  ;;  %v4516_v29 = vadd.f32 %v10060_v38, %v4482_v1 }
 0xb0f   : > { %v5575_v40 = vsel %vm3005_vm7, %v5574_v52, %v5570_v30 }
 0xb10   : > { %v5580_v61 = vsel %vm3012_vm8, %v5579_v31, %v5575_v40  ;;  %v5598_v9 = vrot.slane %v4516_v29, %v8713_v59 }
 0xb11   : > { %5614 = vst.msk [vmem:[%s8466_s9 + $0x1a] sm:$0x1] %vm4709_vm5, %v5580_v61 }
 0xb12   : > { %v5599_v27 = vsel %vm3012_vm8, %v5598_v9, %v5594_v50 }
 0xb13   : > { %5615 = vst.msk [vmem:[%s8466_s9 + $0x1e] sm:$0x1] %vm4709_vm5, %v5599_v27 }
 0xb14 PF: > { %p89_p0 = scmp.ge.s32.totalorder %s7981_s23, 4   ;;  %s10333_s9 = smov %s7543_s13 }
 0xb15   : > { %s10334_s13 = smov %s7547_s0  ;;  %s10335_s0 = smov %s7993_s22 }
 0xb16   : > { %s10336_s5 = smov %s7981_s23  ;;  %91 = sbr.rel (!%p89_p0) target bundleno = 71 (0x47), region = 308 }
 0xb1d   :  { %5672 = vsyncpa [#allocation6], 1 }
 0xb1e   :  { %5674 = vsyncpa [#allocation6 + $0x1], 1 }
 0xb1f   :  { %5675 = vsyncpa [#allocation8], 1 }
 0xb20   :  { %5677 = vsyncpa [#allocation8 + $0x1], 1 }
 0xb21   :  { %5678 = vsyncpa [#allocation11], 1 }
 0xb22   :  { %5679 = vsyncpa [#allocation14], 1 }
 0xb23   :  { %5680 = vsyncpa [#allocation17], 1 }
 0xb24   :  { %5681 = vsyncpa [#allocation20], 1 }
 0xb25   :  { %5682 = vsyncpa [#allocation23], 1 }
 0xb26   :  { %5683 = vsyncpa [#allocation26], 1 }
 0xb27   :  { %5684 = vsyncpa [#allocation29], 1 }

</bundles_post_ra>
